<compile_context>
chip_gen: v5e
topology: v5e:2x2
jax: 0.10.0
libtpu: 0.0.40
codegen_flags: <defaults>
</compile_context>

<pallas_src>
import jax
import jax.numpy as jnp
from jax.experimental import pallas as pl
from jax.experimental.pallas import tpu as pltpu


def _round_up(x, m):
    return ((x + m - 1) // m) * m


# ----------------------------------------------------------------------------
# Parameter construction (deterministic, PyTorch-Linear-style uniform init).
# Weights are stored as (in_dim, out_dim) so the math is latent @ W + b.
# ----------------------------------------------------------------------------
def build_sdf_head_params(key, sdf_latent, point_latent, dims, latent_in,
                          use_cls_hand=False, num_class=0):
    full_dims = [sdf_latent + point_latent] + list(dims) + [1]
    num_layers = len(full_dims)
    params = []
    keys = jax.random.split(key, num_layers + 1)
    for layer in range(num_layers - 1):
        in_dim = full_dims[layer]
        if (layer + 1) in latent_in:
            out_dim = full_dims[layer + 1] - full_dims[0]
        else:
            out_dim = full_dims[layer + 1]
        kw, kb = jax.random.split(keys[layer])
        bound = 1.0 / float(in_dim) ** 0.5
        W = jax.random.uniform(kw, (in_dim, out_dim), jnp.float32, -bound, bound)
        b = jax.random.uniform(kb, (1, out_dim), jnp.float32, -bound, bound)
        params.append((W, b))
    cls_params = None
    if use_cls_hand:
        in_dim = full_dims[num_layers - 2]
        kw, kb = jax.random.split(keys[-1])
        bound = 1.0 / float(in_dim) ** 0.5
        Wc = jax.random.uniform(kw, (in_dim, num_class), jnp.float32, -bound, bound)
        bc = jax.random.uniform(kb, (1, num_class), jnp.float32, -bound, bound)
        cls_params = (Wc, bc)
    return full_dims, params, cls_params


# ----------------------------------------------------------------------------
# Weight packing: zero-pad out-dims to 128 lanes, split latent_in-layer weights
# into (W_lat, W_x) to avoid in-kernel concat, and fuse SDF + classifier into
# one 128-wide final matmul (col 0 = sdf pre-tanh, cols 1..num_class = logits).
# ----------------------------------------------------------------------------
def pack_sdf_head_params(full_dims, params, cls_params, latent_in,
                         compute_dtype=jnp.bfloat16, pad_to=128):
    D0 = full_dims[0]
    L = len(params)
    use_cls = cls_params is not None
    num_class = cls_params[0].shape[1] if use_cls else 0
    assert 1 + num_class <= pad_to

    packed, plan = [], []
    for layer in range(L):
        W, b = params[layer]
        in_dim = W.shape[0]
        if layer == L - 1 and use_cls:
            # Fuse SDF (col 0) and classifier (cols 1..num_class) into one matmul.
            Wc, bc = cls_params
            W = jnp.concatenate([W, Wc], axis=1)
            b = jnp.concatenate([b, bc], axis=1)
        out_dim = W.shape[1]
        W = jnp.pad(W, ((0, 0), (0, pad_to - out_dim)))
        b = jnp.pad(b, ((0, 0), (0, pad_to - out_dim)))
        if layer in latent_in:
            # split matmul: dot(latent, W_lat) + dot(x, W_x)  == concat form
            lat_dim = in_dim - D0
            lat_rows = D0 if layer == 0 else pad_to  # padded latent width
            W_lat = jnp.pad(W[:lat_dim, :], ((0, lat_rows - lat_dim), (0, 0)))
            W_x = W[lat_dim:, :]                      # rows == D0, matches x
            packed += [W_lat.astype(compute_dtype),
                       W_x.astype(compute_dtype),
                       b.astype(jnp.float32)]
            plan.append("split")
        else:
            in_rows = D0 if layer == 0 else pad_to
            W = jnp.pad(W, ((0, in_rows - in_dim), (0, 0)))
            packed += [W.astype(compute_dtype), b.astype(jnp.float32)]
            plan.append("plain")
    return packed, tuple(plan)


# ----------------------------------------------------------------------------
# Pallas kernel: whole MLP fused for a tile of points.  The layer loop is a
# Python loop unrolled at trace time (layer count is static config).
# ----------------------------------------------------------------------------
def make_sdf_head_kernel(plan, compute_dtype):
    L = len(plan)

    def kernel(*refs):
        x_ref = refs[0]
        w_refs = refs[1:-1]
        out_ref = refs[-1]

        x = x_ref[...]               # (tile_n, D0), compute_dtype (bf16)
        latent = x
        idx = 0
        for layer in range(L):
            if plan[layer] == "split":
                w_lat = w_refs[idx][...]
                w_x = w_refs[idx + 1][...]
                b = w_refs[idx + 2][...]
                idx += 3
                z = (jnp.dot(latent, w_lat, preferred_element_type=jnp.float32)
                     + jnp.dot(x, w_x, preferred_element_type=jnp.float32)
                     + b)
            else:
                w = w_refs[idx][...]
                b = w_refs[idx + 1][...]
                idx += 2
                z = jnp.dot(latent, w, preferred_element_type=jnp.float32) + b
            if layer < L - 1:
                latent = jnp.maximum(z, 0.0).astype(compute_dtype)
                # TODO(synk): dropout is training-mode only; eval = identity.
            else:
                # Lane-dense final slab: col 0 = tanh(sdf), cols 1.. = logits.
                col = jax.lax.broadcasted_iota(jnp.int32, z.shape, 1)
                out_ref[...] = jnp.where(col == 0, jnp.tanh(z), z).astype(
                    out_ref.dtype)

    return kernel


def sdf_head_forward(x, full_dims, params, cls_params, latent_in,
                     tile_n=1024, compute_dtype=jnp.bfloat16, pad_to=128):
    """Run the fused SDFHead MLP. x: (N, dims[0]) float32."""
    N, D0 = x.shape
    assert D0 == full_dims[0]
    use_cls = cls_params is not None
    num_class = cls_params[0].shape[1] if use_cls else 0

    packed, plan = pack_sdf_head_params(full_dims, params, cls_params,
                                        latent_in, compute_dtype, pad_to)

    # Big tiles amortize per-step overhead; keep grid >= 2 when N allows so
    # v7x's two TensorCores are both fed.  Pad N to a multiple of tile_n.
    tile_n = min(tile_n, _round_up(N, 8))
    n_pad = _round_up(N, tile_n)
    x_in = x.astype(compute_dtype)
    if n_pad != N:
        x_in = jnp.pad(x_in, ((0, n_pad - N), (0, 0)))

    in_specs = [pl.BlockSpec((tile_n, D0), lambda i: (i, 0))]
    for arr in packed:
        in_specs.append(pl.BlockSpec(arr.shape, lambda i: (0, 0)))

    out = pl.pallas_call(
        make_sdf_head_kernel(plan, compute_dtype),
        out_shape=jax.ShapeDtypeStruct((n_pad, pad_to), jnp.float32),
        grid_spec=pltpu.PrefetchScalarGridSpec(
            num_scalar_prefetch=0,
            grid=(n_pad // tile_n,),
            in_specs=in_specs,
            out_specs=pl.BlockSpec((tile_n, pad_to), lambda i: (i, 0)),
        ),
        compiler_params=pltpu.CompilerParams(
            dimension_semantics=("parallel",)),
    )(x_in, *packed)

    sdf = out[:N, 0:1].astype(x.dtype)
    cls = out[:N, 1:1 + num_class].astype(x.dtype) if use_cls else None
    return sdf, cls


# ----------------------------------------------------------------------------
# Pure-JAX reference (mirrors the PyTorch forward, eval mode).
# compute_dtype=bfloat16 mirrors the kernel's MXU input precision exactly.
# ----------------------------------------------------------------------------
def sdf_head_reference(x, params, cls_params, latent_in,
                       compute_dtype=jnp.float32):
    cd = compute_dtype
    xin = x.astype(cd)
    latent = xin
    L = len(params)
    predicted_class = None
    for layer in range(L):
        W, b = params[layer]
        if cls_params is not None and layer == L - 1:
            Wc, bc = cls_params
            predicted_class = jnp.dot(latent, Wc.astype(cd),
                                      preferred_element_type=jnp.float32) + bc
        if layer in latent_in:
            latent = jnp.concatenate([latent, xin], axis=1)
        latent = jnp.dot(latent, W.astype(cd),
                         preferred_element_type=jnp.float32) + b
        if layer < L - 1:
            latent = jnp.maximum(latent, 0.0).astype(cd)
    return jnp.tanh(latent), predicted_class


if __name__ == "__main__":
    # Small synthetic configuration consistent with the module's __init__:
    sdf_latent = 16
    point_latent = 16           # dims[0] = 32
    hidden_dims = [64, 64, 64, 64]
    latent_in = [2]             # layer 2 gets concat([latent, input])
    norm_layers = [0, 1, 2, 3]  # weight_norm: forward-equivalent to Linear
    dropout = [0, 1, 2, 3]      # eval mode -> identity
    dropout_prob = 0.2
    use_cls_hand = True
    num_class = 8

    key = jax.random.PRNGKey(0)
    kparam, kx = jax.random.split(key)

    full_dims, params, cls_params = build_sdf_head_params(
        kparam, sdf_latent, point_latent, hidden_dims, latent_in,
        use_cls_hand=use_cls_hand, num_class=num_class)

    N = 2048  # (latent code + point) rows -> 2 grid steps of tile_n=1024
    x = jax.random.normal(kx, (N, full_dims[0]), jnp.float32)

    sdf, cls = sdf_head_forward(x, full_dims, params, cls_params, latent_in,
                                tile_n=1024)
    sdf = jax.block_until_ready(sdf)
    cls = jax.block_until_ready(cls)
    assert sdf.shape == (N, 1) and cls.shape == (N, num_class)

    # Tight check vs. a reference mirroring the kernel's bf16 MXU inputs.
    sdf_bf, cls_bf = sdf_head_reference(x, params, cls_params, latent_in,
                                        compute_dtype=jnp.bfloat16)
    assert jnp.allclose(sdf, sdf_bf, atol=2e-3, rtol=2e-3)
    assert jnp.allclose(cls, cls_bf, atol=2e-3, rtol=2e-3)

    # Loose semantic check vs. the full-f32 reference (bf16 rounding noise).
    sdf_f32, cls_f32 = sdf_head_reference(x, params, cls_params, latent_in,
                                          compute_dtype=jnp.float32)
    assert jnp.allclose(sdf, sdf_f32, atol=8e-2, rtol=8e-2)
    assert jnp.allclose(cls, cls_f32, atol=8e-2, rtol=8e-2)

    print("KERNEL_OK")
</pallas_src>

<mosaic_0001>
module attributes {stable_mosaic.version = 11 : i64} {
  func.func @kernel(%arg0: i32, %arg1: memref<1024x32xbf16, #tpu.memory_space<vmem>>, %arg2: memref<32x128xbf16, #tpu.memory_space<vmem>>, %arg3: memref<1x128xf32, #tpu.memory_space<vmem>>, %arg4: memref<128x128xbf16, #tpu.memory_space<vmem>>, %arg5: memref<1x128xf32, #tpu.memory_space<vmem>>, %arg6: memref<128x128xbf16, #tpu.memory_space<vmem>>, %arg7: memref<32x128xbf16, #tpu.memory_space<vmem>>, %arg8: memref<1x128xf32, #tpu.memory_space<vmem>>, %arg9: memref<128x128xbf16, #tpu.memory_space<vmem>>, %arg10: memref<1x128xf32, #tpu.memory_space<vmem>>, %arg11: memref<128x128xbf16, #tpu.memory_space<vmem>>, %arg12: memref<1x128xf32, #tpu.memory_space<vmem>>, %arg13: memref<1024x128xf32, #tpu.memory_space<vmem>>) attributes {dimension_semantics = [#tpu.dimension_semantics<parallel>], iteration_bounds = array<i64: 2>, scalar_prefetch = 0 : i64, scratch_operands = 0 : i64, tpu.core_type = #tpu.core_type<tc>, window_params = [{transform_indices = @transform_0, window_bounds = array<i64: 1024, 32>}, {pipeline_mode = #tpu.pipeline_mode<synchronous>, transform_indices = @transform_1, window_bounds = array<i64: 32, 128>}, {pipeline_mode = #tpu.pipeline_mode<synchronous>, transform_indices = @transform_2, window_bounds = array<i64: 1, 128>}, {pipeline_mode = #tpu.pipeline_mode<synchronous>, transform_indices = @transform_3, window_bounds = array<i64: 128, 128>}, {pipeline_mode = #tpu.pipeline_mode<synchronous>, transform_indices = @transform_4, window_bounds = array<i64: 1, 128>}, {pipeline_mode = #tpu.pipeline_mode<synchronous>, transform_indices = @transform_5, window_bounds = array<i64: 128, 128>}, {pipeline_mode = #tpu.pipeline_mode<synchronous>, transform_indices = @transform_6, window_bounds = array<i64: 32, 128>}, {pipeline_mode = #tpu.pipeline_mode<synchronous>, transform_indices = @transform_7, window_bounds = array<i64: 1, 128>}, {pipeline_mode = #tpu.pipeline_mode<synchronous>, transform_indices = @transform_8, window_bounds = array<i64: 128, 128>}, {pipeline_mode = #tpu.pipeline_mode<synchronous>, transform_indices = @transform_9, window_bounds = array<i64: 1, 128>}, {pipeline_mode = #tpu.pipeline_mode<synchronous>, transform_indices = @transform_10, window_bounds = array<i64: 128, 128>}, {pipeline_mode = #tpu.pipeline_mode<synchronous>, transform_indices = @transform_11, window_bounds = array<i64: 1, 128>}, {transform_indices = @transform_12, window_bounds = array<i64: 1024, 128>}]} {
    %c0 = arith.constant 0 : index
    %c0_0 = arith.constant 0 : index
    %0 = vector.load %arg1[%c0, %c0_0] : memref<1024x32xbf16, #tpu.memory_space<vmem>>, vector<1024x32xbf16>
    %c0_1 = arith.constant 0 : index
    %c0_2 = arith.constant 0 : index
    %1 = vector.load %arg2[%c0_1, %c0_2] : memref<32x128xbf16, #tpu.memory_space<vmem>>, vector<32x128xbf16>
    %c0_3 = arith.constant 0 : index
    %c0_4 = arith.constant 0 : index
    %2 = vector.load %arg3[%c0_3, %c0_4] : memref<1x128xf32, #tpu.memory_space<vmem>>, vector<1x128xf32>
    %cst = arith.constant dense<0.000000e+00> : vector<1024x128xf32>
    %3 = tpu.matmul %0, %1, %cst {dimension_numbers = #tpu.dot_dimension_numbers<[1], [0], [0], [1], [0, 0, 1, 1], [], []>} : vector<1024x32xbf16>, vector<32x128xbf16>, vector<1024x128xf32> -> vector<1024x128xf32>
    %4 = vector.broadcast %2 : vector<1x128xf32> to vector<1024x128xf32>
    %5 = arith.addf %3, %4 : vector<1024x128xf32>
    %cst_5 = arith.constant 0.000000e+00 : f32
    %6 = vector.broadcast %cst_5 : f32 to vector<1024x128xf32>
    %7 = arith.maximumf %5, %6 : vector<1024x128xf32>
    %8 = arith.truncf %7 : vector<1024x128xf32> to vector<1024x128xbf16>
    %c0_6 = arith.constant 0 : index
    %c0_7 = arith.constant 0 : index
    %9 = vector.load %arg4[%c0_6, %c0_7] : memref<128x128xbf16, #tpu.memory_space<vmem>>, vector<128x128xbf16>
    %c0_8 = arith.constant 0 : index
    %c0_9 = arith.constant 0 : index
    %10 = vector.load %arg5[%c0_8, %c0_9] : memref<1x128xf32, #tpu.memory_space<vmem>>, vector<1x128xf32>
    %cst_10 = arith.constant dense<0.000000e+00> : vector<1024x128xf32>
    %11 = tpu.matmul %8, %9, %cst_10 {dimension_numbers = #tpu.dot_dimension_numbers<[1], [0], [0], [1], [0, 0, 1, 1], [], []>} : vector<1024x128xbf16>, vector<128x128xbf16>, vector<1024x128xf32> -> vector<1024x128xf32>
    %12 = vector.broadcast %10 : vector<1x128xf32> to vector<1024x128xf32>
    %13 = arith.addf %11, %12 : vector<1024x128xf32>
    %cst_11 = arith.constant 0.000000e+00 : f32
    %14 = vector.broadcast %cst_11 : f32 to vector<1024x128xf32>
    %15 = arith.maximumf %13, %14 : vector<1024x128xf32>
    %16 = arith.truncf %15 : vector<1024x128xf32> to vector<1024x128xbf16>
    %c0_12 = arith.constant 0 : index
    %c0_13 = arith.constant 0 : index
    %17 = vector.load %arg6[%c0_12, %c0_13] : memref<128x128xbf16, #tpu.memory_space<vmem>>, vector<128x128xbf16>
    %c0_14 = arith.constant 0 : index
    %c0_15 = arith.constant 0 : index
    %18 = vector.load %arg7[%c0_14, %c0_15] : memref<32x128xbf16, #tpu.memory_space<vmem>>, vector<32x128xbf16>
    %c0_16 = arith.constant 0 : index
    %c0_17 = arith.constant 0 : index
    %19 = vector.load %arg8[%c0_16, %c0_17] : memref<1x128xf32, #tpu.memory_space<vmem>>, vector<1x128xf32>
    %cst_18 = arith.constant dense<0.000000e+00> : vector<1024x128xf32>
    %20 = tpu.matmul %16, %17, %cst_18 {dimension_numbers = #tpu.dot_dimension_numbers<[1], [0], [0], [1], [0, 0, 1, 1], [], []>} : vector<1024x128xbf16>, vector<128x128xbf16>, vector<1024x128xf32> -> vector<1024x128xf32>
    %cst_19 = arith.constant dense<0.000000e+00> : vector<1024x128xf32>
    %21 = tpu.matmul %0, %18, %cst_19 {dimension_numbers = #tpu.dot_dimension_numbers<[1], [0], [0], [1], [0, 0, 1, 1], [], []>} : vector<1024x32xbf16>, vector<32x128xbf16>, vector<1024x128xf32> -> vector<1024x128xf32>
    %22 = arith.addf %20, %21 : vector<1024x128xf32>
    %23 = vector.broadcast %19 : vector<1x128xf32> to vector<1024x128xf32>
    %24 = arith.addf %22, %23 : vector<1024x128xf32>
    %cst_20 = arith.constant 0.000000e+00 : f32
    %25 = vector.broadcast %cst_20 : f32 to vector<1024x128xf32>
    %26 = arith.maximumf %24, %25 : vector<1024x128xf32>
    %27 = arith.truncf %26 : vector<1024x128xf32> to vector<1024x128xbf16>
    %c0_21 = arith.constant 0 : index
    %c0_22 = arith.constant 0 : index
    %28 = vector.load %arg9[%c0_21, %c0_22] : memref<128x128xbf16, #tpu.memory_space<vmem>>, vector<128x128xbf16>
    %c0_23 = arith.constant 0 : index
    %c0_24 = arith.constant 0 : index
    %29 = vector.load %arg10[%c0_23, %c0_24] : memref<1x128xf32, #tpu.memory_space<vmem>>, vector<1x128xf32>
    %cst_25 = arith.constant dense<0.000000e+00> : vector<1024x128xf32>
    %30 = tpu.matmul %27, %28, %cst_25 {dimension_numbers = #tpu.dot_dimension_numbers<[1], [0], [0], [1], [0, 0, 1, 1], [], []>} : vector<1024x128xbf16>, vector<128x128xbf16>, vector<1024x128xf32> -> vector<1024x128xf32>
    %31 = vector.broadcast %29 : vector<1x128xf32> to vector<1024x128xf32>
    %32 = arith.addf %30, %31 : vector<1024x128xf32>
    %cst_26 = arith.constant 0.000000e+00 : f32
    %33 = vector.broadcast %cst_26 : f32 to vector<1024x128xf32>
    %34 = arith.maximumf %32, %33 : vector<1024x128xf32>
    %35 = arith.truncf %34 : vector<1024x128xf32> to vector<1024x128xbf16>
    %c0_27 = arith.constant 0 : index
    %c0_28 = arith.constant 0 : index
    %36 = vector.load %arg11[%c0_27, %c0_28] : memref<128x128xbf16, #tpu.memory_space<vmem>>, vector<128x128xbf16>
    %c0_29 = arith.constant 0 : index
    %c0_30 = arith.constant 0 : index
    %37 = vector.load %arg12[%c0_29, %c0_30] : memref<1x128xf32, #tpu.memory_space<vmem>>, vector<1x128xf32>
    %cst_31 = arith.constant dense<0.000000e+00> : vector<1024x128xf32>
    %38 = tpu.matmul %35, %36, %cst_31 {dimension_numbers = #tpu.dot_dimension_numbers<[1], [0], [0], [1], [0, 0, 1, 1], [], []>} : vector<1024x128xbf16>, vector<128x128xbf16>, vector<1024x128xf32> -> vector<1024x128xf32>
    %39 = vector.broadcast %37 : vector<1x128xf32> to vector<1024x128xf32>
    %40 = arith.addf %38, %39 : vector<1024x128xf32>
    %41 = tpu.iota {dimensions = array<i32: 1>} : vector<1024x128xi32>
    %c0_i32 = arith.constant 0 : i32
    %42 = vector.broadcast %c0_i32 : i32 to vector<1024x128xi32>
    %43 = arith.cmpi eq, %41, %42 : vector<1024x128xi32>
    %44 = math.tanh %40 : vector<1024x128xf32>
    %45 = arith.select %43, %44, %40 : vector<1024x128xi1>, vector<1024x128xf32>
    %c0_32 = arith.constant 0 : index
    %c0_33 = arith.constant 0 : index
    %46 = vector.load %arg13[%c0_32, %c0_33] : memref<1024x128xf32, #tpu.memory_space<vmem>>, vector<1024x128xf32>
    tpu.vector_store %arg13[%c0_32, %c0_33], %45 {strides = array<i32>} : memref<1024x128xf32, #tpu.memory_space<vmem>>, vector<1024x128xf32>,
    return
  }
  func.func @transform_0(%arg0: i32) -> (i32, i32) {
    %c0_i32 = arith.constant 0 : i32
    %c0_i32_0 = arith.constant 0 : i32
    return %arg0, %c0_i32 : i32, i32
  }
  func.func @transform_1(%arg0: i32) -> (i32, i32) {
    %c0_i32 = arith.constant 0 : i32
    %c0_i32_0 = arith.constant 0 : i32
    %c0_i32_1 = arith.constant 0 : i32
    return %c0_i32, %c0_i32_0 : i32, i32
  }
  func.func @transform_2(%arg0: i32) -> (i32, i32) {
    %c0_i32 = arith.constant 0 : i32
    %c0_i32_0 = arith.constant 0 : i32
    %c0_i32_1 = arith.constant 0 : i32
    return %c0_i32, %c0_i32_0 : i32, i32
  }
  func.func @transform_3(%arg0: i32) -> (i32, i32) {
    %c0_i32 = arith.constant 0 : i32
    %c0_i32_0 = arith.constant 0 : i32
    %c0_i32_1 = arith.constant 0 : i32
    return %c0_i32, %c0_i32_0 : i32, i32
  }
  func.func @transform_4(%arg0: i32) -> (i32, i32) {
    %c0_i32 = arith.constant 0 : i32
    %c0_i32_0 = arith.constant 0 : i32
    %c0_i32_1 = arith.constant 0 : i32
    return %c0_i32, %c0_i32_0 : i32, i32
  }
  func.func @transform_5(%arg0: i32) -> (i32, i32) {
    %c0_i32 = arith.constant 0 : i32
    %c0_i32_0 = arith.constant 0 : i32
    %c0_i32_1 = arith.constant 0 : i32
    return %c0_i32, %c0_i32_0 : i32, i32
  }
  func.func @transform_6(%arg0: i32) -> (i32, i32) {
    %c0_i32 = arith.constant 0 : i32
    %c0_i32_0 = arith.constant 0 : i32
    %c0_i32_1 = arith.constant 0 : i32
    return %c0_i32, %c0_i32_0 : i32, i32
  }
  func.func @transform_7(%arg0: i32) -> (i32, i32) {
    %c0_i32 = arith.constant 0 : i32
    %c0_i32_0 = arith.constant 0 : i32
    %c0_i32_1 = arith.constant 0 : i32
    return %c0_i32, %c0_i32_0 : i32, i32
  }
  func.func @transform_8(%arg0: i32) -> (i32, i32) {
    %c0_i32 = arith.constant 0 : i32
    %c0_i32_0 = arith.constant 0 : i32
    %c0_i32_1 = arith.constant 0 : i32
    return %c0_i32, %c0_i32_0 : i32, i32
  }
  func.func @transform_9(%arg0: i32) -> (i32, i32) {
    %c0_i32 = arith.constant 0 : i32
    %c0_i32_0 = arith.constant 0 : i32
    %c0_i32_1 = arith.constant 0 : i32
    return %c0_i32, %c0_i32_0 : i32, i32
  }
  func.func @transform_10(%arg0: i32) -> (i32, i32) {
    %c0_i32 = arith.constant 0 : i32
    %c0_i32_0 = arith.constant 0 : i32
    %c0_i32_1 = arith.constant 0 : i32
    return %c0_i32, %c0_i32_0 : i32, i32
  }
  func.func @transform_11(%arg0: i32) -> (i32, i32) {
    %c0_i32 = arith.constant 0 : i32
    %c0_i32_0 = arith.constant 0 : i32
    %c0_i32_1 = arith.constant 0 : i32
    return %c0_i32, %c0_i32_0 : i32, i32
  }
  func.func @transform_12(%arg0: i32) -> (i32, i32) {
    %c0_i32 = arith.constant 0 : i32
    %c0_i32_0 = arith.constant 0 : i32
    return %arg0, %c0_i32 : i32, i32
  }
}

</mosaic_0001>

<bundles_post_ra>
// kernel: tpu_custom_call.1
= control target key start
LH: loop header
LB: loop body
LE: loop exit
PB: predicated region body
PF: predicated region fallthrough
CT: control target
= control target key end

     0   :  { %s8127_s0 = inlined_call_operand.vmem [shape: bf16[2048,32], index: 0, kind: input, shape index: {}]   ;;  %s8128_s1 = inlined_call_operand.vmem [shape: bf16[32,128], index: 1, kind: input, shape index: {}]   ;;  %s8129_s2 = inlined_call_operand.vmem [shape: f32[1,128], index: 2, kind: input, shape index: {}]   ;;  %s8130_s3 = inlined_call_operand.vmem [shape: bf16[128,128], index: 3, kind: input, shape index: {}]   ;;  %s8131_s4 = inlined_call_operand.vmem [shape: f32[1,128], index: 4, kind: input, shape index: {}]   ;;  %s8132_s5 = inlined_call_operand.vmem [shape: bf16[128,128], index: 5, kind: input, shape index: {}]   ;;  %s8133_s6 = inlined_call_operand.vmem [shape: bf16[32,128], index: 6, kind: input, shape index: {}]   ;;  %s8134_s7 = inlined_call_operand.vmem [shape: f32[1,128], index: 7, kind: input, shape index: {}]   ;;  %s8135_s8 = inlined_call_operand.vmem [shape: bf16[128,128], index: 8, kind: input, shape index: {}]   ;;  %s8136_s9 = inlined_call_operand.vmem [shape: f32[1,128], index: 9, kind: input, shape index: {}]   ;;  %s8137_s10 = inlined_call_operand.vmem [shape: bf16[128,128], index: 10, kind: input, shape index: {}]   ;;  %s8138_s11 = inlined_call_operand.vmem [shape: f32[1,128], index: 11, kind: input, shape index: {}]   ;;  %s8139_s12 = inlined_call_operand.hbm [shape: f32[2048,128], index: 12, kind: output, shape index: {}]  }
   0x1   :  { %8140 = sst [smem:[#allocation108_spill]] %s8127_s0 }
   0x2   :  { %17 = vsyncpa [#allocation3], 0 }
   0x3   :  { %19 = vsyncpa [#allocation3 + $0x1], 0  ;;  %s5804_s21 = smov 0   ;;  %s5806_s22 = smov 0  }
   0x4   :  { %s5808_s23 = smov 0   ;;  %s5810_s24 = smov 0  }
   0x5 LB: > { %s5825_s25 = sadd.s32 4294967295, %s5735_s24   ;;  %s4700_s26 = sadd.s32 4294967294, %s5735_s24   ;;  %s5735_s24 = sphi %s5810_s24, %s8353_s24   ;;  %s5731_s23 = sphi %s5808_s23, %s8352_s23   ;;  %s5727_s22 = sphi %s5806_s22, %s8351_s22   ;;  %s5723_s21 = sphi %s5804_s21, %s8350_s21  }
   0x6   : > { %s5829_s27 = sadd.s32 1, %s5735_s24   ;;  %s289_s28 = sadd.s32 1, %s5731_s23 }
   0x7   : > { %s286_s29 = ssub.s32 %s5735_s24, %s5829_s27  ;;  %p299_p0 = scmp.ne.s32.totalorder %s5731_s23, %s5727_s22 }
   0x8   : > { %p287_p1 = scmp.eq.s32.totalorder %s286_s29, 0  ;;  %p300_p2 = scmp.eq.s32.totalorder %s5825_s25, 1 }
   0x9   : > { %p305_p3 = scmp.ne.s32.totalorder %s5727_s22, %s5723_s21  ;;  %p306_p4 = scmp.eq.s32.totalorder %s4700_s26, 1 }
   0xa   : > { %s5840_s30 = scalar_select %p287_p1, %s5731_s23, %s289_s28  }
   0xb   : > { %p5842_p5 = por %p300_p2, %p299_p0  ;;  %p5846_p6 = por %p306_p4, %p305_p3 }
   0xc   : > { %8141 = sst [smem:[#allocation5_spill]] %s5840_s30  ;;  %p4703_p7 = scmp.ge.s32.totalorder %s5735_s24, 1 }
   0xd   : > { %p366_p8 = scmp.lt.s32.totalorder %s5735_s24, 3 }
   0xf   : > { %p367_p9 = pnand %p4703_p7, %p366_p8 }
  0x11   : > { %370 = sbr.rel (%p367_p9) target bundleno = 2116 (0x844), region = 68 }
  0x16   : > { %v5305_v0 = vld [vmem:[%s8128_s1 + $0x8] sm:$0xff]  ;;  %s4705_s17 = sshll.u32 %s5825_s25, 7  ;;  %v5304_v1 = vld [vmem:[%s8128_s1] sm:$0xff]  ;;  %v5313_v2 = vld [vmem:[%s8130_s3 + $0x38] sm:$0xff]  ;;  %s8144_s0 = sld [smem:[#allocation108_spill]]  ;;  %vm884_vm0 = vcmask 261120  }
  0x17   : > { %p409_p10 = scmp.lt.s32.totalorder %s4705_s17, 255  ;;  %5341 = vmatpush.bf16.msra.mxu1 %v5305_v0  ;;  %1083 = vmatpush.bf16.msra.mxu0 %v5305_v0  ;;  %v5312_v5 = vld [vmem:[%s8130_s3 + $0x30] sm:$0xff]  ;;  %v5323_v9 = vld [vmem:[%s8133_s6 + $0x8] sm:$0xff]  ;;  %v5322_v11 = vld [vmem:[%s8133_s6] sm:$0xff]  ;;  %s405_s29 = sand.u32 1, %s5727_s22  }
  0x18   : > { %5343 = vmatpush.bf16.msra.mxu3 %v5323_v9  ;;  %2226 = vmatpush.bf16.msra.mxu2 %v5323_v9  ;;  %v5311_v13 = vld [vmem:[%s8130_s3 + $0x28] sm:$0xff]  ;;  %v5321_v14 = vld [vmem:[%s8132_s5 + $0x38] sm:$0xff]  ;;  %v5908_v19 = vld [vmem:[%s8129_s2] ss:$0 sm:$0xff]  ;;  %s4704_s16 = sshll.u32 %s405_s29, 10  ;;  %s5340_s20 = sshll.u32 %s5825_s25, 10 }
  0x19   : > { %s8355_s17 = smov (!%p409_p10, %s4705_s17), 255  ;;  %v5310_v33 = vld [vmem:[%s8130_s3 + $0x20] sm:$0xff]  ;;  %v5320_v34 = vld [vmem:[%s8132_s5 + $0x30] sm:$0xff]  ;;  %s7133_s18 = scalar_lea.vmem [#allocation2], %s4704_s16 }
  0x1a   : > { %s4706_s28 = sshll.u32 %s8355_s17, 2  ;;  %s4634_s16 = scalar_lea.hbm %s8139_s12, %s5340_s20 }
  0x1b   : > { %5342 = vmatpush.bf16.msra.mxu1 %v5304_v1  ;;  %1084 = vmatpush.bf16.msra.mxu0 %v5304_v1  ;;  %s4635_s30 = sshll.u32 %s7133_s18, 4  ;;  %s4637_s17 = sshll.u32 %s4634_s16, 4  ;;  %s4636_s30 = int_to_ptr.vmem [resolvable:$true] %s4635_s30  ;;  %s4638_s17 = int_to_ptr.hbm [resolvable:$true] %s4637_s17 }
  0x1c   : > { %s5865_s15 = scalar_lea.vmem %s8144_s0, %s4706_s28  ;;  %5344 = vmatpush.bf16.msra.mxu3 %v5322_v11  ;;  %2227 = vmatpush.bf16.msra.mxu2 %v5322_v11  ;;  %v5994_v11 = vld [vmem:[%s8135_s8 + $0x38] sm:$0xff]  ;;  %s4623_s25 = scalar_lea.sflag [#allocation3], %s405_s29 }
  0x1d   : > { %v5273_v3 = vld [vmem:[%s5865_s15 + $0x108] sm:$0xff]  ;;  %v5274_v4 = vld [vmem:[%s5865_s15 + $0x110] sm:$0xff]  ;;  %v5275_v6 = vld [vmem:[%s5865_s15 + $0x118] sm:$0xff]  ;;  %s5687_s19 = sshra.s32 %s4638_s17, 4  ;;  %s5693_s28 = scalar_lea.hbm %s8139_s12, 2048  ;;  %s5688_s19 = int_to_ptr.hbm [resolvable:$true] %s5687_s19 }
  0x1e   : > { %5004 = vmatmul.msk.bf16.vlgmr.msra.gmra.mxu1 %vm884_vm0, %v5273_v3  ;;  %v5276_v7 = vld [vmem:[%s5865_s15 + $0x120] sm:$0xff]  ;;  %v5277_v8 = vld [vmem:[%s5865_s15 + $0x128] sm:$0xff]  ;;  %v5278_v10 = vld [vmem:[%s5865_s15 + $0x130] sm:$0xff]  ;;  %p5694_p0 = scmp.lt.s32.totalorder %s5688_s19, %s8139_s12 }
  0x1f   : > { %1666 = vmatpush.bf16.msrb.mxu1 %v5313_v2  ;;  %v5272_v12 = vld [vmem:[%s5865_s15 + $0x100] sm:$0xff]  ;;  %v5279_v15 = vld [vmem:[%s5865_s15 + $0x138] sm:$0xff]  ;;  %v5903_v17 = vld [vmem:[%s5865_s15 + $0x148] sm:$0xff]  ;;  %3317 = vmatpush.bf16.msrb.mxu0 %v5994_v11 }
  0x20   : > { %2597 = vmatpush.bf16.msrb.mxu3 %v5321_v14  ;;  %v5280_v16 = vld [vmem:[%s5865_s15 + $0x140] sm:$0xff]  ;;  %v5918_v26 = vld [vmem:[%s5865_s15 + $0x150] sm:$0xff]  ;;  %v5934_v36 = vld [vmem:[%s5865_s15 + $0x158] sm:$0xff] }
  0x21   : > { %5107 = vmatmul.msk.bf16.vlgmr.msra.gmra.mxu3 %vm884_vm0, %v5272_v12  ;;  %v5944_v44 = vld [vmem:[%s5865_s15 + $0x160] sm:$0xff]  ;;  %v5954_v52 = vld [vmem:[%s5865_s15 + $0x168] sm:$0xff]  ;;  %v5964_v60 = vld [vmem:[%s5865_s15 + $0x170] sm:$0xff] }
  0x22   : > { %v5240_v1 = vld [vmem:[%s5865_s15] sm:$0xff] }
  0x23   : > { %1667 = vmatpush.bf16.msrb.mxu1 %v5312_v5  ;;  %4971 = vmatmul.msk.bf16.vlgmr.msra.gmra.mxu0 %vm884_vm0, %v5240_v1  ;;  %v5309_v5 = vld [vmem:[%s8130_s3 + $0x18] sm:$0xff] }
  0x24   : > { %2598 = vmatpush.bf16.msrb.mxu3 %v5320_v34  ;;  %5075 = vmatmul.msk.bf16.vlgmr.msra.gmra.mxu2 %vm884_vm0, %v5240_v1  ;;  %v6027_v34 = vld [vmem:[%s5865_s15 + $0x188] sm:$0xff] }
  0x27   : > { %1668 = vmatpush.bf16.msrb.mxu1 %v5311_v13 }
  0x2b   : > { %1669 = vmatpush.bf16.msrb.mxu1 %v5310_v33 }
  0x2e   : > { %5005 = vmatmul.msk.bf16.gmra.mxu1 %vm884_vm0, %v5274_v4 }
  0x2f   : > { %1670 = vmatpush.bf16.msrb.mxu1 %v5309_v5 }
  0x31   : > { %5108 = vmatmul.msk.bf16.gmra.mxu3 %vm884_vm0, %v5273_v3 }
  0x3e   : > { %5006 = vmatmul.msk.bf16.gmra.mxu1 %vm884_vm0, %v5275_v6 }
  0x41   : > { %5109 = vmatmul.msk.bf16.gmra.mxu3 %vm884_vm0, %v5274_v4 }
  0x4e   : > { %5007 = vmatmul.msk.bf16.gmra.mxu1 %vm884_vm0, %v5276_v7 }
  0x51   : > { %5110 = vmatmul.msk.bf16.gmra.mxu3 %vm884_vm0, %v5275_v6  ;;  %v5319_v6 = vld [vmem:[%s8132_s5 + $0x28] sm:$0xff] }
  0x52   : > { %2599 = vmatpush.bf16.msrb.mxu3 %v5319_v6 }
  0x5e   : > { %5008 = vmatmul.msk.bf16.gmra.mxu1 %vm884_vm0, %v5277_v8 }
  0x61   : > { %5111 = vmatmul.msk.bf16.gmra.mxu3 %vm884_vm0, %v5276_v7 }
  0x6e   : > { %5009 = vmatmul.msk.bf16.gmra.mxu1 %vm884_vm0, %v5278_v10 }
  0x71   : > { %5112 = vmatmul.msk.bf16.gmra.mxu3 %vm884_vm0, %v5277_v8  ;;  %v5985_v8 = vld [vmem:[%s5865_s15 + $0x178] sm:$0xff] }
  0x7e   : > { %5010 = vmatmul.msk.bf16.gmra.mxu1 %vm884_vm0, %v5279_v15 }
  0x81   : > { %5113 = vmatmul.msk.bf16.gmra.mxu3 %vm884_vm0, %v5278_v10 }
  0x8e   : > { %5011 = vmatmul.msk.bf16.gmra.mxu1 %vm884_vm0, %v5280_v16 }
  0x91   : > { %5114 = vmatmul.msk.bf16.gmra.mxu3 %vm884_vm0, %v5279_v15  ;;  %v5241_v15 = vld [vmem:[%s5865_s15 + $0x8] sm:$0xff] }
  0x92   : > { %4972 = vmatmul.msk.bf16.gmra.mxu0 %vm884_vm0, %v5241_v15  ;;  %5076 = vmatmul.msk.bf16.gmra.mxu2 %vm884_vm0, %v5241_v15 }
  0x9b   : > { %v1251_v18 = vpop.f32.mrf.mxu1 }
  0x9c   : > { %v1252_v20 = vadd.f32 %v5908_v19, %v1251_v18 }
  0x9e   : > { %5012 = vmatmul.msk.bf16.gmra.mxu1 %vm884_vm0, %v5903_v17  ;;  %v1472_v23 = vmax.f32 %v1252_v20, 0.0 }
  0xa1   : > { %5115 = vmatmul.msk.bf16.gmra.mxu3 %vm884_vm0, %v5280_v16 }
  0xa3   : > { %v1253_v21 = vpop.f32.mrf.mxu1 }
  0xa4   : > { %v1254_v22 = vadd.f32 %v5908_v19, %v1253_v21  ;;  %v5972_v2 = vpop.f32.mrf.mxu3 }
  0xa5   : > { %8150 = vst [vmem:[#allocation11_spill] sm:$0xff] %v5972_v2 }
  0xa6   : > { %v1473_v24 = vmax.f32 %v1254_v22, 0.0  ;;  %v6009_v22 = vld [vmem:[%s5865_s15 + $0x180] sm:$0xff] }
  0xa8   : > { %v5915_v25 = vpack.c.bf16 %v1473_v24, %v1472_v23 }
  0xaa   : > { %8145 = vst [vmem:[#allocation6_spill] sm:$0xff] %v5915_v25 }
  0xab   : > { %v1256_v27 = vpop.f32.mrf.mxu1 }
  0xac   : > { %v1257_v28 = vadd.f32 %v5908_v19, %v1256_v27  ;;  %v5987_v10 = vpop.f32.mrf.mxu3 }
  0xad   : > { %8152 = vst [vmem:[#allocation13_spill] sm:$0xff] %v5987_v10 }
  0xae   : > { %5013 = vmatmul.msk.bf16.gmra.mxu1 %vm884_vm0, %v5918_v26  ;;  %v1474_v31 = vmax.f32 %v1257_v28, 0.0 }
  0xb1   : > { %5116 = vmatmul.msk.bf16.gmra.mxu3 %vm884_vm0, %v5903_v17 }
  0xb3   : > { %v1258_v29 = vpop.f32.mrf.mxu1 }
  0xb4   : > { %v1259_v30 = vadd.f32 %v5908_v19, %v1258_v29  ;;  %v6002_v16 = vpop.f32.mrf.mxu3  ;;  %v5242_v29 = vld [vmem:[%s5865_s15 + $0x10] sm:$0xff] }
  0xb5   : > { %8153 = vst [vmem:[#allocation14_spill] sm:$0xff] %v6002_v16  ;;  %4973 = vmatmul.msk.bf16.gmra.mxu0 %vm884_vm0, %v5242_v29  ;;  %5077 = vmatmul.msk.bf16.gmra.mxu2 %vm884_vm0, %v5242_v29 }
  0xb6   : > { %v1475_v32 = vmax.f32 %v1259_v30, 0.0 }
  0xb8   : > { %v5931_v35 = vpack.c.bf16 %v1475_v32, %v1474_v31 }
  0xba   : > { %8146 = vst [vmem:[#allocation7_spill] sm:$0xff] %v5931_v35 }
  0xbb   : > { %v1261_v37 = vpop.f32.mrf.mxu1 }
  0xbc   : > { %v1262_v38 = vadd.f32 %v5908_v19, %v1261_v37  ;;  %v6011_v17 = vpop.f32.mrf.mxu3 }
  0xbd   : > { %8155 = vst [vmem:[#allocation16_spill] sm:$0xff] %v6011_v17 }
  0xbe   : > { %5014 = vmatmul.msk.bf16.gmra.mxu1 %vm884_vm0, %v5934_v36  ;;  %v1476_v41 = vmax.f32 %v1262_v38, 0.0 }
  0xc1   : > { %5117 = vmatmul.msk.bf16.gmra.mxu3 %vm884_vm0, %v5918_v26 }
  0xc3   : > { %v1263_v39 = vpop.f32.mrf.mxu1 }
  0xc4   : > { %v1264_v40 = vadd.f32 %v5908_v19, %v1263_v39  ;;  %v6020_v30 = vpop.f32.mrf.mxu3 }
  0xc5   : > { %8156 = vst [vmem:[#allocation17_spill] sm:$0xff] %v6020_v30 }
  0xc6   : > { %v1477_v42 = vmax.f32 %v1264_v40, 0.0 }
  0xc8   : > { %v5941_v43 = vpack.c.bf16 %v1477_v42, %v1476_v41  ;;  %v5243_v41 = vld [vmem:[%s5865_s15 + $0x18] sm:$0xff] }
  0xc9   : > { %4974 = vmatmul.msk.bf16.gmra.mxu0 %vm884_vm0, %v5243_v41  ;;  %5078 = vmatmul.msk.bf16.gmra.mxu2 %vm884_vm0, %v5243_v41 }
  0xca   : > { %8147 = vst [vmem:[#allocation8_spill] sm:$0xff] %v5941_v43 }
  0xcb   : > { %v1266_v45 = vpop.f32.mrf.mxu1 }
  0xcc   : > { %v1267_v46 = vadd.f32 %v5908_v19, %v1266_v45  ;;  %v6029_v26 = vpop.f32.mrf.mxu3 }
  0xcd   : > { %8158 = vst [vmem:[#allocation19_spill] sm:$0xff] %v6029_v26 }
  0xce   : > { %5015 = vmatmul.msk.bf16.gmra.mxu1 %vm884_vm0, %v5944_v44  ;;  %v1478_v49 = vmax.f32 %v1267_v46, 0.0 }
  0xd1   : > { %5118 = vmatmul.msk.bf16.gmra.mxu3 %vm884_vm0, %v5934_v36 }
  0xd3   : > { %v1268_v47 = vpop.f32.mrf.mxu1 }
  0xd4   : > { %v1269_v48 = vadd.f32 %v5908_v19, %v1268_v47  ;;  %v6038_v42 = vpop.f32.mrf.mxu3 }
  0xd5   : > { %8159 = vst [vmem:[#allocation20_spill] sm:$0xff] %v6038_v42 }
  0xd6   : > { %v1479_v50 = vmax.f32 %v1269_v48, 0.0  ;;  %v6045_v48 = vld [vmem:[%s5865_s15 + $0x190] sm:$0xff] }
  0xd8   : > { %v5951_v51 = vpack.c.bf16 %v1479_v50, %v1478_v49 }
  0xda   : > { %8148 = vst [vmem:[#allocation9_spill] sm:$0xff] %v5951_v51 }
  0xdb   : > { %v1271_v53 = vpop.f32.mrf.mxu1 }
  0xdc   : > { %v1272_v54 = vadd.f32 %v5908_v19, %v1271_v53  ;;  %v6047_v50 = vpop.f32.mrf.mxu3 }
  0xdd   : > { %8161 = vst [vmem:[#allocation22_spill] sm:$0xff] %v6047_v50 }
  0xde   : > { %5016 = vmatmul.msk.bf16.gmra.mxu1 %vm884_vm0, %v5954_v52  ;;  %v1480_v57 = vmax.f32 %v1272_v54, 0.0 }
  0xe1   : > { %5119 = vmatmul.msk.bf16.gmra.mxu3 %vm884_vm0, %v5944_v44 }
  0xe3   : > { %v1273_v55 = vpop.f32.mrf.mxu1 }
  0xe4   : > { %v1274_v56 = vadd.f32 %v5908_v19, %v1273_v55  ;;  %v5244_v55 = vld [vmem:[%s5865_s15 + $0x20] sm:$0xff] }
  0xe5   : > { %4975 = vmatmul.msk.bf16.gmra.mxu0 %vm884_vm0, %v5244_v55  ;;  %5079 = vmatmul.msk.bf16.gmra.mxu2 %vm884_vm0, %v5244_v55  ;;  %v6129_v55 = vld [vmem:[%s5865_s15 + $0x1b0] sm:$0xff] }
  0xe6   : > { %v1481_v58 = vmax.f32 %v1274_v56, 0.0  ;;  %v6056_v56 = vpop.f32.mrf.mxu3 }
  0xe7   : > { %8162 = vst [vmem:[#allocation23_spill] sm:$0xff] %v6056_v56 }
  0xe8   : > { %v5961_v59 = vpack.c.bf16 %v1481_v58, %v1480_v57 }
  0xea   : > { %8149 = vst [vmem:[#allocation10_spill] sm:$0xff] %v5961_v59 }
  0xeb   : > { %v1276_v61 = vpop.f32.mrf.mxu1 }
  0xec   : > { %v1277_v62 = vadd.f32 %v5908_v19, %v1276_v61  ;;  %v5308_v61 = vld [vmem:[%s8130_s3 + $0x10] sm:$0xff] }
  0xed   : > { %1671 = vmatpush.bf16.msrb.mxu1 %v5308_v61 }
  0xee   : > { %5017 = vmatmul.msk.bf16.gmra.mxu1 %vm884_vm0, %v5964_v60  ;;  %v1482_v3 = vmax.f32 %v1277_v62, 0.0  ;;  %v5318_v62 = vld [vmem:[%s8132_s5 + $0x20] sm:$0xff]  ;;  %v6071_v1 = vpop.f32.mrf.mxu3 }
  0xef   : > { %2600 = vmatpush.bf16.msrb.mxu3 %v5318_v62  ;;  %8164 = vst [vmem:[#allocation25_spill] sm:$0xff] %v6071_v1 }
  0xf1   : > { %5120 = vmatmul.msk.bf16.gmra.mxu3 %vm884_vm0, %v5954_v52 }
  0xf3   : > { %v1278_v63 = vpop.f32.mrf.mxu1 }
  0xf4   : > { %v1279_v0 = vadd.f32 %v5908_v19, %v1278_v63  ;;  %v6069_v63 = vld [vmem:[%s5865_s15 + $0x198] sm:$0xff] }
  0xf6   : > { %v1483_v4 = vmax.f32 %v1279_v0, 0.0 }
  0xf8   : > { %v5982_v7 = vpack.c.bf16 %v1483_v4, %v1482_v3  ;;  %v6078_v3 = vld [vmem:[%s8135_s8 + $0x30] sm:$0xff] }
  0xf9   : > { %3318 = vmatpush.bf16.msrb.mxu0 %v6078_v3 }
  0xfa   : > { %8151 = vst [vmem:[#allocation12_spill] sm:$0xff] %v5982_v7 }
  0xfb   : > { %v1281_v9 = vpop.f32.mrf.mxu1 }
  0xfc   : > { %v1282_v12 = vadd.f32 %v5908_v19, %v1281_v9  ;;  %v5245_v9 = vld [vmem:[%s5865_s15 + $0x28] sm:$0xff] }
  0xfd   : > { %4976 = vmatmul.msk.bf16.gmra.mxu0 %vm884_vm0, %v5245_v9  ;;  %5080 = vmatmul.msk.bf16.gmra.mxu2 %vm884_vm0, %v5245_v9 }
  0xfe   : > { %5018 = vmatmul.msk.bf16.gmra.mxu1 %vm884_vm0, %v5985_v8  ;;  %v1484_v18 = vmax.f32 %v1282_v12, 0.0  ;;  %v6086_v12 = vpop.f32.mrf.mxu3 }
  0xff   : > { %8165 = vst [vmem:[#allocation26_spill] sm:$0xff] %v6086_v12 }
 0x101   : > { %5121 = vmatmul.msk.bf16.gmra.mxu3 %vm884_vm0, %v5964_v60 }
 0x103   : > { %v1283_v13 = vpop.f32.mrf.mxu1 }
 0x104   : > { %v1284_v14 = vadd.f32 %v5908_v19, %v1283_v13 }
 0x106   : > { %v1485_v20 = vmax.f32 %v1284_v14, 0.0  ;;  %v6095_v52 = vpop.f32.mrf.mxu3 }
 0x107   : > { %8167 = vst [vmem:[#allocation28_spill] sm:$0xff] %v6095_v52 }
 0x108   : > { %v6006_v21 = vpack.c.bf16 %v1485_v20, %v1484_v18  ;;  %v6093_v18 = vld [vmem:[%s5865_s15 + $0x1a0] sm:$0xff] }
 0x10a   : > { %8154 = vst [vmem:[#allocation15_spill] sm:$0xff] %v6006_v21 }
 0x10b   : > { %v1286_v23 = vpop.f32.mrf.mxu1 }
 0x10c   : > { %v1287_v24 = vadd.f32 %v5908_v19, %v1286_v23 }
 0x10e   : > { %5019 = vmatmul.msk.bf16.gmra.mxu1 %vm884_vm0, %v6009_v22  ;;  %v1486_v31 = vmax.f32 %v1287_v24, 0.0  ;;  %v6104_v29 = vpop.f32.mrf.mxu3 }
 0x10f   : > { %8168 = vst [vmem:[#allocation29_spill] sm:$0xff] %v6104_v29 }
 0x111   : > { %5122 = vmatmul.msk.bf16.gmra.mxu3 %vm884_vm0, %v5985_v8  ;;  %v5307_v8 = vld [vmem:[%s8130_s3 + $0x8] sm:$0xff] }
 0x112   : > { %1672 = vmatpush.bf16.msrb.mxu1 %v5307_v8 }
 0x113   : > { %v1288_v27 = vpop.f32.mrf.mxu1 }
 0x114   : > { %v1289_v28 = vadd.f32 %v5908_v19, %v1288_v27 }
 0x116   : > { %v1487_v32 = vmax.f32 %v1289_v28, 0.0  ;;  %v5246_v28 = vld [vmem:[%s5865_s15 + $0x30] sm:$0xff]  ;;  %v6113_v60 = vpop.f32.mrf.mxu3 }
 0x117   : > { %4977 = vmatmul.msk.bf16.gmra.mxu0 %vm884_vm0, %v5246_v28  ;;  %5081 = vmatmul.msk.bf16.gmra.mxu2 %vm884_vm0, %v5246_v28  ;;  %8170 = vst [vmem:[#allocation31_spill] sm:$0xff] %v6113_v60 }
 0x118   : > { %v6024_v33 = vpack.c.bf16 %v1487_v32, %v1486_v31 }
 0x11a   : > { %8157 = vst [vmem:[#allocation18_spill] sm:$0xff] %v6024_v33 }
 0x11b   : > { %v1291_v37 = vpop.f32.mrf.mxu1 }
 0x11c   : > { %v1292_v38 = vadd.f32 %v5908_v19, %v1291_v37 }
 0x11e   : > { %5020 = vmatmul.msk.bf16.gmra.mxu1 %vm884_vm0, %v6027_v34  ;;  %v1488_v45 = vmax.f32 %v1292_v38, 0.0  ;;  %v6111_v38 = vld [vmem:[%s5865_s15 + $0x1a8] sm:$0xff] }
 0x121   : > { %5123 = vmatmul.msk.bf16.gmra.mxu3 %vm884_vm0, %v6009_v22 }
 0x123   : > { %v1293_v39 = vpop.f32.mrf.mxu1 }
 0x124   : > { %v1294_v40 = vadd.f32 %v5908_v19, %v1293_v39 }
 0x126   : > { %v1489_v46 = vmax.f32 %v1294_v40, 0.0 }
 0x128   : > { %v6042_v47 = vpack.c.bf16 %v1489_v46, %v1488_v45  ;;  %v5247_v46 = vld [vmem:[%s5865_s15 + $0x38] sm:$0xff] }
 0x129   : > { %4978 = vmatmul.msk.bf16.gmra.mxu0 %vm884_vm0, %v5247_v46  ;;  %5082 = vmatmul.msk.bf16.gmra.mxu2 %vm884_vm0, %v5247_v46 }
 0x12a   : > { %8160 = vst [vmem:[#allocation21_spill] sm:$0xff] %v6042_v47 }
 0x12b   : > { %v1296_v49 = vpop.f32.mrf.mxu1 }
 0x12c   : > { %v1297_v36 = vadd.f32 %v5908_v19, %v1296_v49  ;;  %v6122_v49 = vpop.f32.mrf.mxu3 }
 0x12d   : > { %8171 = vst [vmem:[#allocation32_spill] sm:$0xff] %v6122_v49 }
 0x12e   : > { %5021 = vmatmul.msk.bf16.gmra.mxu1 %vm884_vm0, %v6045_v48  ;;  %v1490_v57 = vmax.f32 %v1297_v36, 0.0 }
 0x131   : > { %5124 = vmatmul.msk.bf16.gmra.mxu3 %vm884_vm0, %v6027_v34 }
 0x133   : > { %v1298_v53 = vpop.f32.mrf.mxu1 }
 0x134   : > { %v1299_v54 = vadd.f32 %v5908_v19, %v1298_v53 }
 0x136   : > { %v1491_v58 = vmax.f32 %v1299_v54, 0.0 }
 0x138   : > { %v6066_v44 = vpack.c.bf16 %v1491_v58, %v1490_v57  ;;  %v6131_v58 = vpop.f32.mrf.mxu3 }
 0x139   : > { %8173 = vst [vmem:[#allocation34_spill] sm:$0xff] %v6131_v58 }
 0x13a   : > { %8163 = vst [vmem:[#allocation24_spill] sm:$0xff] %v6066_v44 }
 0x13b   : > { %v1301_v0 = vpop.f32.mrf.mxu1 }
 0x13c   : > { %v1302_v4 = vadd.f32 %v5908_v19, %v1301_v0  ;;  %v1086_v0 = vpop.f32.mrf.mxu0 }
 0x13e   : > { %5022 = vmatmul.msk.bf16.gmra.mxu1 %vm884_vm0, %v6069_v63  ;;  %v1492_v13 = vmax.f32 %v1302_v4, 0.0 }
 0x141   : > { %5125 = vmatmul.msk.bf16.gmra.mxu3 %vm884_vm0, %v6045_v48 }
 0x143   : > { %v1303_v5 = vpop.f32.mrf.mxu1 }
 0x144   : > { %v1304_v6 = vadd.f32 %v5908_v19, %v1303_v5  ;;  %v5248_v5 = vld [vmem:[%s5865_s15 + $0x40] sm:$0xff] }
 0x145   : > { %4979 = vmatmul.msk.bf16.gmra.mxu0 %vm884_vm0, %v5248_v5  ;;  %5083 = vmatmul.msk.bf16.gmra.mxu2 %vm884_vm0, %v5248_v5  ;;  %v6182_v5 = vld [vmem:[%s5865_s15 + $0x1c0] sm:$0xff] }
 0x146   : > { %v1493_v14 = vmax.f32 %v1304_v6, 0.0  ;;  %v6143_v6 = vpop.f32.mrf.mxu3 }
 0x147   : > { %8174 = vst [vmem:[#allocation35_spill] sm:$0xff] %v6143_v6 }
 0x148   : > { %v6090_v15 = vpack.c.bf16 %v1493_v14, %v1492_v13  ;;  %v5317_v14 = vld [vmem:[%s8132_s5 + $0x18] sm:$0xff] }
 0x149   : > { %2601 = vmatpush.bf16.msrb.mxu3 %v5317_v14 }
 0x14a   : > { %8166 = vst [vmem:[#allocation27_spill] sm:$0xff] %v6090_v15 }
 0x14b   : > { %v1306_v20 = vpop.f32.mrf.mxu1 }
 0x14c   : > { %v1307_v23 = vadd.f32 %v5908_v19, %v1306_v20  ;;  %v1087_v20 = vadd.f32 %v5908_v19, %v1086_v0 }
 0x14e   : > { %5023 = vmatmul.msk.bf16.gmra.mxu1 %vm884_vm0, %v6093_v18  ;;  %v1494_v31 = vmax.f32 %v1307_v23, 0.0  ;;  %v6154_v23 = vld [vmem:[%s5865_s15 + $0x1b8] sm:$0xff]  ;;  %v1406_v28 = vmax.f32 %v1087_v20, 0.0 }
 0x151   : > { %5126 = vmatmul.msk.bf16.gmra.mxu3 %vm884_vm0, %v6069_v63 }
 0x153   : > { %v1308_v24 = vpop.f32.mrf.mxu1 }
 0x154   : > { %v1309_v27 = vadd.f32 %v5908_v19, %v1308_v24 }
 0x156   : > { %v1495_v32 = vmax.f32 %v1309_v27, 0.0  ;;  %v1088_v27 = vpop.f32.mrf.mxu0 }
 0x158   : > { %v6108_v37 = vpack.c.bf16 %v1495_v32, %v1494_v31  ;;  %v1089_v31 = vadd.f32 %v5908_v19, %v1088_v27  ;;  %v6157_v32 = vpop.f32.mrf.mxu3 }
 0x159   : > { %8176 = vst [vmem:[#allocation37_spill] sm:$0xff] %v6157_v32 }
 0x15a   : > { %8169 = vst [vmem:[#allocation30_spill] sm:$0xff] %v6108_v37 }
 0x15b   : > { %v1311_v39 = vpop.f32.mrf.mxu1 }
 0x15c   : > { %v1312_v40 = vadd.f32 %v5908_v19, %v1311_v39  ;;  %v1407_v39 = vmax.f32 %v1089_v31, 0.0 }
 0x15e   : > { %5024 = vmatmul.msk.bf16.gmra.mxu1 %vm884_vm0, %v6111_v38  ;;  %v1496_v36 = vmax.f32 %v1312_v40, 0.0  ;;  %v6164_v40 = vld [vmem:[%s8135_s8 + $0x28] sm:$0xff] }
 0x15f   : > { %3319 = vmatpush.bf16.msrb.mxu0 %v6164_v40 }
 0x160   : > { %v6174_v8 = vpop.f32.mrf.mxu3 }
 0x161   : > { %8177 = vst [vmem:[#allocation38_spill] sm:$0xff] %v6174_v8  ;;  %5127 = vmatmul.msk.bf16.gmra.mxu3 %vm884_vm0, %v6093_v18  ;;  %v6303_v8 = vld [vmem:[%s5865_s15 + $0x70] sm:$0xff] }
 0x163   : > { %v1313_v41 = vpop.f32.mrf.mxu1 }
 0x164   : > { %v1314_v45 = vadd.f32 %v5908_v19, %v1313_v41  ;;  %v6166_v41 = vpack.c.bf16 %v1407_v39, %v1406_v28 }
 0x166   : > { %v1497_v53 = vmax.f32 %v1314_v45, 0.0 }
 0x168   : > { %v6126_v54 = vpack.c.bf16 %v1497_v53, %v1496_v36  ;;  %v1091_v36 = vpop.f32.mrf.mxu0  ;;  %v6185_v20 = vpop.f32.mrf.mxu3 }
 0x169   : > { %v1092_v0 = vadd.f32 %v5908_v19, %v1091_v36  ;;  %8179 = vst [vmem:[#allocation40_spill] sm:$0xff] %v6185_v20 }
 0x16a   : > { %8172 = vst [vmem:[#allocation33_spill] sm:$0xff] %v6126_v54 }
 0x16b   : > { %v1316_v57 = vpop.f32.mrf.mxu1 }
 0x16c   : > { %v1317_v61 = vadd.f32 %v5908_v19, %v1316_v57  ;;  %v5249_v57 = vld [vmem:[%s5865_s15 + $0x48] sm:$0xff] }
 0x16d   : > { %4980 = vmatmul.msk.bf16.gmra.mxu0 %vm884_vm0, %v5249_v57  ;;  %5084 = vmatmul.msk.bf16.gmra.mxu2 %vm884_vm0, %v5249_v57 }
 0x16e   : > { %5025 = vmatmul.msk.bf16.gmra.mxu1 %vm884_vm0, %v6129_v55  ;;  %v1498_v9 = vmax.f32 %v1317_v61, 0.0 }
 0x170   : > { %v6196_v36 = vpop.f32.mrf.mxu3 }
 0x171   : > { %8180 = vst [vmem:[#allocation41_spill] sm:$0xff] %v6196_v36  ;;  %5128 = vmatmul.msk.bf16.gmra.mxu3 %vm884_vm0, %v6111_v38 }
 0x173   : > { %v1318_v62 = vpop.f32.mrf.mxu1 }
 0x174   : > { %v1319_v4 = vadd.f32 %v5908_v19, %v1318_v62 }
 0x176   : > { %v1499_v13 = vmax.f32 %v1319_v4, 0.0 }
 0x178   : > { %v6151_v22 = vpack.c.bf16 %v1499_v13, %v1498_v9  ;;  %v1093_v9 = vpop.f32.mrf.mxu0  ;;  %v1408_v13 = vmax.f32 %v1092_v0, 0.0  ;;  %v6207_v0 = vld [vmem:[%s5865_s15 + $0x1c8] sm:$0xff] }
 0x179   : > { %v1094_v14 = vadd.f32 %v5908_v19, %v1093_v9 }
 0x17a   : > { %8175 = vst [vmem:[#allocation36_spill] sm:$0xff] %v6151_v22 }
 0x17b   : > { %v1321_v24 = vpop.f32.mrf.mxu1 }
 0x17c   : > { %v1322_v45 = vadd.f32 %v5908_v19, %v1321_v24  ;;  %v1409_v24 = vmax.f32 %v1094_v14, 0.0 }
 0x17e   : > { %5026 = vmatmul.msk.bf16.gmra.mxu1 %vm884_vm0, %v6154_v23  ;;  %v1500_v61 = vmax.f32 %v1322_v45, 0.0  ;;  %v6189_v27 = vpack.c.bf16 %v1409_v24, %v1408_v13  ;;  %v6210_v24 = vpop.f32.mrf.mxu3 }
 0x17f   : > { %8182 = vst [vmem:[#allocation43_spill] sm:$0xff] %v6210_v24 }
 0x180   : > { %v1096_v39 = vpop.f32.mrf.mxu0 }
 0x181   : > { %5129 = vmatmul.msk.bf16.gmra.mxu3 %vm884_vm0, %v6129_v55 }
 0x183   : > { %v1323_v46 = vpop.f32.mrf.mxu1 }
 0x184   : > { %v1324_v53 = vadd.f32 %v5908_v19, %v1323_v46  ;;  %v5250_v46 = vld [vmem:[%s5865_s15 + $0x50] sm:$0xff] }
 0x185   : > { %4981 = vmatmul.msk.bf16.gmra.mxu0 %vm884_vm0, %v5250_v46  ;;  %5085 = vmatmul.msk.bf16.gmra.mxu2 %vm884_vm0, %v5250_v46 }
 0x186   : > { %v1501_v62 = vmax.f32 %v1324_v53, 0.0 }
 0x188   : > { %v6179_v4 = vpack.c.bf16 %v1501_v62, %v1500_v61  ;;  %v5339_v61 = vld [vmem:[%s8137_s10 + $0x38] sm:$0xff]  ;;  %v1097_v62 = vadd.f32 %v5908_v19, %v1096_v39  ;;  %v1098_v9 = vpop.f32.mrf.mxu0 }
 0x189   : > { %3906 = vmatpush.bf16.msrb.mxu2 %v5339_v61  ;;  %v1099_v14 = vadd.f32 %v5908_v19, %v1098_v9  ;;  %v6221_v61 = vpop.f32.mrf.mxu3 }
 0x18a   : > { %8178 = vst [vmem:[#allocation39_spill] sm:$0xff] %v6179_v4  ;;  %v1410_v13 = vmax.f32 %v1097_v62, 0.0 }
 0x18b   : > { %v1326_v34 = vpop.f32.mrf.mxu1  ;;  %8183 = vst [vmem:[#allocation44_spill] sm:$0xff] %v6221_v61 }
 0x18c   : > { %v1327_v28 = vadd.f32 %v5908_v19, %v1326_v34 }
 0x18e   : > { %5027 = vmatmul.msk.bf16.gmra.mxu1 %vm884_vm0, %v6182_v5  ;;  %v1502_v53 = vmax.f32 %v1327_v28, 0.0  ;;  %v1411_v28 = vmax.f32 %v1099_v14, 0.0 }
 0x190   : > { %v1101_v46 = vpop.f32.mrf.mxu0 }
 0x191   : > { %v6232_v36 = vpop.f32.mrf.mxu3  ;;  %5130 = vmatmul.msk.bf16.gmra.mxu3 %vm884_vm0, %v6154_v23 }
 0x192   : > { %8185 = vst [vmem:[#allocation46_spill] sm:$0xff] %v6232_v36 }
 0x193   : > { %v1328_v31 = vpop.f32.mrf.mxu1 }
 0x194   : > { %v1329_v45 = vadd.f32 %v5908_v19, %v1328_v31  ;;  %v6214_v31 = vpack.c.bf16 %v1411_v28, %v1410_v13  ;;  %v1102_v13 = vadd.f32 %v5908_v19, %v1101_v46  ;;  %v5306_v46 = vld [vmem:[%s8130_s3] sm:$0xff] }
 0x195   : > { %1673 = vmatpush.bf16.msrb.mxu1 %v5306_v46  ;;  %v6262_v46 = vld [vmem:[%s5865_s15 + $0x1d8] sm:$0xff] }
 0x196   : > { %v1503_v57 = vmax.f32 %v1329_v45, 0.0  ;;  %v1412_v24 = vmax.f32 %v1102_v13, 0.0 }
 0x198   : > { %v6204_v48 = vpack.c.bf16 %v1503_v57, %v1502_v53  ;;  %v5251_v57 = vld [vmem:[%s5865_s15 + $0x58] sm:$0xff]  ;;  %v1103_v28 = vpop.f32.mrf.mxu0 }
 0x199   : > { %4982 = vmatmul.msk.bf16.gmra.mxu0 %vm884_vm0, %v5251_v57  ;;  %5086 = vmatmul.msk.bf16.gmra.mxu2 %vm884_vm0, %v5251_v57 }
 0x19a   : > { %8181 = vst [vmem:[#allocation42_spill] sm:$0xff] %v6204_v48  ;;  %5345 = vmatpush.bf16.msra.mxu1 %v5994_v11  ;;  %v5316_v11 = vld [vmem:[%s8132_s5 + $0x10] sm:$0xff] }
 0x19b   : > { %v1331_v34 = vpop.f32.mrf.mxu1  ;;  %2602 = vmatpush.bf16.msrb.mxu3 %v5316_v11 }
 0x19c   : > { %v1332_v39 = vadd.f32 %v5908_v19, %v1331_v34  ;;  %v6229_v34 = vld [vmem:[%s5865_s15 + $0x1d0] sm:$0xff] }
 0x19e   : > { %5028 = vmatmul.msk.bf16.gmra.mxu1 %vm884_vm0, %v6207_v0  ;;  %v1504_v62 = vmax.f32 %v1332_v39, 0.0 }
 0x19f   : > { %5346 = vmatpush.bf16.msra.mxu1 %v6078_v3 }
 0x1a3   : > { %v1333_v45 = vpop.f32.mrf.mxu1  ;;  %5347 = vmatpush.bf16.msra.mxu1 %v6164_v40 }
 0x1a4   : > { %v1334_v53 = vadd.f32 %v5908_v19, %v1333_v45  ;;  %v1104_v45 = vadd.f32 %v5908_v19, %v1103_v28  ;;  %v6247_v28 = vld [vmem:[%s5865_s15 + $0x60] sm:$0xff] }
 0x1a6   : > { %v1505_v9 = vmax.f32 %v1334_v53, 0.0  ;;  %v1413_v39 = vmax.f32 %v1104_v45, 0.0  ;;  %v6249_v45 = vpop.f32.mrf.mxu3 }
 0x1a7   : > { %8186 = vst [vmem:[#allocation47_spill] sm:$0xff] %v6249_v45 }
 0x1a8   : > { %v6226_v14 = vpack.c.bf16 %v1505_v9, %v1504_v62  ;;  %v6239_v53 = vpack.c.bf16 %v1413_v39, %v1412_v24  ;;  %v1106_v9 = vpop.f32.mrf.mxu0 }
 0x1a9   : > { %4983 = vmatmul.msk.bf16.gmra.mxu0 %vm884_vm0, %v6247_v28  ;;  %v1107_v18 = vadd.f32 %v5908_v19, %v1106_v9 }
 0x1aa   : > { %8184 = vst [vmem:[#allocation45_spill] sm:$0xff] %v6226_v14 }
 0x1ab   : > { %v1336_v63 = vpop.f32.mrf.mxu1 }
 0x1ac   : > { %v1337_v57 = vadd.f32 %v5908_v19, %v1336_v63 }
 0x1ae   : > { %5029 = vmatmul.msk.bf16.gmra.mxu1 %vm884_vm0, %v6229_v34  ;;  %v1506_v24 = vmax.f32 %v1337_v57, 0.0  ;;  %v6265_v45 = vpop.f32.mrf.mxu3  ;;  %5131 = vmatmul.msk.bf16.gmra.mxu3 %vm884_vm0, %v6182_v5 }
 0x1af   : > { %8188 = vst [vmem:[#allocation49_spill] sm:$0xff] %v6265_v45 }
 0x1b0   : > { %v1108_v57 = vpop.f32.mrf.mxu0 }
 0x1b3   : > { %v1338_v62 = vpop.f32.mrf.mxu1 }
 0x1b4   : > { %v1339_v13 = vadd.f32 %v5908_v19, %v1338_v62  ;;  %v1414_v62 = vmax.f32 %v1107_v18, 0.0  ;;  %v6276_v18 = vld [vmem:[%s5865_s15 + $0x68] sm:$0xff] }
 0x1b6   : > { %v1507_v39 = vmax.f32 %v1339_v13, 0.0  ;;  %v1109_v13 = vadd.f32 %v5908_v19, %v1108_v57  ;;  %v6278_v57 = vpop.f32.mrf.mxu3 }
 0x1b7   : > { %8189 = vst [vmem:[#allocation50_spill] sm:$0xff] %v6278_v57 }
 0x1b8   : > { %v6258_v63 = vpack.c.bf16 %v1507_v39, %v1506_v24  ;;  %v1415_v36 = vmax.f32 %v1109_v13, 0.0  ;;  %v1111_v39 = vpop.f32.mrf.mxu0 }
 0x1b9   : > { %4984 = vmatmul.msk.bf16.gmra.mxu0 %vm884_vm0, %v6276_v18 }
 0x1ba   : > { %8187 = vst [vmem:[#allocation48_spill] sm:$0xff] %v6258_v63  ;;  %v6269_v9 = vpack.c.bf16 %v1415_v36, %v1414_v62  ;;  %v5328_v36 = vld [vmem:[%s8135_s8 + $0x20] sm:$0xff] }
 0x1bb   : > { %v1341_v3 = vpop.f32.mrf.mxu1  ;;  %3320 = vmatpush.bf16.msrb.mxu0 %v5328_v36  ;;  %5348 = vmatpush.bf16.msra.mxu1 %v5328_v36  ;;  %v6289_v62 = vld [vmem:[%s5865_s15 + $0x1e0] sm:$0xff] }
 0x1bc   : > { %v1342_v24 = vadd.f32 %v5908_v19, %v1341_v3  ;;  %v1112_v3 = vadd.f32 %v5908_v19, %v1111_v39 }
 0x1be   : > { %5030 = vmatmul.msk.bf16.gmra.mxu1 %vm884_vm0, %v6262_v46  ;;  %v1508_v45 = vmax.f32 %v1342_v24, 0.0  ;;  %v1416_v24 = vmax.f32 %v1112_v3, 0.0  ;;  %v6292_v57 = vpop.f32.mrf.mxu3  ;;  %5132 = vmatmul.msk.bf16.gmra.mxu3 %vm884_vm0, %v6207_v0 }
 0x1bf   : > { %8191 = vst [vmem:[#allocation52_spill] sm:$0xff] %v6292_v57 }
 0x1c3   : > { %v1343_v40 = vpop.f32.mrf.mxu1 }
 0x1c4   : > { %v1344_v11 = vadd.f32 %v5908_v19, %v1343_v40  ;;  %v1113_v40 = vpop.f32.mrf.mxu0 }
 0x1c6   : > { %v1509_v61 = vmax.f32 %v1344_v11, 0.0  ;;  %v1114_v11 = vadd.f32 %v5908_v19, %v1113_v40  ;;  %v6305_v40 = vpop.f32.mrf.mxu3 }
 0x1c7   : > { %8192 = vst [vmem:[#allocation53_spill] sm:$0xff] %v6305_v40 }
 0x1c8   : > { %v6286_v38 = vpack.c.bf16 %v1509_v61, %v1508_v45  ;;  %v1417_v20 = vmax.f32 %v1114_v11, 0.0 }
 0x1c9   : > { %4985 = vmatmul.msk.bf16.gmra.mxu0 %vm884_vm0, %v6303_v8 }
 0x1ca   : > { %8190 = vst [vmem:[#allocation51_spill] sm:$0xff] %v6286_v38  ;;  %v6296_v39 = vpack.c.bf16 %v1417_v20, %v1416_v24  ;;  %v5338_v20 = vld [vmem:[%s8137_s10 + $0x30] sm:$0xff]  ;;  %v6316_v24 = vld [vmem:[%s5865_s15 + $0x1e8] sm:$0xff] }
 0x1cb   : > { %v1346_v13 = vpop.f32.mrf.mxu1  ;;  %3907 = vmatpush.bf16.msrb.mxu2 %v5338_v20 }
 0x1cc   : > { %v1347_v36 = vadd.f32 %v5908_v19, %v1346_v13  ;;  %v1116_v45 = vpop.f32.mrf.mxu0 }
 0x1cd   : > { %v1117_v13 = vadd.f32 %v5908_v19, %v1116_v45 }
 0x1ce   : > { %5031 = vmatmul.msk.bf16.gmra.mxu1 %vm884_vm0, %v6289_v62  ;;  %v1510_v57 = vmax.f32 %v1347_v36, 0.0 }
 0x1cf   : > { %v1418_v40 = vmax.f32 %v1117_v13, 0.0  ;;  %v6330_v13 = vld [vmem:[%s5865_s15 + $0x78] sm:$0xff] }
 0x1d3   : > { %v1348_v61 = vpop.f32.mrf.mxu1 }
 0x1d4   : > { %v1349_v3 = vadd.f32 %v5908_v19, %v1348_v61  ;;  %v1118_v61 = vpop.f32.mrf.mxu0 }
 0x1d5   : > { %v1119_v36 = vadd.f32 %v5908_v19, %v1118_v61 }
 0x1d6   : > { %v1511_v32 = vmax.f32 %v1349_v3, 0.0  ;;  %v6319_v3 = vpop.f32.mrf.mxu3  ;;  %5133 = vmatmul.msk.bf16.gmra.mxu3 %vm884_vm0, %v6229_v34 }
 0x1d7   : > { %8194 = vst [vmem:[#allocation55_spill] sm:$0xff] %v6319_v3  ;;  %v1419_v6 = vmax.f32 %v1119_v36, 0.0 }
 0x1d8   : > { %v6313_v55 = vpack.c.bf16 %v1511_v32, %v1510_v57 }
 0x1d9   : > { %v6323_v58 = vpack.c.bf16 %v1419_v6, %v1418_v40  ;;  %4986 = vmatmul.msk.bf16.gmra.mxu0 %vm884_vm0, %v6330_v13 }
 0x1da   : > { %8193 = vst [vmem:[#allocation54_spill] sm:$0xff] %v6313_v55 }
 0x1db   : > { %v1351_v11 = vpop.f32.mrf.mxu1 }
 0x1dc   : > { %v1352_v45 = vadd.f32 %v5908_v19, %v1351_v11  ;;  %v1121_v57 = vpop.f32.mrf.mxu0  ;;  %v6340_v11 = vld [vmem:[%s5865_s15 + $0x1f0] sm:$0xff] }
 0x1dd   : > { %v1122_v6 = vadd.f32 %v5908_v19, %v1121_v57 }
 0x1de   : > { %5032 = vmatmul.msk.bf16.gmra.mxu1 %vm884_vm0, %v6316_v24  ;;  %v6332_v61 = vpop.f32.mrf.mxu3  ;;  %v1512_v3 = vmax.f32 %v1352_v45, 0.0 }
 0x1df   : > { %8195 = vst [vmem:[#allocation56_spill] sm:$0xff] %v6332_v61  ;;  %v1420_v60 = vmax.f32 %v1122_v6, 0.0  ;;  %v6354_v61 = vld [vmem:[%s5865_s15 + $0x80] sm:$0xff] }
 0x1e3   : > { %v1353_v32 = vpop.f32.mrf.mxu1 }
 0x1e4   : > { %v1354_v20 = vadd.f32 %v5908_v19, %v1353_v32  ;;  %v1123_v36 = vpop.f32.mrf.mxu0 }
 0x1e5   : > { %v1124_v32 = vadd.f32 %v5908_v19, %v1123_v36 }
 0x1e6   : > { %v1513_v49 = vmax.f32 %v1354_v20, 0.0  ;;  %v6343_v29 = vpop.f32.mrf.mxu3  ;;  %5134 = vmatmul.msk.bf16.gmra.mxu3 %vm884_vm0, %v6262_v46 }
 0x1e7   : > { %8197 = vst [vmem:[#allocation58_spill] sm:$0xff] %v6343_v29  ;;  %v1421_v45 = vmax.f32 %v1124_v32, 0.0  ;;  %v6367_v32 = vld [vmem:[%s5865_s15 + $0x1f8] sm:$0xff] }
 0x1e8   : > { %v6337_v40 = vpack.c.bf16 %v1513_v49, %v1512_v3 }
 0x1e9   : > { %v6347_v20 = vpack.c.bf16 %v1421_v45, %v1420_v60  ;;  %4987 = vmatmul.msk.bf16.gmra.mxu0 %vm884_vm0, %v6354_v61  ;;  %v5315_v60 = vld [vmem:[%s8132_s5 + $0x8] sm:$0xff] }
 0x1ea   : > { %8196 = vst [vmem:[#allocation57_spill] sm:$0xff] %v6337_v40  ;;  %2603 = vmatpush.bf16.msrb.mxu3 %v5315_v60 }
 0x1eb   : > { %v1356_v23 = vpop.f32.mrf.mxu1 }
 0x1ec   : > { %v1357_v57 = vadd.f32 %v5908_v19, %v1356_v23  ;;  %v1126_v3 = vpop.f32.mrf.mxu0 }
 0x1ed   : > { %v1127_v23 = vadd.f32 %v5908_v19, %v1126_v3 }
 0x1ee   : > { %5033 = vmatmul.msk.bf16.gmra.mxu1 %vm884_vm0, %v6340_v11  ;;  %v6356_v36 = vpop.f32.mrf.mxu3  ;;  %v1514_v29 = vmax.f32 %v1357_v57, 0.0 }
 0x1ef   : > { %8198 = vst [vmem:[#allocation59_spill] sm:$0xff] %v6356_v36  ;;  %v1422_v36 = vmax.f32 %v1127_v23, 0.0  ;;  %v6381_v23 = vld [vmem:[%s5865_s15 + $0x88] sm:$0xff] }
 0x1f3   : > { %v1358_v49 = vpop.f32.mrf.mxu1 }
 0x1f4   : > { %v1359_v6 = vadd.f32 %v5908_v19, %v1358_v49  ;;  %v1128_v49 = vpop.f32.mrf.mxu0 }
 0x1f5   : > { %v1129_v57 = vadd.f32 %v5908_v19, %v1128_v49 }
 0x1f6   : > { %v1515_v52 = vmax.f32 %v1359_v6, 0.0  ;;  %v6370_v6 = vpop.f32.mrf.mxu3  ;;  %5135 = vmatmul.msk.bf16.gmra.mxu3 %vm884_vm0, %v6289_v62 }
 0x1f7   : > { %8200 = vst [vmem:[#allocation61_spill] sm:$0xff] %v6370_v6  ;;  %v1423_v12 = vmax.f32 %v1129_v57, 0.0 }
 0x1f8   : > { %v6364_v5 = vpack.c.bf16 %v1515_v52, %v1514_v29 }
 0x1f9   : > { %v6374_v1 = vpack.c.bf16 %v1423_v12, %v1422_v36  ;;  %4988 = vmatmul.msk.bf16.gmra.mxu0 %vm884_vm0, %v6381_v23  ;;  %v5327_v12 = vld [vmem:[%s8135_s8 + $0x18] sm:$0xff] }
 0x1fa   : > { %8199 = vst [vmem:[#allocation60_spill] sm:$0xff] %v6364_v5  ;;  %3321 = vmatpush.bf16.msrb.mxu0 %v5327_v12  ;;  %5349 = vmatpush.bf16.msra.mxu1 %v5327_v12  ;;  %v6404_v12 = vld [vmem:[%s5865_s15 + $0x90] sm:$0xff] }
 0x1fb   : > { %v1361_v45 = vpop.f32.mrf.mxu1 }
 0x1fc   : > { %v1362_v3 = vadd.f32 %v5908_v19, %v1361_v45  ;;  %v1131_v29 = vpop.f32.mrf.mxu0 }
 0x1fd   : > { %v1132_v36 = vadd.f32 %v5908_v19, %v1131_v29 }
 0x1fe   : > { %5034 = vmatmul.msk.bf16.gmra.mxu1 %vm884_vm0, %v6367_v32  ;;  %v6383_v49 = vpop.f32.mrf.mxu3  ;;  %v1516_v6 = vmax.f32 %v1362_v3, 0.0 }
 0x1ff   : > { %8201 = vst [vmem:[#allocation62_spill] sm:$0xff] %v6383_v49 }
 0x203   : > { %v1363_v52 = vpop.f32.mrf.mxu1 }
 0x204   : > { %v1364_v60 = vadd.f32 %v5908_v19, %v1363_v52  ;;  %v1133_v57 = vpop.f32.mrf.mxu0  ;;  %v1424_v52 = vmax.f32 %v1132_v36, 0.0  ;;  %v6406_v36 = vpop.f32.mrf.mxu2 }
 0x205   : > { %v1134_v3 = vadd.f32 %v5908_v19, %v1133_v57 }
 0x206   : > { %v1517_v5 = vmax.f32 %v1364_v60, 0.0  ;;  %v6394_v60 = vpop.f32.mrf.mxu3  ;;  %5136 = vmatmul.msk.bf16.gmra.mxu3 %vm884_vm0, %v6316_v24 }
 0x207   : > { %8203 = vst [vmem:[#allocation64_spill] sm:$0xff] %v6394_v60  ;;  %v1425_v49 = vmax.f32 %v1134_v3, 0.0 }
 0x208   : > { %v6391_v0 = vpack.c.bf16 %v1517_v5, %v1516_v6 }
 0x209   : > { %v6397_v56 = vpack.c.bf16 %v1425_v49, %v1424_v52  ;;  %4989 = vmatmul.msk.bf16.gmra.mxu0 %vm884_vm0, %v6404_v12  ;;  %v5337_v49 = vld [vmem:[%s8137_s10 + $0x28] sm:$0xff] }
 0x20a   : > { %8202 = vst [vmem:[#allocation63_spill] sm:$0xff] %v6391_v0  ;;  %3908 = vmatpush.bf16.msrb.mxu2 %v5337_v49 }
 0x20b   : > { %v1366_v45 = vpop.f32.mrf.mxu1 }
 0x20c   : > { %v1367_v40 = vadd.f32 %v5908_v19, %v1366_v45  ;;  %v1136_v5 = vpop.f32.mrf.mxu0 }
 0x20d   : > { %v1137_v34 = vadd.f32 %v5908_v19, %v1136_v5 }
 0x20e   : > { %1674 = vmatmul.bf16.vlgmr.msrb.gmra.mxu1 %v6166_v41  ;;  %v6408_v57 = vpop.f32.mrf.mxu3  ;;  %v1518_v60 = vmax.f32 %v1367_v40, 0.0  ;;  %v6419_v40 = vpop.f32.mrf.mxu2  ;;  %5087 = vmatmul.msk.bf16.gmra.mxu2 %vm884_vm0, %v6247_v28 }
 0x20f   : > { %8204 = vst [vmem:[#allocation65_spill] sm:$0xff] %v6408_v57 }
 0x213   : > { %v1368_v29 = vpop.f32.mrf.mxu1 }
 0x214   : > { %v1369_v6 = vadd.f32 %v5908_v19, %v1368_v29  ;;  %v1138_v3 = vpop.f32.mrf.mxu0  ;;  %v1426_v29 = vmax.f32 %v1137_v34, 0.0 }
 0x215   : > { %v1139_v57 = vadd.f32 %v5908_v19, %v1138_v3  ;;  %v6433_v3 = vld [vmem:[%s5865_s15 + $0x98] sm:$0xff] }
 0x216   : > { %v1519_v41 = vmax.f32 %v1369_v6, 0.0  ;;  %v6421_v6 = vpop.f32.mrf.mxu3  ;;  %5137 = vmatmul.msk.bf16.gmra.mxu3 %vm884_vm0, %v6340_v11 }
 0x217   : > { %8206 = vst [vmem:[#allocation67_spill] sm:$0xff] %v6421_v6  ;;  %v1427_v0 = vmax.f32 %v1139_v57, 0.0  ;;  %v6435_v6 = vpop.f32.mrf.mxu2 }
 0x218   : > { %v6416_v45 = vpack.c.bf16 %v1519_v41, %v1518_v60 }
 0x219   : > { %v6426_v5 = vpack.c.bf16 %v1427_v0, %v1426_v29  ;;  %4990 = vmatmul.msk.bf16.gmra.mxu0 %vm884_vm0, %v6433_v3 }
 0x21a   : > { %8205 = vst [vmem:[#allocation66_spill] sm:$0xff] %v6416_v45 }
 0x21b   : > { %v1371_v52 = vpop.f32.mrf.mxu1 }
 0x21c   : > { %v1372_v60 = vadd.f32 %v5908_v19, %v1371_v52  ;;  %v1141_v49 = vpop.f32.mrf.mxu0 }
 0x21d   : > { %v1142_v0 = vadd.f32 %v5908_v19, %v1141_v49 }
 0x21e   : > { %1679 = vmatmul.bf16.gmra.mxu1 %v6189_v27  ;;  %v6437_v45 = vpop.f32.mrf.mxu3  ;;  %v1520_v28 = vmax.f32 %v1372_v60, 0.0 }
 0x21f   : > { %8207 = vst [vmem:[#allocation68_spill] sm:$0xff] %v6437_v45  ;;  %v1428_v29 = vmax.f32 %v1142_v0, 0.0  ;;  %v6445_v50 = vpop.f32.mrf.mxu2  ;;  %5088 = vmatmul.msk.bf16.gmra.mxu2 %vm884_vm0, %v6276_v18 }
 0x223   : > { %v1373_v41 = vpop.f32.mrf.mxu1 }
 0x224   : > { %v1374_v34 = vadd.f32 %v5908_v19, %v1373_v41  ;;  %v1143_v52 = vpop.f32.mrf.mxu0 }
 0x225   : > { %v1144_v41 = vadd.f32 %v5908_v19, %v1143_v52  ;;  %v6459_v52 = vld [vmem:[%s5865_s15 + $0xa0] sm:$0xff] }
 0x226   : > { %v1521_v27 = vmax.f32 %v1374_v34, 0.0  ;;  %v6447_v42 = vpop.f32.mrf.mxu3  ;;  %5138 = vmatmul.msk.bf16.gmra.mxu3 %vm884_vm0, %v6367_v32 }
 0x227   : > { %8209 = vst [vmem:[#allocation70_spill] sm:$0xff] %v6447_v42  ;;  %v1429_v60 = vmax.f32 %v1144_v41, 0.0  ;;  %v6461_v42 = vpop.f32.mrf.mxu2 }
 0x228   : > { %v6442_v57 = vpack.c.bf16 %v1521_v27, %v1520_v28 }
 0x229   : > { %v6452_v34 = vpack.c.bf16 %v1429_v60, %v1428_v29  ;;  %4991 = vmatmul.msk.bf16.gmra.mxu0 %vm884_vm0, %v6459_v52 }
 0x22a   : > { %8208 = vst [vmem:[#allocation69_spill] sm:$0xff] %v6442_v57 }
 0x22b   : > { %v1376_v46 = vpop.f32.mrf.mxu1 }
 0x22c   : > { %v1377_v49 = vadd.f32 %v5908_v19, %v1376_v46  ;;  %v1146_v27 = vpop.f32.mrf.mxu0  ;;  %v5314_v46 = vld [vmem:[%s8132_s5] sm:$0xff] }
 0x22d   : > { %v1147_v62 = vadd.f32 %v5908_v19, %v1146_v27  ;;  %2604 = vmatpush.bf16.msrb.mxu3 %v5314_v46 }
 0x22e   : > { %1684 = vmatmul.bf16.gmra.mxu1 %v6214_v31  ;;  %v6463_v45 = vpop.f32.mrf.mxu3  ;;  %v1522_v18 = vmax.f32 %v1377_v49, 0.0 }
 0x22f   : > { %8210 = vst [vmem:[#allocation71_spill] sm:$0xff] %v6463_v45  ;;  %v6474_v49 = vpop.f32.mrf.mxu2  ;;  %5089 = vmatmul.msk.bf16.gmra.mxu2 %vm884_vm0, %v6303_v8 }
 0x233   : > { %v1378_v28 = vpop.f32.mrf.mxu1 }
 0x234   : > { %v1379_v0 = vadd.f32 %v5908_v19, %v1378_v28  ;;  %v1148_v60 = vpop.f32.mrf.mxu0  ;;  %v1430_v28 = vmax.f32 %v1147_v62, 0.0 }
 0x235   : > { %v1149_v45 = vadd.f32 %v5908_v19, %v1148_v60  ;;  %v6488_v60 = vld [vmem:[%s5865_s15 + $0xa8] sm:$0xff] }
 0x236   : > { %v1523_v31 = vmax.f32 %v1379_v0, 0.0  ;;  %v6476_v0 = vpop.f32.mrf.mxu3 }
 0x237   : > { %8212 = vst [vmem:[#allocation73_spill] sm:$0xff] %v6476_v0  ;;  %v1431_v57 = vmax.f32 %v1149_v45, 0.0  ;;  %v6490_v0 = vpop.f32.mrf.mxu2  ;;  %v5326_v45 = vld [vmem:[%s8135_s8 + $0x10] sm:$0xff] }
 0x238   : > { %v6471_v29 = vpack.c.bf16 %v1523_v31, %v1522_v18  ;;  %3322 = vmatpush.bf16.msrb.mxu0 %v5326_v45  ;;  %5350 = vmatpush.bf16.msra.mxu1 %v5326_v45 }
 0x239   : > { %v6481_v27 = vpack.c.bf16 %v1431_v57, %v1430_v28  ;;  %4992 = vmatmul.msk.bf16.gmra.mxu0 %vm884_vm0, %v6488_v60 }
 0x23a   : > { %8211 = vst [vmem:[#allocation72_spill] sm:$0xff] %v6471_v29 }
 0x23b   : > { %v1381_v41 = vpop.f32.mrf.mxu1 }
 0x23c   : > { %v1382_v18 = vadd.f32 %v5908_v19, %v1381_v41  ;;  %v1151_v46 = vpop.f32.mrf.mxu0 }
 0x23d   : > { %v1152_v24 = vadd.f32 %v5908_v19, %v1151_v46 }
 0x23e   : > { %1689 = vmatmul.bf16.gmra.mxu1 %v6239_v53  ;;  %v6492_v29 = vpop.f32.mrf.mxu3  ;;  %v1524_v8 = vmax.f32 %v1382_v18, 0.0  ;;  %v6505_v18 = vld [vmem:[%s8129_s2] ss:$0 sm:$0xff] }
 0x23f   : > { %8213 = vst [vmem:[#allocation74_spill] sm:$0xff] %v6492_v29  ;;  %v6508_v29 = vpop.f32.mrf.mxu2  ;;  %5090 = vmatmul.msk.bf16.gmra.mxu2 %vm884_vm0, %v6330_v13 }
 0x243   : > { %v1383_v31 = vpop.f32.mrf.mxu1 }
 0x244   : > { %v1384_v62 = vadd.f32 %v5908_v19, %v1383_v31  ;;  %v1153_v28 = vpop.f32.mrf.mxu0  ;;  %v1432_v31 = vmax.f32 %v1152_v24, 0.0 }
 0x246   : > { %v1525_v53 = vmax.f32 %v1384_v62, 0.0  ;;  %v1154_v62 = vadd.f32 %v6505_v18, %v1153_v28  ;;  %v6510_v55 = vpop.f32.mrf.mxu3  ;;  %v6522_v28 = vld [vmem:[%s5865_s15 + $0xb0] sm:$0xff] }
 0x247   : > { %8215 = vst [vmem:[#allocation76_spill] sm:$0xff] %v6510_v55  ;;  %v6524_v55 = vpop.f32.mrf.mxu2 }
 0x248   : > { %v6500_v57 = vpack.c.bf16 %v1525_v53, %v1524_v8  ;;  %v1433_v19 = vmax.f32 %v1154_v62, 0.0 }
 0x249   : > { %4993 = vmatmul.msk.bf16.gmra.mxu0 %vm884_vm0, %v6522_v28 }
 0x24a   : > { %8214 = vst [vmem:[#allocation75_spill] sm:$0xff] %v6500_v57  ;;  %v6515_v46 = vpack.c.bf16 %v1433_v19, %v1432_v31 }
 0x24b   : > { %v1386_v41 = vpop.f32.mrf.mxu1 }
 0x24c   : > { %v1387_v8 = vadd.f32 %v6505_v18, %v1386_v41  ;;  %v1156_v45 = vpop.f32.mrf.mxu0 }
 0x24d   : > { %v1157_v11 = vadd.f32 %v6505_v18, %v1156_v45 }
 0x24e   : > { %1694 = vmatmul.bf16.gmra.mxu1 %v6269_v9  ;;  %v1526_v57 = vmax.f32 %v1387_v8, 0.0  ;;  %v6526_v26 = vpop.f32.mrf.mxu3  ;;  %v5336_v9 = vld [vmem:[%s8137_s10 + $0x20] sm:$0xff] }
 0x24f   : > { %8216 = vst [vmem:[#allocation77_spill] sm:$0xff] %v6526_v26  ;;  %3909 = vmatpush.bf16.msrb.mxu2 %v5336_v9  ;;  %v1434_v19 = vmax.f32 %v1157_v11, 0.0 }
 0x253   : > { %v1388_v53 = vpop.f32.mrf.mxu1 }
 0x254   : > { %v1389_v24 = vadd.f32 %v6505_v18, %v1388_v53  ;;  %v1158_v62 = vpop.f32.mrf.mxu0  ;;  %v6537_v53 = vpop.f32.mrf.mxu2  ;;  %5091 = vmatmul.msk.bf16.gmra.mxu2 %vm884_vm0, %v6354_v61 }
 0x255   : > { %v1159_v8 = vadd.f32 %v6505_v18, %v1158_v62  ;;  %v6551_v62 = vld [vmem:[%s5865_s15 + $0xb8] sm:$0xff] }
 0x256   : > { %v1527_v13 = vmax.f32 %v1389_v24, 0.0  ;;  %v6542_v26 = vpop.f32.mrf.mxu3 }
 0x257   : > { %v1435_v24 = vmax.f32 %v1159_v8, 0.0  ;;  %8218 = vst [vmem:[#allocation79_spill] sm:$0xff] %v6542_v26 }
 0x258   : > { %v6534_v41 = vpack.c.bf16 %v1527_v13, %v1526_v57 }
 0x259   : > { %v6544_v45 = vpack.c.bf16 %v1435_v24, %v1434_v19  ;;  %4994 = vmatmul.msk.bf16.gmra.mxu0 %vm884_vm0, %v6551_v62 }
 0x25a   : > { %8217 = vst [vmem:[#allocation78_spill] sm:$0xff] %v6534_v41 }
 0x25b   : > { %v1391_v31 = vpop.f32.mrf.mxu1 }
 0x25c   : > { %v1392_v57 = vadd.f32 %v6505_v18, %v1391_v31  ;;  %v1161_v9 = vpop.f32.mrf.mxu0  ;;  %v6553_v41 = vpop.f32.mrf.mxu2 }
 0x25d   : > { %v1162_v19 = vadd.f32 %v6505_v18, %v1161_v9 }
 0x25e   : > { %1699 = vmatmul.bf16.gmra.mxu1 %v6296_v39  ;;  %v1528_v61 = vmax.f32 %v1392_v57, 0.0  ;;  %v6560_v31 = vpop.f32.mrf.mxu3 }
 0x25f   : > { %8220 = vst [vmem:[#allocation81_spill] sm:$0xff] %v6560_v31  ;;  %v1436_v26 = vmax.f32 %v1162_v19, 0.0  ;;  %v6575_v19 = vld [vmem:[%s5865_s15 + $0xc0] sm:$0xff] }
 0x263   : > { %v1393_v13 = vpop.f32.mrf.mxu1 }
 0x264   : > { %v1394_v11 = vadd.f32 %v6505_v18, %v1393_v13  ;;  %v1163_v24 = vpop.f32.mrf.mxu0  ;;  %v6563_v30 = vpop.f32.mrf.mxu2  ;;  %5092 = vmatmul.msk.bf16.gmra.mxu2 %vm884_vm0, %v6381_v23 }
 0x265   : > { %v1164_v13 = vadd.f32 %v6505_v18, %v1163_v24 }
 0x266   : > { %v1529_v39 = vmax.f32 %v1394_v11, 0.0 }
 0x267   : > { %v1437_v57 = vmax.f32 %v1164_v13, 0.0 }
 0x268   : > { %v6558_v8 = vpack.c.bf16 %v1529_v39, %v1528_v61 }
 0x269   : > { %v6568_v11 = vpack.c.bf16 %v1437_v57, %v1436_v26  ;;  %4995 = vmatmul.msk.bf16.gmra.mxu0 %vm884_vm0, %v6575_v19 }
 0x26a   : > { %8219 = vst [vmem:[#allocation80_spill] sm:$0xff] %v6558_v8  ;;  %v6572_v8 = vpop.f32.mrf.mxu3 }
 0x26b   : > { %v1396_v32 = vpop.f32.mrf.mxu1  ;;  %8221 = vst [vmem:[#allocation82_spill] sm:$0xff] %v6572_v8 }
 0x26c   : > { %v1397_v9 = vadd.f32 %v6505_v18, %v1396_v32  ;;  %v1166_v39 = vpop.f32.mrf.mxu0  ;;  %v6577_v24 = vpop.f32.mrf.mxu2 }
 0x26d   : > { %v1167_v26 = vadd.f32 %v6505_v18, %v1166_v39 }
 0x26e   : > { %1704 = vmatmul.bf16.gmra.mxu1 %v6323_v58  ;;  %v1530_v38 = vmax.f32 %v1397_v9, 0.0 }
 0x26f   : > { %v1438_v13 = vmax.f32 %v1167_v26, 0.0 }
 0x273   : > { %v1398_v61 = vpop.f32.mrf.mxu1 }
 0x274   : > { %v1399_v31 = vadd.f32 %v6505_v18, %v1398_v61  ;;  %v1168_v32 = vpop.f32.mrf.mxu0  ;;  %v6585_v61 = vpop.f32.mrf.mxu2  ;;  %5093 = vmatmul.msk.bf16.gmra.mxu2 %vm884_vm0, %v6404_v12 }
 0x275   : > { %v1169_v57 = vadd.f32 %v6505_v18, %v1168_v32 }
 0x276   : > { %v1531_v17 = vmax.f32 %v1399_v31, 0.0  ;;  %v6590_v31 = vpop.f32.mrf.mxu3 }
 0x277   : > { %8223 = vst [vmem:[#allocation84_spill] sm:$0xff] %v6590_v31  ;;  %v1439_v9 = vmax.f32 %v1169_v57, 0.0 }
 0x278   : > { %v6582_v58 = vpack.c.bf16 %v1531_v17, %v1530_v38 }
 0x279   : > { %v6592_v8 = vpack.c.bf16 %v1439_v9, %v1438_v13 }
 0x27a   : > { %8222 = vst [vmem:[#allocation83_spill] sm:$0xff] %v6582_v58  ;;  %v6597_v58 = vld [vmem:[%s5865_s15 + $0xc8] sm:$0xff] }
 0x27b   : > { %v1401_v23 = vpop.f32.mrf.mxu1  ;;  %4996 = vmatmul.msk.bf16.gmra.mxu0 %vm884_vm0, %v6597_v58 }
 0x27c   : > { %v1402_v17 = vadd.f32 %v6505_v18, %v1401_v23  ;;  %v1171_v39 = vpop.f32.mrf.mxu0  ;;  %v6599_v32 = vpop.f32.mrf.mxu2  ;;  %v5325_v23 = vld [vmem:[%s8135_s8 + $0x8] sm:$0xff] }
 0x27d   : > { %v1172_v12 = vadd.f32 %v6505_v18, %v1171_v39  ;;  %3323 = vmatpush.bf16.msrb.mxu0 %v5325_v23  ;;  %5351 = vmatpush.bf16.msra.mxu1 %v5325_v23 }
 0x27e   : > { %1709 = vmatmul.bf16.gmra.mxu1 %v6347_v20  ;;  %v1532_v16 = vmax.f32 %v1402_v17, 0.0  ;;  %v6603_v20 = vpop.f32.mrf.mxu3 }
 0x27f   : > { %8224 = vst [vmem:[#allocation85_spill] sm:$0xff] %v6603_v20 }
 0x283   : > { %v1403_v38 = vpop.f32.mrf.mxu1 }
 0x284   : > { %v1404_v26 = vadd.f32 %v6505_v18, %v1403_v38  ;;  %v1173_v9 = vpop.f32.mrf.mxu0  ;;  %v1440_v38 = vmax.f32 %v1172_v12, 0.0 }
 0x285   : > { %v1174_v17 = vadd.f32 %v6505_v18, %v1173_v9 }
 0x286   : > { %v1533_v63 = vmax.f32 %v1404_v26, 0.0  ;;  %v6612_v26 = vpop.f32.mrf.mxu2  ;;  %5094 = vmatmul.msk.bf16.gmra.mxu2 %vm884_vm0, %v6433_v3  ;;  %v6625_v20 = vpop.f32.mrf.mxu3 }
 0x287   : > { %8226 = vst [vmem:[#allocation87_spill] sm:$0xff] %v6625_v20 }
 0x288   : > { %v6606_v13 = vpack.c.bf16 %v1533_v63, %v1532_v16  ;;  %v6619_v16 = vld [vmem:[%s8131_s4] ss:$0 sm:$0xff]  ;;  %v1441_v63 = vmax.f32 %v1174_v17, 0.0 }
 0x28a   : > { %8225 = vst [vmem:[#allocation86_spill] sm:$0xff] %v6606_v13  ;;  %v6622_v39 = vpack.c.bf16 %v1441_v63, %v1440_v38  ;;  %v6629_v13 = vld [vmem:[%s5865_s15 + $0xd0] sm:$0xff] }
 0x28b   : > { %v1675_v57 = vpop.f32.mrf.mxu1  ;;  %4997 = vmatmul.msk.bf16.gmra.mxu0 %vm884_vm0, %v6629_v13 }
 0x28c   : > { %v1676_v12 = vadd.f32 %v6619_v16, %v1675_v57  ;;  %v1176_v9 = vpop.f32.mrf.mxu0  ;;  %v5335_v57 = vld [vmem:[%s8137_s10 + $0x18] sm:$0xff] }
 0x28d   : > { %v1177_v38 = vadd.f32 %v6505_v18, %v1176_v9  ;;  %3910 = vmatpush.bf16.msrb.mxu2 %v5335_v57 }
 0x28e   : > { %1714 = vmatmul.bf16.gmra.mxu1 %v6374_v1  ;;  %v6631_v3 = vpop.f32.mrf.mxu2  ;;  %v1995_v10 = vmax.f32 %v1676_v12, 0.0 }
 0x28f   : > { %v1442_v20 = vmax.f32 %v1177_v38, 0.0  ;;  %v6652_v38 = vld [vmem:[%s5865_s15 + $0xd8] sm:$0xff] }
 0x293   : > { %v1677_v23 = vpop.f32.mrf.mxu1 }
 0x294   : > { %v1678_v31 = vadd.f32 %v6619_v16, %v1677_v23  ;;  %v1178_v63 = vpop.f32.mrf.mxu0  ;;  %v6639_v23 = vpop.f32.mrf.mxu3 }
 0x295   : > { %8227 = vst [vmem:[#allocation88_spill] sm:$0xff] %v6639_v23 }
 0x296   : > { %v1996_v2 = vmax.f32 %v1678_v31, 0.0  ;;  %v1179_v31 = vadd.f32 %v6505_v18, %v1178_v63  ;;  %v6642_v12 = vpop.f32.mrf.mxu2  ;;  %5095 = vmatmul.msk.bf16.gmra.mxu2 %vm884_vm0, %v6459_v52 }
 0x298   : > { %v2123_v1 = vpack.c.bf16 %v1996_v2, %v1995_v10  ;;  %v1443_v2 = vmax.f32 %v1179_v31, 0.0 }
 0x29a   : > { %2605 = vmatmul.bf16.vlgmr.msrb.gmra.mxu3 %v2123_v1  ;;  %v6647_v10 = vpack.c.bf16 %v1443_v2, %v1442_v20 }
 0x29b   : > { %v1680_v17 = vpop.f32.mrf.mxu1  ;;  %4998 = vmatmul.msk.bf16.gmra.mxu0 %vm884_vm0, %v6652_v38 }
 0x29c   : > { %v1681_v9 = vadd.f32 %v6619_v16, %v1680_v17  ;;  %v1181_v14 = vpop.f32.mrf.mxu0  ;;  %v6656_v4 = vpop.f32.mrf.mxu3 }
 0x29d   : > { %8228 = vst [vmem:[#allocation89_spill] sm:$0xff] %v6656_v4  ;;  %v1182_v52 = vadd.f32 %v6505_v18, %v1181_v14  ;;  %v6674_v4 = vld [vmem:[%s5865_s15 + $0xe0] sm:$0xff] }
 0x29e   : > { %1719 = vmatmul.bf16.gmra.mxu1 %v6397_v56  ;;  %v6654_v57 = vpop.f32.mrf.mxu2  ;;  %v1997_v63 = vmax.f32 %v1681_v9, 0.0 }
 0x29f   : > { %v1444_v31 = vmax.f32 %v1182_v52, 0.0 }
 0x2a3   : > { %v1682_v1 = vpop.f32.mrf.mxu1 }
 0x2a4   : > { %v1683_v23 = vadd.f32 %v6619_v16, %v1682_v1  ;;  %v1183_v17 = vpop.f32.mrf.mxu0  ;;  %v6667_v9 = vpop.f32.mrf.mxu3 }
 0x2a5   : > { %v1184_v2 = vadd.f32 %v6505_v18, %v1183_v17  ;;  %8229 = vst [vmem:[#allocation90_spill] sm:$0xff] %v6667_v9 }
 0x2a6   : > { %v1998_v48 = vmax.f32 %v1683_v23, 0.0  ;;  %v6662_v1 = vpop.f32.mrf.mxu2  ;;  %5096 = vmatmul.msk.bf16.gmra.mxu2 %vm884_vm0, %v6488_v60 }
 0x2a7   : > { %v1445_v23 = vmax.f32 %v1184_v2, 0.0 }
 0x2a8   : > { %v2124_v56 = vpack.c.bf16 %v1998_v48, %v1997_v63 }
 0x2a9   : > { %v6669_v48 = vpack.c.bf16 %v1445_v23, %v1444_v31 }
 0x2aa   : > { %2610 = vmatmul.bf16.gmra.mxu3 %v2124_v56 }
 0x2ab   : > { %v1685_v20 = vpop.f32.mrf.mxu1  ;;  %4999 = vmatmul.msk.bf16.gmra.mxu0 %vm884_vm0, %v6674_v4 }
 0x2ac   : > { %v1686_v14 = vadd.f32 %v6619_v16, %v1685_v20  ;;  %v1186_v56 = vpop.f32.mrf.mxu0  ;;  %v6681_v31 = vpop.f32.mrf.mxu3 }
 0x2ad   : > { %v1187_v60 = vadd.f32 %v6505_v18, %v1186_v56  ;;  %8230 = vst [vmem:[#allocation91_spill] sm:$0xff] %v6681_v31 }
 0x2ae   : > { %1724 = vmatmul.bf16.gmra.mxu1 %v6426_v5  ;;  %v6676_v17 = vpop.f32.mrf.mxu2  ;;  %v1999_v22 = vmax.f32 %v1686_v14, 0.0 }
 0x2af   : > { %v1446_v23 = vmax.f32 %v1187_v60, 0.0  ;;  %v6696_v60 = vld [vmem:[%s5865_s15 + $0xe8] sm:$0xff] }
 0x2b3   : > { %v1687_v63 = vpop.f32.mrf.mxu1 }
 0x2b4   : > { %v1688_v52 = vadd.f32 %v6619_v16, %v1687_v63  ;;  %v1188_v2 = vpop.f32.mrf.mxu0 }
 0x2b5   : > { %v1189_v63 = vadd.f32 %v6505_v18, %v1188_v2  ;;  %v6698_v2 = vpop.f32.mrf.mxu3 }
 0x2b6   : > { %v2000_v54 = vmax.f32 %v1688_v52, 0.0  ;;  %v6684_v9 = vpop.f32.mrf.mxu2  ;;  %5097 = vmatmul.msk.bf16.gmra.mxu2 %vm884_vm0, %v6522_v28  ;;  %8231 = vst [vmem:[#allocation92_spill] sm:$0xff] %v6698_v2 }
 0x2b7   : > { %v1447_v14 = vmax.f32 %v1189_v63, 0.0 }
 0x2b8   : > { %v2125_v5 = vpack.c.bf16 %v2000_v54, %v1999_v22 }
 0x2b9   : > { %v6689_v54 = vpack.c.bf16 %v1447_v14, %v1446_v23  ;;  %v5324_v14 = vld [vmem:[%s8135_s8] sm:$0xff] }
 0x2ba   : > { %2615 = vmatmul.bf16.gmra.mxu3 %v2125_v5  ;;  %3324 = vmatpush.bf16.msrb.mxu0 %v5324_v14 }
 0x2bb   : > { %v1690_v20 = vpop.f32.mrf.mxu1  ;;  %5000 = vmatmul.msk.bf16.gmra.mxu0 %vm884_vm0, %v6696_v60  ;;  %5352 = vmatpush.bf16.msra.mxu1 %v5324_v14 }
 0x2bc   : > { %v1691_v22 = vadd.f32 %v6619_v16, %v1690_v20  ;;  %v6692_v52 = vpop.f32.mrf.mxu0 }
 0x2be   : > { %1729 = vmatmul.bf16.gmra.mxu1 %v6452_v34  ;;  %v6700_v31 = vpop.f32.mrf.mxu2  ;;  %v2001_v37 = vmax.f32 %v1691_v22, 0.0  ;;  %v6714_v22 = vpop.f32.mrf.mxu3 }
 0x2bf   : > { %8232 = vst [vmem:[#allocation93_spill] sm:$0xff] %v6714_v22 }
 0x2c3   : > { %v1692_v56 = vpop.f32.mrf.mxu1 }
 0x2c4   : > { %v1693_v5 = vadd.f32 %v6619_v16, %v1692_v56  ;;  %v6704_v23 = vpop.f32.mrf.mxu0 }
 0x2c6   : > { %v2002_v28 = vmax.f32 %v1693_v5, 0.0  ;;  %v6706_v63 = vpop.f32.mrf.mxu2  ;;  %5098 = vmatmul.msk.bf16.gmra.mxu2 %vm884_vm0, %v6551_v62  ;;  %v6727_v15 = vpop.f32.mrf.mxu3 }
 0x2c7   : > { %8233 = vst [vmem:[#allocation94_spill] sm:$0xff] %v6727_v15  ;;  %v6746_v15 = vld [vmem:[%s5865_s15 + $0xf8] sm:$0xff] }
 0x2c8   : > { %v2126_v34 = vpack.c.bf16 %v2002_v28, %v2001_v37 }
 0x2ca   : > { %2620 = vmatmul.bf16.gmra.mxu3 %v2126_v34  ;;  %v6721_v34 = vld [vmem:[%s5865_s15 + $0xf0] sm:$0xff] }
 0x2cb   : > { %v1695_v20 = vpop.f32.mrf.mxu1  ;;  %5001 = vmatmul.msk.bf16.gmra.mxu0 %vm884_vm0, %v6721_v34 }
 0x2cc   : > { %v1696_v37 = vadd.f32 %v6619_v16, %v1695_v20  ;;  %v6717_v5 = vpop.f32.mrf.mxu0  ;;  %v5334_v20 = vld [vmem:[%s8137_s10 + $0x10] sm:$0xff] }
 0x2cd   : > { %3911 = vmatpush.bf16.msrb.mxu2 %v5334_v20 }
 0x2ce   : > { %1734 = vmatmul.bf16.gmra.mxu1 %v6481_v27  ;;  %v6723_v62 = vpop.f32.mrf.mxu2  ;;  %v2003_v27 = vmax.f32 %v1696_v37, 0.0 }
 0x2d3   : > { %v1697_v56 = vpop.f32.mrf.mxu1 }
 0x2d4   : > { %v1698_v28 = vadd.f32 %v6619_v16, %v1697_v56  ;;  %v6732_v56 = vpop.f32.mrf.mxu0 }
 0x2d6   : > { %v2004_v2 = vmax.f32 %v1698_v28, 0.0  ;;  %v6734_v44 = vpop.f32.mrf.mxu2  ;;  %5099 = vmatmul.msk.bf16.gmra.mxu2 %vm884_vm0, %v6575_v19  ;;  %v6740_v28 = vpop.f32.mrf.mxu3 }
 0x2d7   : > { %8234 = vst [vmem:[#allocation95_spill] sm:$0xff] %v6740_v28 }
 0x2d8   : > { %v2127_v22 = vpack.c.bf16 %v2004_v2, %v2003_v27 }
 0x2da   : > { %2625 = vmatmul.bf16.gmra.mxu3 %v2127_v22 }
 0x2db   : > { %v1700_v14 = vpop.f32.mrf.mxu1  ;;  %5002 = vmatmul.msk.bf16.gmra.mxu0 %vm884_vm0, %v6746_v15 }
 0x2dc   : > { %v1701_v2 = vadd.f32 %v6619_v16, %v1700_v14  ;;  %v6743_v27 = vpop.f32.mrf.mxu0 }
 0x2de   : > { %1739 = vmatmul.bf16.gmra.mxu1 %v6515_v46  ;;  %v6748_v47 = vpop.f32.mrf.mxu2  ;;  %v2005_v20 = vmax.f32 %v1701_v2, 0.0  ;;  %v6752_v14 = vpop.f32.mrf.mxu3 }
 0x2df   : > { %8235 = vst [vmem:[#allocation96_spill] sm:$0xff] %v6752_v14 }
 0x2e3   : > { %v1702_v37 = vpop.f32.mrf.mxu1 }
 0x2e4   : > { %v1703_v22 = vadd.f32 %v6619_v16, %v1702_v37  ;;  %v6759_v37 = vpop.f32.mrf.mxu0 }
 0x2e6   : > { %v2006_v33 = vmax.f32 %v1703_v22, 0.0  ;;  %v6754_v28 = vpop.f32.mrf.mxu2  ;;  %5100 = vmatmul.msk.bf16.gmra.mxu2 %vm884_vm0, %v6597_v58  ;;  %v6767_v14 = vpop.f32.mrf.mxu3 }
 0x2e7   : > { %8236 = vst [vmem:[#allocation97_spill] sm:$0xff] %v6754_v28 }
 0x2e8   : > { %v2128_v46 = vpack.c.bf16 %v2006_v33, %v2005_v20  ;;  %8238 = vst [vmem:[#allocation99_spill] sm:$0xff] %v6767_v14 }
 0x2ea   : > { %2630 = vmatmul.bf16.gmra.mxu3 %v2128_v46  ;;  %v5656_v46 = vld [vmem:[%s5865_s15 + $0x100] sm:$0xff]  ;;  %s5689_s15 = scalar_lea.hbm %s5688_s19, 1024 }
 0x2eb   : > { %v1705_v19 = vpop.f32.mrf.mxu1  ;;  %5003 = vmatmul.msk.bf16.gmra.mxu0 %vm884_vm0, %v5656_v46  ;;  %p5690_p11 = scmp.ne.s32.totalorder %s5688_s19, %s5689_s15  ;;  %p5695_p1 = scmp.lt.s32.totalorder %s5693_s28, %s5689_s15 }
 0x2ec   : > { %v1706_v2 = vadd.f32 %v6619_v16, %v1705_v19  ;;  %v6769_v58 = vpop.f32.mrf.mxu0 }
 0x2ed   : > { %p5691_p12 = pnand %p5690_p11, %p5842_p5  ;;  %p5696_p2 = por %p5695_p1, %p5694_p0 }
 0x2ee   : > { %1744 = vmatmul.bf16.gmra.mxu1 %v6544_v45  ;;  %v6763_v7 = vpop.f32.mrf.mxu2  ;;  %v2007_v33 = vmax.f32 %v1706_v2, 0.0  ;;  %v6776_v19 = vpop.f32.mrf.mxu3 }
 0x2ef   : > { %8237 = vst [vmem:[#allocation98_spill] sm:$0xff] %v6763_v7  ;;  %p5692_p13 = pneg %p5691_p12 }
 0x2f0   : > { %8240 = vst [vmem:[#allocation101_spill] sm:$0xff] %v6776_v19 }
 0x2f1   : > { %p5697_p3 = pnand %p5696_p2, %p5692_p13 }
 0x2f3   : > { %v1707_v22 = vpop.f32.mrf.mxu1 }
 0x2f4   : > { %v1708_v21 = vadd.f32 %v6619_v16, %v1707_v22  ;;  %v6779_v2 = vpop.f32.mrf.mxu0 }
 0x2f6   : > { %v2008_v20 = vmax.f32 %v1708_v21, 0.0  ;;  %v6771_v51 = vpop.f32.mrf.mxu2  ;;  %5101 = vmatmul.msk.bf16.gmra.mxu2 %vm884_vm0, %v6629_v13  ;;  %v6784_v43 = vpop.f32.mrf.mxu3 }
 0x2f7   : > { %8239 = vst [vmem:[#allocation100_spill] sm:$0xff] %v6771_v51 }
 0x2f8   : > { %v2129_v59 = vpack.c.bf16 %v2008_v20, %v2007_v33  ;;  %8242 = vst [vmem:[#allocation103_spill] sm:$0xff] %v6784_v43 }
 0x2fa   : > { %2635 = vmatmul.bf16.gmra.mxu3 %v2129_v59 }
 0x2fb   : > { %v1710_v45 = vpop.f32.mrf.mxu1 }
 0x2fc   : > { %v1711_v21 = vadd.f32 %v6619_v16, %v1710_v45  ;;  %v6786_v35 = vpop.f32.mrf.mxu0 }
 0x2fe   : > { %1749 = vmatmul.bf16.gmra.mxu1 %v6568_v11  ;;  %v6782_v20 = vpop.f32.mrf.mxu2  ;;  %v2009_v59 = vmax.f32 %v1711_v21, 0.0 }
 0x2ff   : > { %8241 = vst [vmem:[#allocation102_spill] sm:$0xff] %v6782_v20 }
 0x303   : > { %v1712_v22 = vpop.f32.mrf.mxu1 }
 0x304   : > { %v1713_v33 = vadd.f32 %v6619_v16, %v1712_v22  ;;  %v6799_v43 = vpop.f32.mrf.mxu0 }
 0x306   : > { %v2010_v46 = vmax.f32 %v1713_v33, 0.0  ;;  %v6788_v11 = vpop.f32.mrf.mxu2  ;;  %5102 = vmatmul.msk.bf16.gmra.mxu2 %vm884_vm0, %v6652_v38  ;;  %v6795_v33 = vpop.f32.mrf.mxu3  ;;  %v5333_v38 = vld [vmem:[%s8137_s10 + $0x8] sm:$0xff] }
 0x307   : > { %8243 = vst [vmem:[#allocation104_spill] sm:$0xff] %v6788_v11  ;;  %3912 = vmatpush.bf16.msrb.mxu2 %v5333_v38 }
 0x308   : > { %v2130_v14 = vpack.c.bf16 %v2010_v46, %v2009_v59  ;;  %8244 = vst [vmem:[#allocation105_spill] sm:$0xff] %v6795_v33 }
 0x30a   : > { %2640 = vmatmul.bf16.gmra.mxu3 %v2130_v14 }
 0x30b   : > { %v1715_v13 = vpop.f32.mrf.mxu1 }
 0x30c   : > { %v1716_v45 = vadd.f32 %v6619_v16, %v1715_v13 }
 0x30e   : > { %1754 = vmatmul.bf16.gmra.mxu1 %v6592_v8  ;;  %v6797_v14 = vpop.f32.mrf.mxu2  ;;  %v2011_v59 = vmax.f32 %v1716_v45, 0.0  ;;  %v6809_v45 = vpop.f32.mrf.mxu0 }
 0x30f   : > { %8245 = vst [vmem:[#allocation106_spill] sm:$0xff] %v6797_v14 }
 0x313   : > { %v1717_v22 = vpop.f32.mrf.mxu1 }
 0x314   : > { %v1718_v21 = vadd.f32 %v6619_v16, %v1717_v22 }
 0x316   : > { %v2012_v46 = vmax.f32 %v1718_v21, 0.0  ;;  %v6804_v25 = vpop.f32.mrf.mxu2  ;;  %5103 = vmatmul.msk.bf16.gmra.mxu2 %vm884_vm0, %v6674_v4  ;;  %v6816_v21 = vld [vmem:[%s8134_s7] ss:$0 sm:$0xff]  ;;  %v6824_v20 = vpop.f32.mrf.mxu0 }
 0x317   : > { %8246 = vst [vmem:[#allocation107_spill] sm:$0xff] %v6804_v25 }
 0x318   : > { %v2131_v19 = vpack.c.bf16 %v2012_v46, %v2011_v59 }
 0x31a   : > { %2645 = vmatmul.bf16.gmra.mxu3 %v2131_v19 }
 0x31b   : > { %v1720_v8 = vpop.f32.mrf.mxu1 }
 0x31c   : > { %v1721_v22 = vadd.f32 %v6619_v16, %v1720_v8 }
 0x31d   : > { %v2606_v13 = vpop.f32.mrf.mxu3 }
 0x31e   : > { %1759 = vmatmul.bf16.gmra.mxu1 %v6622_v39  ;;  %v2607_v19 = vadd.f32 %v2606_v13, %v6406_v36  ;;  %v6819_v33 = vpop.f32.mrf.mxu2  ;;  %v2013_v4 = vmax.f32 %v1721_v22, 0.0 }
 0x320   : > { %v2929_v39 = vadd.f32 %v6816_v21, %v2607_v19  ;;  %v6834_v19 = vpop.f32.mrf.mxu0 }
 0x322   : > { %v3057_v13 = vmax.f32 %v2929_v39, 0.0 }
 0x323   : > { %v1722_v59 = vpop.f32.mrf.mxu1 }
 0x324   : > { %v1723_v46 = vadd.f32 %v6619_v16, %v1722_v59 }
 0x325   : > { %v2608_v38 = vpop.f32.mrf.mxu3 }
 0x326   : > { %v2014_v25 = vmax.f32 %v1723_v46, 0.0  ;;  %v2609_v14 = vadd.f32 %v2608_v38, %v6419_v40  ;;  %v6826_v28 = vpop.f32.mrf.mxu2  ;;  %5104 = vmatmul.msk.bf16.gmra.mxu2 %vm884_vm0, %v6696_v60 }
 0x328   : > { %v2930_v8 = vadd.f32 %v6816_v21, %v2609_v14  ;;  %v2132_v36 = vpack.c.bf16 %v2014_v25, %v2013_v4 }
 0x32a   : > { %v3058_v11 = vmax.f32 %v2930_v8, 0.0  ;;  %2650 = vmatmul.bf16.gmra.mxu3 %v2132_v36 }
 0x32b   : > { %v1725_v51 = vpop.f32.mrf.mxu1 }
 0x32c   : > { %v3185_v7 = vpack.c.bf16 %v3058_v11, %v3057_v13  ;;  %v1726_v40 = vadd.f32 %v6619_v16, %v1725_v51 }
 0x32d   : > { %v2611_v59 = vpop.f32.mrf.mxu3 }
 0x32e   : > { %1764 = vmatmul.bf16.gmra.mxu1 %v6647_v10  ;;  %3325 = vmatmul.bf16.vlgmr.msrb.gmra.mxu0 %v3185_v7  ;;  %v2612_v25 = vadd.f32 %v2611_v59, %v6435_v6  ;;  %v6836_v11 = vpop.f32.mrf.mxu2  ;;  %v2015_v38 = vmax.f32 %v1726_v40, 0.0  ;;  %v6846_v40 = vpop.f32.mrf.mxu0 }
 0x330   : > { %v2931_v4 = vadd.f32 %v6816_v21, %v2612_v25 }
 0x332   : > { %v3059_v51 = vmax.f32 %v2931_v4, 0.0 }
 0x333   : > { %v1727_v14 = vpop.f32.mrf.mxu1 }
 0x334   : > { %v1728_v22 = vadd.f32 %v6619_v16, %v1727_v14 }
 0x335   : > { %v2613_v46 = vpop.f32.mrf.mxu3 }
 0x336   : > { %v2016_v39 = vmax.f32 %v1728_v22, 0.0  ;;  %v2614_v60 = vadd.f32 %v2613_v46, %v6445_v50  ;;  %v6841_v59 = vpop.f32.mrf.mxu2  ;;  %5105 = vmatmul.msk.bf16.gmra.mxu2 %vm884_vm0, %v6721_v34 }
 0x338   : > { %v2932_v7 = vadd.f32 %v6816_v21, %v2614_v60  ;;  %v2133_v10 = vpack.c.bf16 %v2016_v39, %v2015_v38 }
 0x33a   : > { %v3060_v8 = vmax.f32 %v2932_v7, 0.0  ;;  %2655 = vmatmul.bf16.gmra.mxu3 %v2133_v10  ;;  %v6856_v10 = vpop.f32.mrf.mxu0 }
 0x33b   : > { %v1730_v6 = vpop.f32.mrf.mxu1 }
 0x33c   : > { %v3186_v36 = vpack.c.bf16 %v3060_v8, %v3059_v51  ;;  %v1731_v50 = vadd.f32 %v6619_v16, %v1730_v6 }
 0x33d   : > { %v2616_v13 = vpop.f32.mrf.mxu3 }
 0x33e   : > { %1769 = vmatmul.bf16.gmra.mxu1 %v6669_v48  ;;  %3330 = vmatmul.bf16.gmra.mxu0 %v3186_v36  ;;  %v2617_v25 = vadd.f32 %v2616_v13, %v6461_v42  ;;  %v6851_v38 = vpop.f32.mrf.mxu2  ;;  %v2017_v4 = vmax.f32 %v1731_v50, 0.0 }
 0x340   : > { %v2933_v39 = vadd.f32 %v6816_v21, %v2617_v25 }
 0x342   : > { %v3061_v51 = vmax.f32 %v2933_v39, 0.0  ;;  %v6865_v25 = vpop.f32.mrf.mxu0 }
 0x343   : > { %v1732_v14 = vpop.f32.mrf.mxu1 }
 0x344   : > { %v1733_v22 = vadd.f32 %v6619_v16, %v1732_v14 }
 0x345   : > { %v2618_v46 = vpop.f32.mrf.mxu3 }
 0x346   : > { %v2018_v60 = vmax.f32 %v1733_v22, 0.0  ;;  %v2619_v34 = vadd.f32 %v2618_v46, %v6474_v49  ;;  %v6858_v13 = vpop.f32.mrf.mxu2  ;;  %5106 = vmatmul.msk.bf16.gmra.mxu2 %vm884_vm0, %v6746_v15  ;;  %v1192_v22 = vadd.f32 %v6505_v18, %v6692_v52  ;;  %v1194_v46 = vadd.f32 %v6505_v18, %v6704_v23  ;;  %v5332_v23 = vld [vmem:[%s8137_s10] sm:$0xff] }
 0x347   : > { %3913 = vmatpush.bf16.msrb.mxu2 %v5332_v23 }
 0x348   : > { %v2934_v48 = vadd.f32 %v6816_v21, %v2619_v34  ;;  %v2134_v7 = vpack.c.bf16 %v2018_v60, %v2017_v4 }
 0x34a   : > { %v3062_v8 = vmax.f32 %v2934_v48, 0.0  ;;  %2660 = vmatmul.bf16.gmra.mxu3 %v2134_v7  ;;  %v1448_v48 = vmax.f32 %v1192_v22, 0.0  ;;  %v1449_v7 = vmax.f32 %v1194_v46, 0.0 }
 0x34b   : > { %v1735_v42 = vpop.f32.mrf.mxu1 }
 0x34c   : > { %v3187_v6 = vpack.c.bf16 %v3062_v8, %v3061_v51  ;;  %v1736_v49 = vadd.f32 %v6619_v16, %v1735_v42 }
 0x34d   : > { %v2621_v36 = vpop.f32.mrf.mxu3 }
 0x34e   : > { %1774 = vmatmul.bf16.gmra.mxu1 %v6689_v54  ;;  %3335 = vmatmul.bf16.gmra.mxu0 %v3187_v6  ;;  %v2622_v50 = vadd.f32 %v2621_v36, %v6490_v0  ;;  %v6872_v15 = vpop.f32.mrf.mxu2  ;;  %v2019_v54 = vmax.f32 %v1736_v49, 0.0  ;;  %v1555_v36 = vpack.c.bf16 %v1449_v7, %v1448_v48 }
 0x350   : > { %v2935_v60 = vadd.f32 %v6816_v21, %v2622_v50 }
 0x352   : > { %v3063_v52 = vmax.f32 %v2935_v60, 0.0 }
 0x353   : > { %v1737_v14 = vpop.f32.mrf.mxu1 }
 0x354   : > { %v1738_v4 = vadd.f32 %v6619_v16, %v1737_v14  ;;  %v6880_v14 = vpop.f32.mrf.mxu0 }
 0x355   : > { %v2623_v39 = vpop.f32.mrf.mxu3 }
 0x356   : > { %v2020_v34 = vmax.f32 %v1738_v4, 0.0  ;;  %v2624_v0 = vadd.f32 %v2623_v39, %v6508_v29  ;;  %v6882_v29 = vpop.f32.mrf.mxu2  ;;  %v1197_v39 = vadd.f32 %v6505_v18, %v6717_v5 }
 0x358   : > { %v2936_v51 = vadd.f32 %v6816_v21, %v2624_v0  ;;  %v2135_v8 = vpack.c.bf16 %v2020_v34, %v2019_v54  ;;  %v1199_v54 = vadd.f32 %v6505_v18, %v6732_v56 }
 0x35a   : > { %v3064_v42 = vmax.f32 %v2936_v51, 0.0  ;;  %2665 = vmatmul.bf16.gmra.mxu3 %v2135_v8 }
 0x35b   : > { %v1740_v6 = vpop.f32.mrf.mxu1 }
 0x35c   : > { %v3188_v49 = vpack.c.bf16 %v3064_v42, %v3063_v52  ;;  %v1741_v22 = vadd.f32 %v6619_v16, %v1740_v6  ;;  %v6895_v52 = vpop.f32.mrf.mxu0  ;;  %v1451_v42 = vmax.f32 %v1199_v54, 0.0 }
 0x35d   : > { %v2626_v50 = vpop.f32.mrf.mxu3 }
 0x35e   : > { %1779 = vmatmul.bf16.gmra.mxu1 %v1555_v36  ;;  %3340 = vmatmul.bf16.gmra.mxu0 %v3188_v49  ;;  %v2627_v46 = vadd.f32 %v2626_v50, %v6524_v55  ;;  %v6891_v0 = vpop.f32.mrf.mxu2  ;;  %v2021_v48 = vmax.f32 %v1741_v22, 0.0  ;;  %v1450_v55 = vmax.f32 %v1197_v39, 0.0 }
 0x360   : > { %v2937_v7 = vadd.f32 %v6816_v21, %v2627_v46  ;;  %v1556_v49 = vpack.c.bf16 %v1451_v42, %v1450_v55 }
 0x362   : > { %v3065_v6 = vmax.f32 %v2937_v7, 0.0 }
 0x363   : > { %v1742_v4 = vpop.f32.mrf.mxu1 }
 0x364   : > { %v1743_v60 = vadd.f32 %v6619_v16, %v1742_v4  ;;  %v6900_v46 = vpop.f32.mrf.mxu0 }
 0x365   : > { %v2628_v34 = vpop.f32.mrf.mxu3 }
 0x366   : > { %v2022_v51 = vmax.f32 %v1743_v60, 0.0  ;;  %v2629_v8 = vadd.f32 %v2628_v34, %v6537_v53  ;;  %v6898_v22 = vpop.f32.mrf.mxu2  ;;  %v1202_v60 = vadd.f32 %v6505_v18, %v6743_v27  ;;  %v1204_v34 = vadd.f32 %v6505_v18, %v6759_v37 }
 0x368   : > { %v2938_v5 = vadd.f32 %v6816_v21, %v2629_v8  ;;  %v2136_v23 = vpack.c.bf16 %v2022_v51, %v2021_v48 }
 0x36a   : > { %v3066_v56 = vmax.f32 %v2938_v5, 0.0  ;;  %2670 = vmatmul.bf16.gmra.mxu3 %v2136_v23  ;;  %v1452_v23 = vmax.f32 %v1202_v60, 0.0 }
 0x36b   : > { %v1745_v36 = vpop.f32.mrf.mxu1 }
 0x36c   : > { %v3189_v50 = vpack.c.bf16 %v3066_v56, %v3065_v6  ;;  %v1746_v53 = vadd.f32 %v6619_v16, %v1745_v36  ;;  %v6914_v37 = vpop.f32.mrf.mxu0 }
 0x36d   : > { %v2631_v4 = vpop.f32.mrf.mxu3 }
 0x36e   : > { %1784 = vmatmul.bf16.gmra.mxu1 %v1556_v49  ;;  %3345 = vmatmul.bf16.gmra.mxu0 %v3189_v50  ;;  %v2632_v39 = vadd.f32 %v2631_v4, %v6553_v41  ;;  %v2023_v51 = vmax.f32 %v1746_v53, 0.0  ;;  %v6911_v5 = vpop.f32.mrf.mxu2  ;;  %v1453_v41 = vmax.f32 %v1204_v34, 0.0  ;;  %v1207_v34 = vadd.f32 %v6505_v18, %v6769_v58 }
 0x370   : > { %v2939_v8 = vadd.f32 %v6816_v21, %v2632_v39  ;;  %v1557_v50 = vpack.c.bf16 %v1453_v41, %v1452_v23 }
 0x372   : > { %v3067_v27 = vmax.f32 %v2939_v8, 0.0 }
 0x373   : > { %v1747_v54 = vpop.f32.mrf.mxu1 }
 0x374   : > { %v1748_v48 = vadd.f32 %v6619_v16, %v1747_v54 }
 0x375   : > { %v2633_v7 = vpop.f32.mrf.mxu3 }
 0x376   : > { %v2024_v55 = vmax.f32 %v1748_v48, 0.0  ;;  %v2634_v42 = vadd.f32 %v2633_v7, %v6563_v30  ;;  %v6916_v39 = vpop.f32.mrf.mxu2  ;;  %v1209_v48 = vadd.f32 %v6505_v18, %v6779_v2 }
 0x378   : > { %v2940_v6 = vadd.f32 %v6816_v21, %v2634_v42  ;;  %v2137_v56 = vpack.c.bf16 %v2024_v55, %v2023_v51  ;;  %v6925_v51 = vpop.f32.mrf.mxu0 }
 0x37a   : > { %v3068_v36 = vmax.f32 %v2940_v6, 0.0  ;;  %2675 = vmatmul.bf16.gmra.mxu3 %v2137_v56  ;;  %v1454_v6 = vmax.f32 %v1207_v34, 0.0  ;;  %v1212_v34 = vadd.f32 %v6505_v18, %v6786_v35 }
 0x37b   : > { %v1750_v49 = vpop.f32.mrf.mxu1 }
 0x37c   : > { %v3190_v4 = vpack.c.bf16 %v3068_v36, %v3067_v27  ;;  %v1751_v30 = vadd.f32 %v6619_v16, %v1750_v49 }
 0x37d   : > { %v2636_v53 = vpop.f32.mrf.mxu3 }
 0x37e   : > { %1789 = vmatmul.bf16.gmra.mxu1 %v1557_v50  ;;  %3350 = vmatmul.bf16.gmra.mxu0 %v3190_v4  ;;  %v2637_v54 = vadd.f32 %v2636_v53, %v6577_v24  ;;  %v2025_v55 = vmax.f32 %v1751_v30, 0.0  ;;  %v1455_v24 = vmax.f32 %v1209_v48, 0.0  ;;  %v6930_v2 = vpop.f32.mrf.mxu2  ;;  %v1214_v48 = vadd.f32 %v6505_v18, %v6799_v43 }
 0x380   : > { %v2941_v42 = vadd.f32 %v6816_v21, %v2637_v54  ;;  %v1558_v50 = vpack.c.bf16 %v1455_v24, %v1454_v6  ;;  %v6932_v30 = vpop.f32.mrf.mxu0  ;;  %v1456_v24 = vmax.f32 %v1212_v34, 0.0  ;;  %v1217_v34 = vadd.f32 %v6505_v18, %v6809_v45 }
 0x382   : > { %v3069_v58 = vmax.f32 %v2941_v42, 0.0 }
 0x383   : > { %v1752_v60 = vpop.f32.mrf.mxu1 }
 0x384   : > { %v1753_v7 = vadd.f32 %v6619_v16, %v1752_v60 }
 0x385   : > { %v2638_v8 = vpop.f32.mrf.mxu3 }
 0x386   : > { %v2026_v23 = vmax.f32 %v1753_v7, 0.0  ;;  %v2639_v41 = vadd.f32 %v2638_v8, %v6585_v61  ;;  %v6941_v8 = vpop.f32.mrf.mxu2 }
 0x388   : > { %v2942_v56 = vadd.f32 %v6816_v21, %v2639_v41  ;;  %v2138_v27 = vpack.c.bf16 %v2026_v23, %v2025_v55  ;;  %v6946_v35 = vpop.f32.mrf.mxu0 }
 0x38a   : > { %v3070_v36 = vmax.f32 %v2942_v56, 0.0  ;;  %2680 = vmatmul.bf16.gmra.mxu3 %v2138_v27 }
 0x38b   : > { %v1755_v49 = vpop.f32.mrf.mxu1 }
 0x38c   : > { %v3191_v4 = vpack.c.bf16 %v3070_v36, %v3069_v58  ;;  %v1756_v61 = vadd.f32 %v6619_v16, %v1755_v49 }
 0x38d   : > { %v2641_v53 = vpop.f32.mrf.mxu3 }
 0x38e   : > { %1794 = vmatmul.bf16.gmra.mxu1 %v1558_v50  ;;  %3355 = vmatmul.bf16.gmra.mxu0 %v3191_v4  ;;  %v2642_v54 = vadd.f32 %v2641_v53, %v6599_v32  ;;  %v2027_v42 = vmax.f32 %v1756_v61, 0.0  ;;  %v1457_v32 = vmax.f32 %v1214_v48, 0.0  ;;  %v6948_v53 = vpop.f32.mrf.mxu2  ;;  %v1219_v48 = vadd.f32 %v6505_v18, %v6824_v20 }
 0x390   : > { %v2943_v23 = vadd.f32 %v6816_v21, %v2642_v54  ;;  %v1559_v49 = vpack.c.bf16 %v1457_v32, %v1456_v24  ;;  %v6952_v54 = vpop.f32.mrf.mxu0  ;;  %v1458_v24 = vmax.f32 %v1217_v34, 0.0 }
 0x392   : > { %v3071_v58 = vmax.f32 %v2943_v23, 0.0 }
 0x393   : > { %v1757_v60 = vpop.f32.mrf.mxu1 }
 0x394   : > { %v1758_v7 = vadd.f32 %v6619_v16, %v1757_v60 }
 0x395   : > { %v2643_v55 = vpop.f32.mrf.mxu3 }
 0x396   : > { %v2028_v41 = vmax.f32 %v1758_v7, 0.0  ;;  %v2644_v6 = vadd.f32 %v2643_v55, %v6612_v26 }
 0x398   : > { %v2944_v56 = vadd.f32 %v6816_v21, %v2644_v6  ;;  %v2139_v27 = vpack.c.bf16 %v2028_v41, %v2027_v42 }
 0x39a   : > { %v3072_v43 = vmax.f32 %v2944_v56, 0.0  ;;  %2685 = vmatmul.bf16.gmra.mxu3 %v2139_v27  ;;  %v6962_v27 = vpop.f32.mrf.mxu2 }
 0x39b   : > { %v1760_v36 = vpop.f32.mrf.mxu1 }
 0x39c   : > { %v3192_v50 = vpack.c.bf16 %v3072_v43, %v3071_v58  ;;  %v1761_v26 = vadd.f32 %v6619_v16, %v1760_v36 }
 0x39d   : > { %v2646_v4 = vpop.f32.mrf.mxu3 }
 0x39e   : > { %1799 = vmatmul.bf16.gmra.mxu1 %v1559_v49  ;;  %3360 = vmatmul.bf16.gmra.mxu0 %v3192_v50  ;;  %v2647_v61 = vadd.f32 %v2646_v4, %v6631_v3  ;;  %v2029_v42 = vmax.f32 %v1761_v26, 0.0  ;;  %v1459_v3 = vmax.f32 %v1219_v48, 0.0  ;;  %v6967_v49 = vld [vmem:[%s8136_s9] ss:$0 sm:$0xff] }
 0x3a0   : > { %v2945_v23 = vadd.f32 %v6816_v21, %v2647_v61  ;;  %v1560_v43 = vpack.c.bf16 %v1459_v3, %v1458_v24 }
 0x3a2   : > { %v3073_v45 = vmax.f32 %v2945_v23, 0.0  ;;  %v6972_v61 = vpop.f32.mrf.mxu2 }
 0x3a3   : > { %v1762_v60 = vpop.f32.mrf.mxu1 }
 0x3a4   : > { %v1763_v7 = vadd.f32 %v6619_v16, %v1762_v60  ;;  %v6977_v60 = vld [vmem:[%s8129_s2] ss:$0 sm:$0xff] }
 0x3a5   : > { %v2648_v55 = vpop.f32.mrf.mxu3  ;;  %v1222_v34 = vadd.f32 %v6977_v60, %v6834_v19 }
 0x3a6   : > { %v2030_v41 = vmax.f32 %v1763_v7, 0.0  ;;  %v2649_v6 = vadd.f32 %v2648_v55, %v6642_v12  ;;  %v1224_v55 = vadd.f32 %v6977_v60, %v6846_v40 }
 0x3a8   : > { %v2946_v32 = vadd.f32 %v6816_v21, %v2649_v6  ;;  %v2140_v56 = vpack.c.bf16 %v2030_v41, %v2029_v42  ;;  %v1461_v19 = vmax.f32 %v1224_v55, 0.0  ;;  %v1227_v55 = vadd.f32 %v6977_v60, %v6856_v10 }
 0x3aa   : > { %v3074_v58 = vmax.f32 %v2946_v32, 0.0  ;;  %2690 = vmatmul.bf16.gmra.mxu3 %v2140_v56  ;;  %v1462_v10 = vmax.f32 %v1227_v55, 0.0 }
 0x3ab   : > { %v1765_v18 = vpop.f32.mrf.mxu1  ;;  %v3326_v20 = vpop.f32.mrf.mxu0 }
 0x3ac   : > { %v3193_v36 = vpack.c.bf16 %v3074_v58, %v3073_v45  ;;  %v1766_v50 = vadd.f32 %v6619_v16, %v1765_v18  ;;  %v3327_v4 = vadd.f32 %v6967_v49, %v3326_v20  ;;  %v1460_v45 = vmax.f32 %v1222_v34, 0.0 }
 0x3ad   : > { %v2651_v12 = vpop.f32.mrf.mxu3 }
 0x3ae   : > { %1804 = vmatmul.bf16.gmra.mxu1 %v1560_v43  ;;  %3365 = vmatmul.bf16.gmra.mxu0 %v3193_v36  ;;  %v2652_v26 = vadd.f32 %v2651_v12, %v6654_v57  ;;  %v2031_v57 = vmax.f32 %v1766_v50, 0.0  ;;  %v3646_v41 = vmax.f32 %v3327_v4, 0.0  ;;  %v1561_v50 = vpack.c.bf16 %v1461_v19, %v1460_v45 }
 0x3b0   : > { %v2947_v24 = vadd.f32 %v6816_v21, %v2652_v26 }
 0x3b2   : > { %v3075_v40 = vmax.f32 %v2947_v24, 0.0 }
 0x3b3   : > { %v1767_v48 = vpop.f32.mrf.mxu1  ;;  %v3328_v7 = vpop.f32.mrf.mxu0 }
 0x3b4   : > { %v1768_v42 = vadd.f32 %v6619_v16, %v1767_v48  ;;  %v3329_v23 = vadd.f32 %v6967_v49, %v3328_v7  ;;  %v6988_v48 = vpop.f32.mrf.mxu2 }
 0x3b5   : > { %v2653_v6 = vpop.f32.mrf.mxu3 }
 0x3b6   : > { %v2032_v3 = vmax.f32 %v1768_v42, 0.0  ;;  %v3647_v32 = vmax.f32 %v3329_v23, 0.0  ;;  %v2654_v56 = vadd.f32 %v2653_v6, %v6662_v1 }
 0x3b8   : > { %v3774_v58 = vpack.c.bf16 %v3647_v32, %v3646_v41  ;;  %v2948_v18 = vadd.f32 %v6816_v21, %v2654_v56  ;;  %v2141_v20 = vpack.c.bf16 %v2032_v3, %v2031_v57  ;;  %v1229_v57 = vadd.f32 %v6977_v60, %v6865_v25 }
 0x3ba   : > { %v3076_v43 = vmax.f32 %v2948_v18, 0.0  ;;  %2695 = vmatmul.bf16.gmra.mxu3 %v2141_v20  ;;  %3914 = vmatmul.bf16.vlgmr.msrb.gmra.mxu2 %v3774_v58  ;;  %v1463_v18 = vmax.f32 %v1229_v57, 0.0 }
 0x3bb   : > { %v1770_v36 = vpop.f32.mrf.mxu1  ;;  %v3331_v12 = vpop.f32.mrf.mxu0 }
 0x3bc   : > { %v3194_v4 = vpack.c.bf16 %v3076_v43, %v3075_v40  ;;  %v1771_v1 = vadd.f32 %v6619_v16, %v1770_v36  ;;  %v3332_v34 = vadd.f32 %v6967_v49, %v3331_v12  ;;  %v7001_v58 = vpop.f32.mrf.mxu2 }
 0x3bd   : > { %v2656_v26 = vpop.f32.mrf.mxu3 }
 0x3be   : > { %1809 = vmatmul.bf16.gmra.mxu1 %v1561_v50  ;;  %3370 = vmatmul.bf16.gmra.mxu0 %v3194_v4  ;;  %v2657_v7 = vadd.f32 %v2656_v26, %v6676_v17  ;;  %v2033_v24 = vmax.f32 %v1771_v1, 0.0  ;;  %v3648_v3 = vmax.f32 %v3332_v34, 0.0  ;;  %v1562_v4 = vpack.c.bf16 %v1463_v18, %v1462_v10 }
 0x3c0   : > { %v2949_v56 = vadd.f32 %v6816_v21, %v2657_v7 }
 0x3c2   : > { %v3077_v43 = vmax.f32 %v2949_v56, 0.0 }
 0x3c3   : > { %v1772_v42 = vpop.f32.mrf.mxu1  ;;  %v3333_v23 = vpop.f32.mrf.mxu0 }
 0x3c4   : > { %v1773_v41 = vadd.f32 %v6619_v16, %v1772_v42  ;;  %v3334_v6 = vadd.f32 %v6967_v49, %v3333_v23  ;;  %v1232_v42 = vadd.f32 %v6977_v60, %v6880_v14 }
 0x3c5   : > { %v2658_v32 = vpop.f32.mrf.mxu3 }
 0x3c6   : > { %v2034_v45 = vmax.f32 %v1773_v41, 0.0  ;;  %v3649_v19 = vmax.f32 %v3334_v6, 0.0  ;;  %v2659_v17 = vadd.f32 %v2658_v32, %v6684_v9  ;;  %v7004_v9 = vpop.f32.mrf.mxu2  ;;  %v1234_v41 = vadd.f32 %v6977_v60, %v6895_v52 }
 0x3c7   : > { %v1464_v10 = vmax.f32 %v1232_v42, 0.0 }
 0x3c8   : > { %v2950_v20 = vadd.f32 %v6816_v21, %v2659_v17  ;;  %v2142_v25 = vpack.c.bf16 %v2034_v45, %v2033_v24  ;;  %v3775_v40 = vpack.c.bf16 %v3649_v19, %v3648_v3  ;;  %v1465_v14 = vmax.f32 %v1234_v41, 0.0 }
 0x3ca   : > { %v3078_v36 = vmax.f32 %v2950_v20, 0.0  ;;  %2700 = vmatmul.bf16.gmra.mxu3 %v2142_v25  ;;  %3919 = vmatmul.bf16.gmra.mxu2 %v3775_v40 }
 0x3cb   : > { %v1775_v12 = vpop.f32.mrf.mxu1  ;;  %v3336_v50 = vpop.f32.mrf.mxu0 }
 0x3cc   : > { %v3195_v26 = vpack.c.bf16 %v3078_v36, %v3077_v43  ;;  %v1776_v34 = vadd.f32 %v6619_v16, %v1775_v12  ;;  %v3337_v7 = vadd.f32 %v6967_v49, %v3336_v50  ;;  %v1563_v12 = vpack.c.bf16 %v1465_v14, %v1464_v10 }
 0x3cd   : > { %v2661_v1 = vpop.f32.mrf.mxu3 }
 0x3ce   : > { %1814 = vmatmul.bf16.gmra.mxu1 %v1562_v4  ;;  %3375 = vmatmul.bf16.gmra.mxu0 %v3195_v26  ;;  %v2662_v55 = vadd.f32 %v2661_v1, %v6700_v31  ;;  %v2035_v3 = vmax.f32 %v1776_v34, 0.0  ;;  %v3650_v32 = vmax.f32 %v3337_v7, 0.0  ;;  %v1237_v7 = vadd.f32 %v6977_v60, %v6900_v46 }
 0x3d0   : > { %v2951_v45 = vadd.f32 %v6816_v21, %v2662_v55 }
 0x3d2   : > { %v3079_v52 = vmax.f32 %v2951_v45, 0.0 }
 0x3d3   : > { %v1777_v23 = vpop.f32.mrf.mxu1  ;;  %v3338_v57 = vpop.f32.mrf.mxu0 }
 0x3d4   : > { %v1778_v6 = vadd.f32 %v6619_v16, %v1777_v23  ;;  %v3339_v24 = vadd.f32 %v6967_v49, %v3338_v57  ;;  %v7018_v16 = vpop.f32.mrf.mxu2  ;;  %v1239_v23 = vadd.f32 %v6977_v60, %v6914_v37 }
 0x3d5   : > { %v2663_v56 = vpop.f32.mrf.mxu3 }
 0x3d6   : > { %v2036_v19 = vmax.f32 %v1778_v6, 0.0  ;;  %v3651_v17 = vmax.f32 %v3339_v24, 0.0  ;;  %v2664_v31 = vadd.f32 %v2663_v56, %v6706_v63  ;;  %v7023_v63 = vld [vmem:[%s8131_s4] ss:$0 sm:$0xff] }
 0x3d8   : > { %v2952_v18 = vadd.f32 %v6816_v21, %v2664_v31  ;;  %v2143_v20 = vpack.c.bf16 %v2036_v19, %v2035_v3  ;;  %v3776_v25 = vpack.c.bf16 %v3651_v17, %v3650_v32  ;;  %v1466_v19 = vmax.f32 %v1237_v7, 0.0 }
 0x3d9   : > { %v1467_v17 = vmax.f32 %v1239_v23, 0.0 }
 0x3da   : > { %v3080_v40 = vmax.f32 %v2952_v18, 0.0  ;;  %2705 = vmatmul.bf16.gmra.mxu3 %v2143_v20  ;;  %3924 = vmatmul.bf16.gmra.mxu2 %v3776_v25 }
 0x3db   : > { %v1780_v43 = vpop.f32.mrf.mxu1  ;;  %v3341_v36 = vpop.f32.mrf.mxu0 }
 0x3dc   : > { %v3196_v50 = vpack.c.bf16 %v3080_v40, %v3079_v52  ;;  %v1781_v26 = vadd.f32 %v7023_v63, %v1780_v43  ;;  %v3342_v1 = vadd.f32 %v6967_v49, %v3341_v36  ;;  %v7034_v6 = vpop.f32.mrf.mxu2  ;;  %v1564_v52 = vpack.c.bf16 %v1467_v17, %v1466_v19 }
 0x3dd   : > { %v2666_v4 = vpop.f32.mrf.mxu3 }
 0x3de   : > { %1819 = vmatmul.bf16.gmra.mxu1 %v1563_v12  ;;  %3380 = vmatmul.bf16.gmra.mxu0 %v3196_v50  ;;  %v2667_v34 = vadd.f32 %v2666_v4, %v6723_v62  ;;  %v2037_v24 = vmax.f32 %v1781_v26, 0.0  ;;  %v3652_v3 = vmax.f32 %v3342_v1, 0.0  ;;  %v1242_v4 = vadd.f32 %v6977_v60, %v6925_v51 }
 0x3e0   : > { %v2953_v56 = vadd.f32 %v6816_v21, %v2667_v34  ;;  %v1244_v34 = vadd.f32 %v6977_v60, %v6932_v30 }
 0x3e2   : > { %v3081_v14 = vmax.f32 %v2953_v56, 0.0  ;;  %v1468_v56 = vmax.f32 %v1242_v4, 0.0  ;;  %v1469_v51 = vmax.f32 %v1244_v34, 0.0  ;;  %v1249_v4 = vadd.f32 %v6977_v60, %v6952_v54 }
 0x3e3   : > { %v1782_v55 = vpop.f32.mrf.mxu1  ;;  %v3343_v42 = vpop.f32.mrf.mxu0 }
 0x3e4   : > { %v1783_v57 = vadd.f32 %v7023_v63, %v1782_v55  ;;  %v3344_v41 = vadd.f32 %v6967_v49, %v3343_v42  ;;  %v7039_v36 = vpop.f32.mrf.mxu2 }
 0x3e5   : > { %v2668_v32 = vpop.f32.mrf.mxu3 }
 0x3e6   : > { %v2038_v62 = vmax.f32 %v1783_v57, 0.0  ;;  %v3653_v45 = vmax.f32 %v3344_v41, 0.0  ;;  %v2669_v46 = vadd.f32 %v2668_v32, %v6734_v44 }
 0x3e8   : > { %v2954_v31 = vadd.f32 %v6816_v21, %v2669_v46  ;;  %v2144_v37 = vpack.c.bf16 %v2038_v62, %v2037_v24  ;;  %v3777_v10 = vpack.c.bf16 %v3653_v45, %v3652_v3 }
 0x3ea   : > { %v3082_v18 = vmax.f32 %v2954_v31, 0.0  ;;  %2710 = vmatmul.bf16.gmra.mxu3 %v2144_v37  ;;  %3929 = vmatmul.bf16.gmra.mxu2 %v3777_v10  ;;  %v1565_v10 = vpack.c.bf16 %v1469_v51, %v1468_v56 }
 0x3eb   : > { %v1785_v20 = vpop.f32.mrf.mxu1  ;;  %v3346_v25 = vpop.f32.mrf.mxu0 }
 0x3ec   : > { %v3197_v40 = vpack.c.bf16 %v3082_v18, %v3081_v14  ;;  %v1786_v44 = vadd.f32 %v7023_v63, %v1785_v20  ;;  %v3347_v12 = vadd.f32 %v6967_v49, %v3346_v25  ;;  %v7053_v30 = vpop.f32.mrf.mxu2 }
 0x3ed   : > { %v2671_v43 = vpop.f32.mrf.mxu3 }
 0x3ee   : > { %1824 = vmatmul.bf16.gmra.mxu1 %v1564_v52  ;;  %3385 = vmatmul.bf16.gmra.mxu0 %v3197_v40  ;;  %v2672_v50 = vadd.f32 %v2671_v43, %v6748_v47  ;;  %v2039_v42 = vmax.f32 %v1786_v44, 0.0  ;;  %v3654_v23 = vmax.f32 %v3347_v12, 0.0  ;;  %v8247_v47 = vld [vmem:[#allocation97_spill] sm:$0xff]  ;;  %v8248_v52 = vld [vmem:[#allocation98_spill] sm:$0xff]  ;;  %v1247_v44 = vadd.f32 %v6977_v60, %v6946_v35 }
 0x3ef   : > { %v1471_v35 = vmax.f32 %v1249_v4, 0.0 }
 0x3f0   : > { %v2955_v41 = vadd.f32 %v6816_v21, %v2672_v50 }
 0x3f2   : > { %v3083_v19 = vmax.f32 %v2955_v41, 0.0  ;;  %v8249_v41 = vld [vmem:[#allocation100_spill] sm:$0xff] }
 0x3f3   : > { %v1787_v26 = vpop.f32.mrf.mxu1  ;;  %v3348_v1 = vpop.f32.mrf.mxu0 }
 0x3f4   : > { %v1788_v7 = vadd.f32 %v7023_v63, %v1787_v26  ;;  %v3349_v55 = vadd.f32 %v6967_v49, %v3348_v1  ;;  %v7058_v43 = vpop.f32.mrf.mxu2 }
 0x3f5   : > { %v2673_v57 = vpop.f32.mrf.mxu3 }
 0x3f6   : > { %v2040_v24 = vmax.f32 %v1788_v7, 0.0  ;;  %v3655_v3 = vmax.f32 %v3349_v55, 0.0  ;;  %v2674_v32 = vadd.f32 %v2673_v57, %v8247_v47 }
 0x3f8   : > { %v2956_v62 = vadd.f32 %v6816_v21, %v2674_v32  ;;  %v2145_v45 = vpack.c.bf16 %v2040_v24, %v2039_v42  ;;  %v3778_v46 = vpack.c.bf16 %v3655_v3, %v3654_v23  ;;  %v1470_v3 = vmax.f32 %v1247_v44, 0.0 }
 0x3fa   : > { %v3084_v17 = vmax.f32 %v2956_v62, 0.0  ;;  %2715 = vmatmul.bf16.gmra.mxu3 %v2145_v45  ;;  %3934 = vmatmul.bf16.gmra.mxu2 %v3778_v46  ;;  %v1566_v46 = vpack.c.bf16 %v1471_v35, %v1470_v3 }
 0x3fb   : > { %v1790_v31 = vpop.f32.mrf.mxu1  ;;  %v3351_v37 = vpop.f32.mrf.mxu0 }
 0x3fc   : > { %v3198_v14 = vpack.c.bf16 %v3084_v17, %v3083_v19  ;;  %v1791_v20 = vadd.f32 %v7023_v63, %v1790_v31  ;;  %v3352_v25 = vadd.f32 %v6967_v49, %v3351_v37  ;;  %v7069_v45 = vpop.f32.mrf.mxu2 }
 0x3fd   : > { %v2676_v18 = vpop.f32.mrf.mxu3 }
 0x3fe   : > { %1829 = vmatmul.bf16.gmra.mxu1 %v1565_v10  ;;  %3390 = vmatmul.bf16.gmra.mxu0 %v3198_v14  ;;  %v2677_v40 = vadd.f32 %v2676_v18, %v8248_v52  ;;  %v2041_v34 = vmax.f32 %v1791_v20, 0.0  ;;  %v3656_v7 = vmax.f32 %v3352_v25, 0.0  ;;  %v8250_v10 = vld [vmem:[#allocation102_spill] sm:$0xff] }
 0x400   : > { %v2957_v42 = vadd.f32 %v6816_v21, %v2677_v40 }
 0x402   : > { %v3085_v54 = vmax.f32 %v2957_v42, 0.0 }
 0x403   : > { %v1792_v12 = vpop.f32.mrf.mxu1  ;;  %v3353_v50 = vpop.f32.mrf.mxu0 }
 0x404   : > { %v1793_v26 = vadd.f32 %v7023_v63, %v1792_v12  ;;  %v3354_v1 = vadd.f32 %v6967_v49, %v3353_v50 }
 0x405   : > { %v2678_v55 = vpop.f32.mrf.mxu3 }
 0x406   : > { %v2042_v23 = vmax.f32 %v1793_v26, 0.0  ;;  %v3657_v57 = vmax.f32 %v3354_v1, 0.0  ;;  %v2679_v24 = vadd.f32 %v2678_v55, %v8249_v41  ;;  %v7077_v1 = vpop.f32.mrf.mxu2 }
 0x408   : > { %v2958_v47 = vadd.f32 %v6816_v21, %v2679_v24  ;;  %v2146_v32 = vpack.c.bf16 %v2042_v23, %v2041_v34  ;;  %v3779_v56 = vpack.c.bf16 %v3657_v57, %v3656_v7  ;;  %v8251_v34 = vld [vmem:[#allocation104_spill] sm:$0xff] }
 0x40a   : > { %v3086_v60 = vmax.f32 %v2958_v47, 0.0  ;;  %2720 = vmatmul.bf16.gmra.mxu3 %v2146_v32  ;;  %3939 = vmatmul.bf16.gmra.mxu2 %v3779_v56  ;;  %v8252_v32 = vld [vmem:[#allocation6_spill] sm:$0xff] }
 0x40b   : > { %v1795_v51 = vpop.f32.mrf.mxu1  ;;  %v3356_v62 = vpop.f32.mrf.mxu0 }
 0x40c   : > { %v3199_v19 = vpack.c.bf16 %v3086_v60, %v3085_v54  ;;  %v1796_v31 = vadd.f32 %v7023_v63, %v1795_v51  ;;  %v3357_v37 = vadd.f32 %v6967_v49, %v3356_v62  ;;  %v8253_v51 = vld [vmem:[#allocation106_spill] sm:$0xff] }
 0x40d   : > { %v2681_v17 = vpop.f32.mrf.mxu3 }
 0x40e   : > { %1834 = vmatmul.bf16.gmra.mxu1 %v1566_v46  ;;  %3395 = vmatmul.bf16.gmra.mxu0 %v3199_v19  ;;  %v2682_v14 = vadd.f32 %v2681_v17, %v8250_v10  ;;  %v2043_v40 = vmax.f32 %v1796_v31, 0.0  ;;  %v3658_v44 = vmax.f32 %v3357_v37, 0.0  ;;  %v7082_v56 = vpop.f32.mrf.mxu2 }
 0x410   : > { %v2959_v50 = vadd.f32 %v6816_v21, %v2682_v14 }
 0x412   : > { %v3087_v57 = vmax.f32 %v2959_v50, 0.0 }
 0x413   : > { %v1797_v18 = vpop.f32.mrf.mxu1  ;;  %v3358_v20 = vpop.f32.mrf.mxu0 }
 0x414   : > { %v1798_v25 = vadd.f32 %v7023_v63, %v1797_v18  ;;  %v3359_v52 = vadd.f32 %v6967_v49, %v3358_v20 }
 0x415   : > { %v2683_v12 = vpop.f32.mrf.mxu3 }
 0x416   : > { %v2044_v4 = vmax.f32 %v1798_v25, 0.0  ;;  %v3659_v26 = vmax.f32 %v3359_v52, 0.0  ;;  %v2684_v7 = vadd.f32 %v2683_v12, %v8251_v34  ;;  %v8254_v52 = vld [vmem:[#allocation107_spill] sm:$0xff] }
 0x418   : > { %v2960_v55 = vadd.f32 %v6816_v21, %v2684_v7  ;;  %v2147_v42 = vpack.c.bf16 %v2044_v4, %v2043_v40  ;;  %v3780_v23 = vpack.c.bf16 %v3659_v26, %v3658_v44  ;;  %v7092_v26 = vpop.f32.mrf.mxu2 }
 0x41a   : > { %v3088_v41 = vmax.f32 %v2960_v55, 0.0  ;;  %2725 = vmatmul.bf16.gmra.mxu3 %v2147_v42  ;;  %3944 = vmatmul.bf16.gmra.mxu2 %v3780_v23 }
 0x41b   : > { %v1800_v24 = vpop.f32.mrf.mxu1  ;;  %v3361_v3 = vpop.f32.mrf.mxu0 }
 0x41c   : > { %v3200_v35 = vpack.c.bf16 %v3088_v41, %v3087_v57  ;;  %v1801_v54 = vadd.f32 %v7023_v63, %v1800_v24  ;;  %v3362_v60 = vadd.f32 %v6967_v49, %v3361_v3  ;;  %v8255_v57 = vld [vmem:[#allocation7_spill] sm:$0xff] }
 0x41d   : > { %v2686_v47 = vpop.f32.mrf.mxu3 }
 0x41e   : > { %1839 = vmatmul.bf16.gmra.mxu1 %v8252_v32  ;;  %3400 = vmatmul.bf16.gmra.mxu0 %v3200_v35  ;;  %v2687_v62 = vadd.f32 %v2686_v47, %v8253_v51  ;;  %v2045_v37 = vmax.f32 %v1801_v54, 0.0  ;;  %v3660_v10 = vmax.f32 %v3362_v60, 0.0 }
 0x420   : > { %v2961_v18 = vadd.f32 %v6816_v21, %v2687_v62  ;;  %v7100_v62 = vpop.f32.mrf.mxu2 }
 0x422   : > { %v3089_v4 = vmax.f32 %v2961_v18, 0.0 }
 0x423   : > { %v1802_v46 = vpop.f32.mrf.mxu1  ;;  %v3363_v19 = vpop.f32.mrf.mxu0 }
 0x424   : > { %v1803_v17 = vadd.f32 %v7023_v63, %v1802_v46  ;;  %v3364_v31 = vadd.f32 %v6967_v49, %v3363_v19 }
 0x425   : > { %v2688_v14 = vpop.f32.mrf.mxu3 }
 0x426   : > { %v2046_v20 = vmax.f32 %v1803_v17, 0.0  ;;  %v3661_v25 = vmax.f32 %v3364_v31, 0.0  ;;  %v2689_v40 = vadd.f32 %v2688_v14, %v8254_v52 }
 0x428   : > { %v2962_v44 = vadd.f32 %v6816_v21, %v2689_v40  ;;  %v2148_v12 = vpack.c.bf16 %v2046_v20, %v2045_v37  ;;  %v3781_v50 = vpack.c.bf16 %v3661_v25, %v3660_v10  ;;  %v7108_v25 = vld [vmem:[%s8138_s11] ss:$0 sm:$0xff] }
 0x42a   : > { %v3090_v34 = vmax.f32 %v2962_v44, 0.0  ;;  %2730 = vmatmul.bf16.gmra.mxu3 %v2148_v12  ;;  %3949 = vmatmul.bf16.gmra.mxu2 %v3781_v50  ;;  %v4235_v44 = vlaneseq }
 0x42b   : > { %v1805_v7 = vpop.f32.mrf.mxu1  ;;  %v3366_v55 = vpop.f32.mrf.mxu0 }
 0x42c   : > { %v3201_v42 = vpack.c.bf16 %v3090_v34, %v3089_v4  ;;  %v1806_v41 = vadd.f32 %v7023_v63, %v1805_v7  ;;  %v3367_v24 = vadd.f32 %v6967_v49, %v3366_v55  ;;  %v8256_v4 = vld [vmem:[#allocation8_spill] sm:$0xff]  ;;  %v7113_v34 = vand.u32 127, %v4235_v44 }
 0x42d   : > { %v2691_v23 = vpop.f32.mrf.mxu3 }
 0x42e   : > { %1844 = vmatmul.bf16.gmra.mxu1 %v8255_v57  ;;  %3405 = vmatmul.bf16.gmra.mxu0 %v3201_v42  ;;  %v2692_v3 = vadd.f32 %v2691_v23, %v6819_v33  ;;  %v2047_v60 = vmax.f32 %v1806_v41, 0.0  ;;  %v3662_v51 = vmax.f32 %v3367_v24, 0.0  ;;  %vm4237_vm1 = vcmp.eq.s32.totalorder %v7113_v34, 0 }
 0x430   : > { %v2963_v19 = vadd.f32 %v6816_v21, %v2692_v3 }
 0x432   : > { %v3091_v18 = vmax.f32 %v2963_v19, 0.0 }
 0x433   : > { %v1807_v35 = vpop.f32.mrf.mxu1  ;;  %v3368_v47 = vpop.f32.mrf.mxu0 }
 0x434   : > { %v1808_v32 = vadd.f32 %v7023_v63, %v1807_v35  ;;  %v3369_v54 = vadd.f32 %v6967_v49, %v3368_v47  ;;  %v7126_v47 = vld [vmem:[%s8134_s7] ss:$0 sm:$0xff] }
 0x435   : > { %v2693_v46 = vpop.f32.mrf.mxu3 }
 0x436   : > { %v2048_v17 = vmax.f32 %v1808_v32, 0.0  ;;  %v3663_v31 = vmax.f32 %v3369_v54, 0.0  ;;  %v2694_v37 = vadd.f32 %v2693_v46, %v6826_v28 }
 0x438   : > { %v2964_v10 = vadd.f32 %v6816_v21, %v2694_v37  ;;  %v2149_v33 = vpack.c.bf16 %v2048_v17, %v2047_v60  ;;  %v3782_v14 = vpack.c.bf16 %v3663_v31, %v3662_v51 }
 0x43a   : > { %v3092_v20 = vmax.f32 %v2964_v10, 0.0  ;;  %2735 = vmatmul.bf16.gmra.mxu3 %v2149_v33  ;;  %3954 = vmatmul.bf16.gmra.mxu2 %v3782_v14 }
 0x43b   : > { %v1810_v52 = vpop.f32.mrf.mxu1  ;;  %v3371_v40 = vpop.f32.mrf.mxu0 }
 0x43c   : > { %v3202_v12 = vpack.c.bf16 %v3092_v20, %v3091_v18  ;;  %v1811_v7 = vadd.f32 %v7023_v63, %v1810_v52  ;;  %v3372_v55 = vadd.f32 %v6967_v49, %v3371_v40 }
 0x43d   : > { %v2696_v28 = vpop.f32.mrf.mxu3  ;;  %v3915_v50 = vpop.f32.mrf.mxu2 }
 0x43e   : > { %v3916_v21 = vadd.f32 %v7108_v25, %v3915_v50  ;;  %1849 = vmatmul.bf16.gmra.mxu1 %v8256_v4  ;;  %3410 = vmatmul.bf16.gmra.mxu0 %v3202_v12  ;;  %v2697_v42 = vadd.f32 %v2696_v28, %v6836_v11  ;;  %v2049_v3 = vmax.f32 %v1811_v7, 0.0  ;;  %v3664_v35 = vmax.f32 %v3372_v55, 0.0  ;;  %v8257_v50 = vld [vmem:[#allocation9_spill] sm:$0xff] }
 0x440   : > { %5399 = vtanh.f32 %v3916_v21  ;;  %v2965_v32 = vadd.f32 %v7126_v47, %v2697_v42 }
 0x442   : > { %v3093_v14 = vmax.f32 %v2965_v32, 0.0 }
 0x443   : > { %v1812_v23 = vpop.f32.mrf.mxu1  ;;  %v3373_v57 = vpop.f32.mrf.mxu0 }
 0x444   : > { %v1813_v41 = vadd.f32 %v7023_v63, %v1812_v23  ;;  %v3374_v24 = vadd.f32 %v6967_v49, %v3373_v57 }
 0x445   : > { %v2698_v11 = vpop.f32.mrf.mxu3  ;;  %v3917_v54 = vpop.f32.mrf.mxu2 }
 0x446   : > { %v5400_v60 = vpop.eup %5399  ;;  %v2050_v51 = vmax.f32 %v1813_v41, 0.0  ;;  %v3665_v46 = vmax.f32 %v3374_v24, 0.0  ;;  %v2699_v19 = vadd.f32 %v2698_v11, %v6841_v59  ;;  %v3918_v17 = vadd.f32 %v7108_v25, %v3917_v54 }
 0x447   : > { %v4366_v31 = vsel %vm4237_vm1, %v5400_v60, %v3916_v21 }
 0x448   : > { %4494 = vst [vmem:[%s7133_s18] sm:$0xff] %v4366_v31  ;;  %v2966_v37 = vadd.f32 %v7126_v47, %v2699_v19  ;;  %5401 = vtanh.f32 %v3918_v17  ;;  %v2150_v10 = vpack.c.bf16 %v2050_v51, %v2049_v3  ;;  %v3783_v33 = vpack.c.bf16 %v3665_v46, %v3664_v35 }
 0x44a   : > { %v3094_v18 = vmax.f32 %v2966_v37, 0.0  ;;  %2740 = vmatmul.bf16.gmra.mxu3 %v2150_v10  ;;  %3959 = vmatmul.bf16.gmra.mxu2 %v3783_v33 }
 0x44b   : > { %v1815_v59 = vpop.f32.mrf.mxu1  ;;  %v3376_v20 = vpop.f32.mrf.mxu0 }
 0x44c   : > { %v3203_v52 = vpack.c.bf16 %v3094_v18, %v3093_v14  ;;  %v1816_v4 = vadd.f32 %v7023_v63, %v1815_v59  ;;  %v3377_v7 = vadd.f32 %v6967_v49, %v3376_v20 }
 0x44d   : > { %v2701_v40 = vpop.f32.mrf.mxu3  ;;  %v3920_v44 = vpop.f32.mrf.mxu2 }
 0x44e   : > { %v5402_v12 = vpop.eup %5401  ;;  %v3921_v28 = vadd.f32 %v7108_v25, %v3920_v44  ;;  %1854 = vmatmul.bf16.gmra.mxu1 %v8257_v50  ;;  %3415 = vmatmul.bf16.gmra.mxu0 %v3203_v52  ;;  %v2702_v55 = vadd.f32 %v2701_v40, %v6851_v38  ;;  %v2051_v24 = vmax.f32 %v1816_v4, 0.0  ;;  %v3666_v3 = vmax.f32 %v3377_v7, 0.0  ;;  %v8258_v44 = vld [vmem:[#allocation10_spill] sm:$0xff] }
 0x44f   : > { %v4367_v21 = vsel %vm4237_vm1, %v5402_v12, %v3918_v17 }
 0x450   : > { %4495 = vst [vmem:[%s7133_s18 + $0x8] sm:$0xff] %v4367_v21  ;;  %5403 = vtanh.f32 %v3921_v28  ;;  %v2967_v35 = vadd.f32 %v7126_v47, %v2702_v55 }
 0x452   : > { %v3095_v10 = vmax.f32 %v2967_v35, 0.0 }
 0x453   : > { %v1817_v42 = vpop.f32.mrf.mxu1  ;;  %v3378_v23 = vpop.f32.mrf.mxu0 }
 0x454   : > { %v1818_v57 = vadd.f32 %v7023_v63, %v1817_v42  ;;  %v3379_v41 = vadd.f32 %v6967_v49, %v3378_v23 }
 0x455   : > { %v2703_v32 = vpop.f32.mrf.mxu3  ;;  %v3922_v11 = vpop.f32.mrf.mxu2 }
 0x456   : > { %v5404_v54 = vpop.eup %5403  ;;  %v2052_v60 = vmax.f32 %v1818_v57, 0.0  ;;  %v3667_v51 = vmax.f32 %v3379_v41, 0.0  ;;  %v2704_v46 = vadd.f32 %v2703_v32, %v6858_v13  ;;  %v3923_v38 = vadd.f32 %v7108_v25, %v3922_v11 }
 0x457   : > { %v4368_v19 = vsel %vm4237_vm1, %v5404_v54, %v3921_v28 }
 0x458   : > { %4496 = vst [vmem:[%s7133_s18 + $0x10] sm:$0xff] %v4368_v19  ;;  %v2968_v17 = vadd.f32 %v7126_v47, %v2704_v46  ;;  %5405 = vtanh.f32 %v3923_v38  ;;  %v2151_v31 = vpack.c.bf16 %v2052_v60, %v2051_v24  ;;  %v3784_v37 = vpack.c.bf16 %v3667_v51, %v3666_v3 }
 0x45a   : > { %v3096_v33 = vmax.f32 %v2968_v17, 0.0  ;;  %2745 = vmatmul.bf16.gmra.mxu3 %v2151_v31  ;;  %3964 = vmatmul.bf16.gmra.mxu2 %v3784_v37 }
 0x45b   : > { %v1820_v14 = vpop.f32.mrf.mxu1  ;;  %v3381_v18 = vpop.f32.mrf.mxu0 }
 0x45c   : > { %v3204_v59 = vpack.c.bf16 %v3096_v33, %v3095_v10  ;;  %v1821_v28 = vadd.f32 %v7023_v63, %v1820_v14  ;;  %v3382_v50 = vadd.f32 %v6967_v49, %v3381_v18 }
 0x45d   : > { %v2706_v13 = vpop.f32.mrf.mxu3  ;;  %v3925_v20 = vpop.f32.mrf.mxu2 }
 0x45e   : > { %v5406_v52 = vpop.eup %5405  ;;  %v3926_v40 = vadd.f32 %v7108_v25, %v3925_v20  ;;  %1859 = vmatmul.bf16.gmra.mxu1 %v8258_v44  ;;  %3420 = vmatmul.bf16.gmra.mxu0 %v3204_v59  ;;  %v2707_v21 = vadd.f32 %v2706_v13, %v6872_v15  ;;  %v2053_v23 = vmax.f32 %v1821_v28, 0.0  ;;  %v3668_v57 = vmax.f32 %v3382_v50, 0.0  ;;  %v8259_v59 = vld [vmem:[#allocation12_spill] sm:$0xff] }
 0x45f   : > { %v4369_v12 = vsel %vm4237_vm1, %v5406_v52, %v3923_v38 }
 0x460   : > { %4497 = vst [vmem:[%s7133_s18 + $0x18] sm:$0xff] %v4369_v12  ;;  %5407 = vtanh.f32 %v3926_v40  ;;  %v2969_v41 = vadd.f32 %v7126_v47, %v2707_v21 }
 0x462   : > { %v3097_v19 = vmax.f32 %v2969_v41, 0.0 }
 0x463   : > { %v1822_v4 = vpop.f32.mrf.mxu1  ;;  %v3383_v7 = vpop.f32.mrf.mxu0 }
 0x464   : > { %v1823_v55 = vadd.f32 %v7023_v63, %v1822_v4  ;;  %v3384_v42 = vadd.f32 %v6967_v49, %v3383_v7 }
 0x465   : > { %v2708_v24 = vpop.f32.mrf.mxu3  ;;  %v3927_v3 = vpop.f32.mrf.mxu2 }
 0x466   : > { %v5408_v35 = vpop.eup %5407  ;;  %v2054_v32 = vmax.f32 %v1823_v55, 0.0  ;;  %v3669_v11 = vmax.f32 %v3384_v42, 0.0  ;;  %v2709_v54 = vadd.f32 %v2708_v24, %v6882_v29  ;;  %v3928_v15 = vadd.f32 %v7108_v25, %v3927_v3 }
 0x467   : > { %v4370_v60 = vsel %vm4237_vm1, %v5408_v35, %v3926_v40 }
 0x468   : > { %4498 = vst [vmem:[%s7133_s18 + $0x20] sm:$0xff] %v4370_v60  ;;  %v2970_v51 = vadd.f32 %v7126_v47, %v2709_v54  ;;  %5409 = vtanh.f32 %v3928_v15  ;;  %v2152_v46 = vpack.c.bf16 %v2054_v32, %v2053_v23  ;;  %v3785_v38 = vpack.c.bf16 %v3669_v11, %v3668_v57 }
 0x46a   : > { %v3098_v17 = vmax.f32 %v2970_v51, 0.0  ;;  %2750 = vmatmul.bf16.gmra.mxu3 %v2152_v46  ;;  %3969 = vmatmul.bf16.gmra.mxu2 %v3785_v38 }
 0x46b   : > { %v1825_v31 = vpop.f32.mrf.mxu1  ;;  %v3386_v37 = vpop.f32.mrf.mxu0 }
 0x46c   : > { %v3205_v10 = vpack.c.bf16 %v3098_v17, %v3097_v19  ;;  %v1826_v20 = vadd.f32 %v7023_v63, %v1825_v31  ;;  %v3387_v52 = vadd.f32 %v6967_v49, %v3386_v37  ;;  %v8260_v31 = vld [vmem:[#allocation15_spill] sm:$0xff] }
 0x46d   : > { %v2711_v29 = vpop.f32.mrf.mxu3  ;;  %v3930_v33 = vpop.f32.mrf.mxu2 }
 0x46e   : > { %v5410_v14 = vpop.eup %5409  ;;  %v3931_v18 = vadd.f32 %v7108_v25, %v3930_v33  ;;  %1864 = vmatmul.bf16.gmra.mxu1 %v8259_v59  ;;  %3425 = vmatmul.bf16.gmra.mxu0 %v3205_v10  ;;  %v2712_v40 = vadd.f32 %v2711_v29, %v6891_v0  ;;  %v2055_v21 = vmax.f32 %v1826_v20, 0.0  ;;  %v3670_v4 = vmax.f32 %v3387_v52, 0.0 }
 0x46f   : > { %v4371_v13 = vsel %vm4237_vm1, %v5410_v14, %v3928_v15 }
 0x470   : > { %4499 = vst [vmem:[%s7133_s18 + $0x28] sm:$0xff] %v4371_v13  ;;  %5411 = vtanh.f32 %v3931_v18  ;;  %v2971_v7 = vadd.f32 %v7126_v47, %v2712_v40 }
 0x472   : > { %v3099_v54 = vmax.f32 %v2971_v7, 0.0 }
 0x473   : > { %v1827_v44 = vpop.f32.mrf.mxu1  ;;  %v3388_v12 = vpop.f32.mrf.mxu0 }
 0x474   : > { %v1828_v28 = vadd.f32 %v7023_v63, %v1827_v44  ;;  %v3389_v50 = vadd.f32 %v6967_v49, %v3388_v12 }
 0x475   : > { %v2713_v55 = vpop.f32.mrf.mxu3  ;;  %v3932_v42 = vpop.f32.mrf.mxu2 }
 0x476   : > { %v5412_v23 = vpop.eup %5411  ;;  %v2056_v57 = vmax.f32 %v1828_v28, 0.0  ;;  %v3671_v41 = vmax.f32 %v3389_v50, 0.0  ;;  %v2714_v24 = vadd.f32 %v2713_v55, %v6898_v22  ;;  %v3933_v0 = vadd.f32 %v7108_v25, %v3932_v42 }
 0x477   : > { %v4372_v3 = vsel %vm4237_vm1, %v5412_v23, %v3931_v18 }
 0x478   : > { %4500 = vst [vmem:[%s7133_s18 + $0x30] sm:$0xff] %v4372_v3  ;;  %v2972_v35 = vadd.f32 %v7126_v47, %v2714_v24  ;;  %5413 = vtanh.f32 %v3933_v0  ;;  %v2153_v32 = vpack.c.bf16 %v2056_v57, %v2055_v21  ;;  %v3786_v11 = vpack.c.bf16 %v3671_v41, %v3670_v4 }
 0x47a   : > { %v3100_v15 = vmax.f32 %v2972_v35, 0.0  ;;  %2755 = vmatmul.bf16.gmra.mxu3 %v2153_v32  ;;  %3974 = vmatmul.bf16.gmra.mxu2 %v3786_v11 }
 0x47b   : > { %v1830_v60 = vpop.f32.mrf.mxu1  ;;  %v3391_v51 = vpop.f32.mrf.mxu0 }
 0x47c   : > { %v3206_v46 = vpack.c.bf16 %v3100_v15, %v3099_v54  ;;  %v1831_v10 = vadd.f32 %v7023_v63, %v1830_v60  ;;  %v3392_v29 = vadd.f32 %v6967_v49, %v3391_v51  ;;  %v8261_v54 = vld [vmem:[#allocation18_spill] sm:$0xff] }
 0x47d   : > { %v2716_v22 = vpop.f32.mrf.mxu3  ;;  %v3935_v38 = vpop.f32.mrf.mxu2 }
 0x47e   : > { %v5414_v19 = vpop.eup %5413  ;;  %v3936_v17 = vadd.f32 %v7108_v25, %v3935_v38  ;;  %1869 = vmatmul.bf16.gmra.mxu1 %v8260_v31  ;;  %3430 = vmatmul.bf16.gmra.mxu0 %v3206_v46  ;;  %v2717_v33 = vadd.f32 %v2716_v22, %v6911_v5  ;;  %v2057_v20 = vmax.f32 %v1831_v10, 0.0  ;;  %v3672_v52 = vmax.f32 %v3392_v29, 0.0 }
 0x47f   : > { %v4373_v37 = vsel %vm4237_vm1, %v5414_v19, %v3933_v0 }
 0x480   : > { %4501 = vst [vmem:[%s7133_s18 + $0x38] sm:$0xff] %v4373_v37  ;;  %5415 = vtanh.f32 %v3936_v17  ;;  %v2973_v40 = vadd.f32 %v7126_v47, %v2717_v33 }
 0x482   : > { %v3101_v57 = vmax.f32 %v2973_v40, 0.0 }
 0x483   : > { %v1832_v14 = vpop.f32.mrf.mxu1  ;;  %v3393_v18 = vpop.f32.mrf.mxu0 }
 0x484   : > { %v1833_v59 = vadd.f32 %v7023_v63, %v1832_v14  ;;  %v3394_v13 = vadd.f32 %v6967_v49, %v3393_v18 }
 0x485   : > { %v2718_v44 = vpop.f32.mrf.mxu3  ;;  %v3937_v12 = vpop.f32.mrf.mxu2 }
 0x486   : > { %v5416_v28 = vpop.eup %5415  ;;  %v2058_v50 = vmax.f32 %v1833_v59, 0.0  ;;  %v3673_v21 = vmax.f32 %v3394_v13, 0.0  ;;  %v2719_v4 = vadd.f32 %v2718_v44, %v6916_v39  ;;  %v3938_v5 = vadd.f32 %v7108_v25, %v3937_v12 }
 0x487   : > { %v4374_v7 = vsel %vm4237_vm1, %v5416_v28, %v3936_v17 }
 0x488   : > { %4502 = vst [vmem:[%s7133_s18 + $0x40] sm:$0xff] %v4374_v7  ;;  %v2974_v55 = vadd.f32 %v7126_v47, %v2719_v4  ;;  %5417 = vtanh.f32 %v3938_v5  ;;  %v2154_v42 = vpack.c.bf16 %v2058_v50, %v2057_v20  ;;  %v3787_v23 = vpack.c.bf16 %v3673_v21, %v3672_v52 }
 0x48a   : > { %v3102_v41 = vmax.f32 %v2974_v55, 0.0  ;;  %2760 = vmatmul.bf16.gmra.mxu3 %v2154_v42  ;;  %3979 = vmatmul.bf16.gmra.mxu2 %v3787_v23  ;;  %v8262_v55 = vld [vmem:[#allocation21_spill] sm:$0xff] }
 0x48b   : > { %v1835_v24 = vpop.f32.mrf.mxu1  ;;  %v3396_v0 = vpop.f32.mrf.mxu0 }
 0x48c   : > { %v3207_v3 = vpack.c.bf16 %v3102_v41, %v3101_v57  ;;  %v1836_v60 = vadd.f32 %v7023_v63, %v1835_v24  ;;  %v3397_v51 = vadd.f32 %v6967_v49, %v3396_v0  ;;  %v7231_v57 = vld [vmem:[%s8136_s9] ss:$0 sm:$0xff] }
 0x48d   : > { %v2721_v39 = vpop.f32.mrf.mxu3  ;;  %v3940_v35 = vpop.f32.mrf.mxu2 }
 0x48e   : > { %v5418_v32 = vpop.eup %5417  ;;  %v3941_v11 = vadd.f32 %v7108_v25, %v3940_v35  ;;  %1874 = vmatmul.bf16.gmra.mxu1 %v8261_v54  ;;  %3435 = vmatmul.bf16.gmra.mxu0 %v3207_v3  ;;  %v2722_v46 = vadd.f32 %v2721_v39, %v6930_v2  ;;  %v2059_v31 = vmax.f32 %v1836_v60, 0.0  ;;  %v3674_v37 = vmax.f32 %v3397_v51, 0.0 }
 0x48f   : > { %v4375_v15 = vsel %vm4237_vm1, %v5418_v32, %v3938_v5 }
 0x490   : > { %4503 = vst [vmem:[%s7133_s18 + $0x48] sm:$0xff] %v4375_v15  ;;  %5419 = vtanh.f32 %v3941_v11  ;;  %v2975_v10 = vadd.f32 %v7126_v47, %v2722_v46 }
 0x492   : > { %v3103_v44 = vmax.f32 %v2975_v10, 0.0 }
 0x493   : > { %v1837_v22 = vpop.f32.mrf.mxu1  ;;  %v3398_v38 = vpop.f32.mrf.mxu0 }
 0x494   : > { %v1838_v19 = vadd.f32 %v7023_v63, %v1837_v22  ;;  %v3399_v17 = vadd.f32 %v6967_v49, %v3398_v38 }
 0x495   : > { %v2723_v29 = vpop.f32.mrf.mxu3  ;;  %v3942_v33 = vpop.f32.mrf.mxu2 }
 0x496   : > { %v5420_v14 = vpop.eup %5419  ;;  %v2060_v18 = vmax.f32 %v1838_v19, 0.0  ;;  %v3675_v59 = vmax.f32 %v3399_v17, 0.0  ;;  %v2724_v13 = vadd.f32 %v2723_v29, %v6941_v8  ;;  %v3943_v2 = vadd.f32 %v7108_v25, %v3942_v33 }
 0x497   : > { %v4376_v20 = vsel %vm4237_vm1, %v5420_v14, %v3941_v11 }
 0x498   : > { %4504 = vst [vmem:[%s7133_s18 + $0x50] sm:$0xff] %v4376_v20  ;;  %v2976_v52 = vadd.f32 %v7126_v47, %v2724_v13  ;;  %5421 = vtanh.f32 %v3943_v2  ;;  %v2155_v49 = vpack.c.bf16 %v2060_v18, %v2059_v31  ;;  %v3788_v40 = vpack.c.bf16 %v3675_v59, %v3674_v37  ;;  %v8263_v20 = vld [vmem:[#allocation24_spill] sm:$0xff] }
 0x49a   : > { %v3104_v12 = vmax.f32 %v2976_v52, 0.0  ;;  %2765 = vmatmul.bf16.gmra.mxu3 %v2155_v49  ;;  %3984 = vmatmul.bf16.gmra.mxu2 %v3788_v40 }
 0x49b   : > { %v1840_v28 = vpop.f32.mrf.mxu1  ;;  %v3401_v50 = vpop.f32.mrf.mxu0 }
 0x49c   : > { %v3208_v21 = vpack.c.bf16 %v3104_v12, %v3103_v44  ;;  %v1841_v23 = vadd.f32 %v7023_v63, %v1840_v28  ;;  %v3402_v41 = vadd.f32 %v7231_v57, %v3401_v50 }
 0x49d   : > { %v2726_v8 = vpop.f32.mrf.mxu3  ;;  %v3945_v4 = vpop.f32.mrf.mxu2 }
 0x49e   : > { %v5422_v5 = vpop.eup %5421  ;;  %v3946_v7 = vadd.f32 %v7108_v25, %v3945_v4  ;;  %1879 = vmatmul.bf16.gmra.mxu1 %v8262_v55  ;;  %3440 = vmatmul.bf16.gmra.mxu0 %v3208_v21  ;;  %v2727_v24 = vadd.f32 %v2726_v8, %v6948_v53  ;;  %v2061_v32 = vmax.f32 %v1841_v23, 0.0  ;;  %v3676_v11 = vmax.f32 %v3402_v41, 0.0 }
 0x49f   : > { %v4377_v42 = vsel %vm4237_vm1, %v5422_v5, %v3943_v2 }
 0x4a0   : > { %4505 = vst [vmem:[%s7133_s18 + $0x58] sm:$0xff] %v4377_v42  ;;  %5423 = vtanh.f32 %v3946_v7  ;;  %v2977_v54 = vadd.f32 %v7126_v47, %v2727_v24 }
 0x4a2   : > { %v3105_v10 = vmax.f32 %v2977_v54, 0.0 }
 0x4a3   : > { %v1842_v0 = vpop.f32.mrf.mxu1  ;;  %v3403_v3 = vpop.f32.mrf.mxu0 }
 0x4a4   : > { %v1843_v39 = vadd.f32 %v7023_v63, %v1842_v0  ;;  %v3404_v35 = vadd.f32 %v7231_v57, %v3403_v3 }
 0x4a5   : > { %v2728_v15 = vpop.f32.mrf.mxu3  ;;  %v3947_v60 = vpop.f32.mrf.mxu2 }
 0x4a6   : > { %v5424_v51 = vpop.eup %5423  ;;  %v2062_v46 = vmax.f32 %v1843_v39, 0.0  ;;  %v3677_v22 = vmax.f32 %v3404_v35, 0.0  ;;  %v2729_v38 = vadd.f32 %v2728_v15, %v6962_v27  ;;  %v3948_v53 = vadd.f32 %v7108_v25, %v3947_v60 }
 0x4a7   : > { %v4378_v19 = vsel %vm4237_vm1, %v5424_v51, %v3946_v7 }
 0x4a8   : > { %4506 = vst [vmem:[%s7133_s18 + $0x60] sm:$0xff] %v4378_v19  ;;  %v2978_v17 = vadd.f32 %v7126_v47, %v2729_v38  ;;  %5425 = vtanh.f32 %v3948_v53  ;;  %v2156_v31 = vpack.c.bf16 %v2062_v46, %v2061_v32  ;;  %v3789_v37 = vpack.c.bf16 %v3677_v22, %v3676_v11  ;;  %v8264_v38 = vld [vmem:[#allocation27_spill] sm:$0xff] }
 0x4aa   : > { %v3106_v29 = vmax.f32 %v2978_v17, 0.0  ;;  %2770 = vmatmul.bf16.gmra.mxu3 %v2156_v31  ;;  %3989 = vmatmul.bf16.gmra.mxu2 %v3789_v37 }
 0x4ab   : > { %v1845_v33 = vpop.f32.mrf.mxu1  ;;  %v3406_v14 = vpop.f32.mrf.mxu0 }
 0x4ac   : > { %v3209_v18 = vpack.c.bf16 %v3106_v29, %v3105_v10  ;;  %v1846_v49 = vadd.f32 %v7023_v63, %v1845_v33  ;;  %v3407_v40 = vadd.f32 %v7231_v57, %v3406_v14  ;;  %v7272_v29 = vld [vmem:[%s8131_s4] ss:$0 sm:$0xff] }
 0x4ad   : > { %v2731_v27 = vpop.f32.mrf.mxu3  ;;  %v3950_v59 = vpop.f32.mrf.mxu2 }
 0x4ae   : > { %v5426_v13 = vpop.eup %5425  ;;  %v3951_v2 = vadd.f32 %v7108_v25, %v3950_v59  ;;  %1884 = vmatmul.bf16.gmra.mxu1 %v8263_v20  ;;  %3445 = vmatmul.bf16.gmra.mxu0 %v3209_v18  ;;  %v2732_v44 = vadd.f32 %v2731_v27, %v6972_v61  ;;  %v2063_v8 = vmax.f32 %v1846_v49, 0.0  ;;  %v3678_v4 = vmax.f32 %v3407_v40, 0.0 }
 0x4af   : > { %v4379_v52 = vsel %vm4237_vm1, %v5426_v13, %v3948_v53 }
 0x4b0   : > { %4507 = vst [vmem:[%s7133_s18 + $0x68] sm:$0xff] %v4379_v52  ;;  %5427 = vtanh.f32 %v3951_v2  ;;  %v2979_v5 = vadd.f32 %v7126_v47, %v2732_v44 }
 0x4b2   : > { %v3107_v32 = vmax.f32 %v2979_v5, 0.0 }
 0x4b3   : > { %v1847_v12 = vpop.f32.mrf.mxu1  ;;  %v3408_v28 = vpop.f32.mrf.mxu0 }
 0x4b4   : > { %v1848_v50 = vadd.f32 %v7023_v63, %v1847_v12  ;;  %v3409_v21 = vadd.f32 %v7231_v57, %v3408_v28 }
 0x4b5   : > { %v2733_v7 = vpop.f32.mrf.mxu3  ;;  %v3952_v55 = vpop.f32.mrf.mxu2 }
 0x4b6   : > { %v5428_v42 = vpop.eup %5427  ;;  %v2064_v23 = vmax.f32 %v1848_v50, 0.0  ;;  %v3679_v41 = vmax.f32 %v3409_v21, 0.0  ;;  %v2734_v24 = vadd.f32 %v2733_v7, %v6988_v48  ;;  %v3953_v61 = vadd.f32 %v7108_v25, %v3952_v55 }
 0x4b7   : > { %v4380_v0 = vsel %vm4237_vm1, %v5428_v42, %v3951_v2 }
 0x4b8   : > { %4508 = vst [vmem:[%s7133_s18 + $0x70] sm:$0xff] %v4380_v0  ;;  %v2980_v3 = vadd.f32 %v7126_v47, %v2734_v24  ;;  %5429 = vtanh.f32 %v3953_v61  ;;  %v2157_v39 = vpack.c.bf16 %v2064_v23, %v2063_v8  ;;  %v3790_v35 = vpack.c.bf16 %v3679_v41, %v3678_v4  ;;  %v8265_v23 = vld [vmem:[#allocation30_spill] sm:$0xff] }
 0x4ba   : > { %v3108_v11 = vmax.f32 %v2980_v3, 0.0  ;;  %2775 = vmatmul.bf16.gmra.mxu3 %v2157_v39  ;;  %3994 = vmatmul.bf16.gmra.mxu2 %v3790_v35 }
 0x4bb   : > { %v1850_v54 = vpop.f32.mrf.mxu1  ;;  %v3411_v15 = vpop.f32.mrf.mxu0 }
 0x4bc   : > { %v3210_v60 = vpack.c.bf16 %v3108_v11, %v3107_v32  ;;  %v1851_v19 = vadd.f32 %v7023_v63, %v1850_v54  ;;  %v3412_v17 = vadd.f32 %v7231_v57, %v3411_v15 }
 0x4bd   : > { %v2736_v48 = vpop.f32.mrf.mxu3  ;;  %v3955_v51 = vpop.f32.mrf.mxu2 }
 0x4be   : > { %v5430_v46 = vpop.eup %5429  ;;  %v3956_v22 = vadd.f32 %v7108_v25, %v3955_v51  ;;  %1889 = vmatmul.bf16.gmra.mxu1 %v8264_v38  ;;  %3450 = vmatmul.bf16.gmra.mxu0 %v3210_v60  ;;  %v2737_v31 = vadd.f32 %v2736_v48, %v7001_v58  ;;  %v2065_v18 = vmax.f32 %v1851_v19, 0.0  ;;  %v3680_v27 = vmax.f32 %v3412_v17, 0.0 }
 0x4bf   : > { %v4381_v53 = vsel %vm4237_vm1, %v5430_v46, %v3953_v61 }
 0x4c0   : > { %4509 = vst [vmem:[%s7133_s18 + $0x78] sm:$0xff] %v4381_v53  ;;  %5431 = vtanh.f32 %v3956_v22  ;;  %v2981_v63 = vadd.f32 %v7126_v47, %v2737_v31 }
 0x4c2   : > { %v3109_v50 = vmax.f32 %v2981_v63, 0.0 }
 0x4c3   : > { %v1852_v37 = vpop.f32.mrf.mxu1  ;;  %v3413_v10 = vpop.f32.mrf.mxu0 }
 0x4c4   : > { %v1853_v33 = vadd.f32 %v7272_v29, %v1852_v37  ;;  %v3414_v14 = vadd.f32 %v7231_v57, %v3413_v10 }
 0x4c5   : > { %v2738_v59 = vpop.f32.mrf.mxu3  ;;  %v3957_v13 = vpop.f32.mrf.mxu2 }
 0x4c6   : > { %v5432_v2 = vpop.eup %5431  ;;  %v2066_v58 = vmax.f32 %v1853_v33, 0.0  ;;  %v3681_v20 = vmax.f32 %v3414_v14, 0.0  ;;  %v2739_v52 = vadd.f32 %v2738_v59, %v7004_v9  ;;  %v3958_v49 = vadd.f32 %v7108_v25, %v3957_v13  ;;  %v8266_v13 = vld [vmem:[#allocation33_spill] sm:$0xff] }
 0x4c7   : > { %v4382_v40 = vsel %vm4237_vm1, %v5432_v2, %v3956_v22 }
 0x4c8   : > { %4510 = vst [vmem:[%s7133_s18 + $0x80] sm:$0xff] %v4382_v40  ;;  %v2982_v44 = vadd.f32 %v7126_v47, %v2739_v52  ;;  %5433 = vtanh.f32 %v3958_v49  ;;  %v2158_v12 = vpack.c.bf16 %v2066_v58, %v2065_v18  ;;  %v3791_v28 = vpack.c.bf16 %v3681_v20, %v3680_v27 }
 0x4ca   : > { %v3110_v21 = vmax.f32 %v2982_v44, 0.0  ;;  %2780 = vmatmul.bf16.gmra.mxu3 %v2158_v12  ;;  %3999 = vmatmul.bf16.gmra.mxu2 %v3791_v28 }
 0x4cb   : > { %v1855_v8 = vpop.f32.mrf.mxu1  ;;  %v3416_v4 = vpop.f32.mrf.mxu0 }
 0x4cc   : > { %v3211_v5 = vpack.c.bf16 %v3110_v21, %v3109_v50  ;;  %v1856_v24 = vadd.f32 %v7272_v29, %v1855_v8  ;;  %v3417_v61 = vadd.f32 %v7231_v57, %v3416_v4 }
 0x4cd   : > { %v2741_v9 = vpop.f32.mrf.mxu3  ;;  %v3960_v7 = vpop.f32.mrf.mxu2 }
 0x4ce   : > { %v5434_v55 = vpop.eup %5433  ;;  %v3961_v42 = vadd.f32 %v7108_v25, %v3960_v7  ;;  %1894 = vmatmul.bf16.gmra.mxu1 %v8265_v23  ;;  %3455 = vmatmul.bf16.gmra.mxu0 %v3211_v5  ;;  %v2742_v0 = vadd.f32 %v2741_v9, %v7018_v16  ;;  %v2067_v11 = vmax.f32 %v1856_v24, 0.0  ;;  %v3682_v54 = vmax.f32 %v3417_v61, 0.0 }
 0x4cf   : > { %v4383_v41 = vsel %vm4237_vm1, %v5434_v55, %v3958_v49 }
 0x4d0   : > { %4511 = vst [vmem:[%s7133_s18 + $0x88] sm:$0xff] %v4383_v41  ;;  %5435 = vtanh.f32 %v3961_v42  ;;  %v2983_v15 = vadd.f32 %v7126_v47, %v2742_v0 }
 0x4d2   : > { %v3111_v37 = vmax.f32 %v2983_v15, 0.0  ;;  %v8267_v15 = vld [vmem:[#allocation36_spill] sm:$0xff] }
 0x4d3   : > { %v1857_v3 = vpop.f32.mrf.mxu1  ;;  %v3418_v39 = vpop.f32.mrf.mxu0 }
 0x4d4   : > { %v1858_v35 = vadd.f32 %v7272_v29, %v1857_v3  ;;  %v3419_v32 = vadd.f32 %v7231_v57, %v3418_v39 }
 0x4d5   : > { %v2743_v60 = vpop.f32.mrf.mxu3  ;;  %v3962_v48 = vpop.f32.mrf.mxu2 }
 0x4d6   : > { %v5436_v51 = vpop.eup %5435  ;;  %v2068_v46 = vmax.f32 %v1858_v35, 0.0  ;;  %v3683_v22 = vmax.f32 %v3419_v32, 0.0  ;;  %v2744_v38 = vadd.f32 %v2743_v60, %v7034_v6  ;;  %v3963_v16 = vadd.f32 %v7108_v25, %v3962_v48 }
 0x4d7   : > { %v4384_v53 = vsel %vm4237_vm1, %v5436_v51, %v3961_v42 }
 0x4d8   : > { %4512 = vst [vmem:[%s7133_s18 + $0x90] sm:$0xff] %v4384_v53  ;;  %v2984_v19 = vadd.f32 %v7126_v47, %v2744_v38  ;;  %5437 = vtanh.f32 %v3963_v16  ;;  %v2159_v17 = vpack.c.bf16 %v2068_v46, %v2067_v11  ;;  %v3792_v31 = vpack.c.bf16 %v3683_v22, %v3682_v54 }
 0x4da   : > { %v3112_v10 = vmax.f32 %v2984_v19, 0.0  ;;  %2785 = vmatmul.bf16.gmra.mxu3 %v2159_v17  ;;  %4004 = vmatmul.bf16.gmra.mxu2 %v3792_v31 }
 0x4db   : > { %v1860_v33 = vpop.f32.mrf.mxu1  ;;  %v3421_v14 = vpop.f32.mrf.mxu0 }
 0x4dc   : > { %v3212_v18 = vpack.c.bf16 %v3112_v10, %v3111_v37  ;;  %v1861_v58 = vadd.f32 %v7272_v29, %v1860_v33  ;;  %v3422_v20 = vadd.f32 %v7231_v57, %v3421_v14 }
 0x4dd   : > { %v2746_v6 = vpop.f32.mrf.mxu3  ;;  %v3965_v27 = vpop.f32.mrf.mxu2 }
 0x4de   : > { %v5438_v63 = vpop.eup %5437  ;;  %v3966_v59 = vadd.f32 %v7108_v25, %v3965_v27  ;;  %1899 = vmatmul.bf16.gmra.mxu1 %v8266_v13  ;;  %3460 = vmatmul.bf16.gmra.mxu0 %v3212_v18  ;;  %v2747_v52 = vadd.f32 %v2746_v6, %v7039_v36  ;;  %v2069_v28 = vmax.f32 %v1861_v58, 0.0  ;;  %v3684_v50 = vmax.f32 %v3422_v20, 0.0 }
 0x4df   : > { %v4385_v2 = vsel %vm4237_vm1, %v5438_v63, %v3963_v16 }
 0x4e0   : > { %4513 = vst [vmem:[%s7133_s18 + $0x98] sm:$0xff] %v4385_v2  ;;  %5439 = vtanh.f32 %v3966_v59  ;;  %v2985_v21 = vadd.f32 %v7126_v47, %v2747_v52 }
 0x4e2   : > { %v3113_v61 = vmax.f32 %v2985_v21, 0.0 }
 0x4e3   : > { %v1862_v49 = vpop.f32.mrf.mxu1  ;;  %v3423_v40 = vpop.f32.mrf.mxu0 }
 0x4e4   : > { %v1863_v44 = vadd.f32 %v7272_v29, %v1862_v49  ;;  %v3424_v12 = vadd.f32 %v7231_v57, %v3423_v40 }
 0x4e5   : > { %v2748_v8 = vpop.f32.mrf.mxu3  ;;  %v3967_v4 = vpop.f32.mrf.mxu2 }
 0x4e6   : > { %v5440_v5 = vpop.eup %5439  ;;  %v2070_v9 = vmax.f32 %v1863_v44, 0.0  ;;  %v3685_v7 = vmax.f32 %v3424_v12, 0.0  ;;  %v2749_v55 = vadd.f32 %v2748_v8, %v7053_v30  ;;  %v3968_v36 = vadd.f32 %v7108_v25, %v3967_v4 }
 0x4e7   : > { %v4386_v42 = vsel %vm4237_vm1, %v5440_v5, %v3966_v59 }
 0x4e8   : > { %4514 = vst [vmem:[%s7133_s18 + $0xa0] sm:$0xff] %v4386_v42  ;;  %v2986_v23 = vadd.f32 %v7126_v47, %v2749_v55  ;;  %5441 = vtanh.f32 %v3968_v36  ;;  %v2160_v41 = vpack.c.bf16 %v2070_v9, %v2069_v28  ;;  %v3793_v24 = vpack.c.bf16 %v3685_v7, %v3684_v50  ;;  %v8268_v28 = vld [vmem:[#allocation39_spill] sm:$0xff] }
 0x4ea   : > { %v3114_v0 = vmax.f32 %v2986_v23, 0.0  ;;  %2790 = vmatmul.bf16.gmra.mxu3 %v2160_v41  ;;  %4009 = vmatmul.bf16.gmra.mxu2 %v3793_v24 }
 0x4eb   : > { %v1865_v3 = vpop.f32.mrf.mxu1  ;;  %v3426_v39 = vpop.f32.mrf.mxu0 }
 0x4ec   : > { %v3213_v35 = vpack.c.bf16 %v3114_v0, %v3113_v61  ;;  %v1866_v48 = vadd.f32 %v7272_v29, %v1865_v3  ;;  %v3427_v51 = vadd.f32 %v7231_v57, %v3426_v39 }
 0x4ed   : > { %v2751_v30 = vpop.f32.mrf.mxu3  ;;  %v3970_v32 = vpop.f32.mrf.mxu2 }
 0x4ee   : > { %v5442_v11 = vpop.eup %5441  ;;  %v3971_v54 = vadd.f32 %v7108_v25, %v3970_v32  ;;  %1904 = vmatmul.bf16.gmra.mxu1 %v8267_v15  ;;  %3465 = vmatmul.bf16.gmra.mxu0 %v3213_v35  ;;  %v2752_v46 = vadd.f32 %v2751_v30, %v7058_v43  ;;  %v2071_v19 = vmax.f32 %v1866_v48, 0.0  ;;  %v3686_v17 = vmax.f32 %v3427_v51, 0.0 }
 0x4ef   : > { %v4387_v60 = vsel %vm4237_vm1, %v5442_v11, %v3968_v36 }
 0x4f0   : > { %4515 = vst [vmem:[%s7133_s18 + $0xa8] sm:$0xff] %v4387_v60  ;;  %5443 = vtanh.f32 %v3971_v54  ;;  %v2987_v31 = vadd.f32 %v7126_v47, %v2752_v46 }
 0x4f2   : > { %v3115_v2 = vmax.f32 %v2987_v31, 0.0 }
 0x4f3   : > { %v1867_v22 = vpop.f32.mrf.mxu1  ;;  %v3428_v38 = vpop.f32.mrf.mxu0 }
 0x4f4   : > { %v1868_v16 = vadd.f32 %v7272_v29, %v1867_v22  ;;  %v3429_v53 = vadd.f32 %v7231_v57, %v3428_v38  ;;  %v7354_v22 = vld [vmem:[%s8138_s11] ss:$0 sm:$0xff] }
 0x4f5   : > { %v2753_v37 = vpop.f32.mrf.mxu3  ;;  %v3972_v10 = vpop.f32.mrf.mxu2 }
 0x4f6   : > { %v5444_v33 = vpop.eup %5443  ;;  %v2072_v14 = vmax.f32 %v1868_v16, 0.0  ;;  %v3687_v18 = vmax.f32 %v3429_v53, 0.0  ;;  %v2754_v6 = vadd.f32 %v2753_v37, %v7069_v45  ;;  %v3973_v43 = vadd.f32 %v7108_v25, %v3972_v10  ;;  %v8269_v16 = vld [vmem:[#allocation42_spill] sm:$0xff] }
 0x4f7   : > { %v4388_v27 = vsel %vm4237_vm1, %v5444_v33, %v3971_v54 }
 0x4f8   : > { %4516 = vst [vmem:[%s7133_s18 + $0xb0] sm:$0xff] %v4388_v27  ;;  %v2988_v63 = vadd.f32 %v7126_v47, %v2754_v6  ;;  %5445 = vtanh.f32 %v3973_v43  ;;  %v2161_v59 = vpack.c.bf16 %v2072_v14, %v2071_v19  ;;  %v3794_v13 = vpack.c.bf16 %v3687_v18, %v3686_v17 }
 0x4fa   : > { %v3116_v58 = vmax.f32 %v2988_v63, 0.0  ;;  %2795 = vmatmul.bf16.gmra.mxu3 %v2161_v59  ;;  %4014 = vmatmul.bf16.gmra.mxu2 %v3794_v13 }
 0x4fb   : > { %v1870_v20 = vpop.f32.mrf.mxu1  ;;  %v3431_v52 = vpop.f32.mrf.mxu0 }
 0x4fc   : > { %v3214_v49 = vpack.c.bf16 %v3116_v58, %v3115_v2  ;;  %v1871_v21 = vadd.f32 %v7272_v29, %v1870_v20  ;;  %v3432_v8 = vadd.f32 %v7231_v57, %v3431_v52  ;;  %v7375_v52 = vld [vmem:[%s8134_s7] ss:$0 sm:$0xff] }
 0x4fd   : > { %v2756_v45 = vpop.f32.mrf.mxu3  ;;  %v3975_v40 = vpop.f32.mrf.mxu2 }
 0x4fe   : > { %v5446_v44 = vpop.eup %5445  ;;  %v3976_v12 = vadd.f32 %v7108_v25, %v3975_v40  ;;  %1909 = vmatmul.bf16.gmra.mxu1 %v8268_v28  ;;  %3470 = vmatmul.bf16.gmra.mxu0 %v3214_v49  ;;  %v2757_v4 = vadd.f32 %v2756_v45, %v7077_v1  ;;  %v2073_v36 = vmax.f32 %v1871_v21, 0.0  ;;  %v3688_v42 = vmax.f32 %v3432_v8, 0.0 }
 0x4ff   : > { %v4389_v50 = vsel %vm4237_vm1, %v5446_v44, %v3973_v43 }
 0x500   : > { %4517 = vst [vmem:[%s7133_s18 + $0xb8] sm:$0xff] %v4389_v50  ;;  %5447 = vtanh.f32 %v3976_v12  ;;  %v2989_v23 = vadd.f32 %v7126_v47, %v2757_v4 }
 0x502   : > { %v3117_v54 = vmax.f32 %v2989_v23, 0.0 }
 0x503   : > { %v1872_v5 = vpop.f32.mrf.mxu1  ;;  %v3433_v9 = vpop.f32.mrf.mxu0 }
 0x504   : > { %v1873_v7 = vadd.f32 %v7272_v29, %v1872_v5  ;;  %v3434_v55 = vadd.f32 %v7231_v57, %v3433_v9  ;;  %v8270_v5 = vld [vmem:[#allocation45_spill] sm:$0xff] }
 0x505   : > { %v2758_v41 = vpop.f32.mrf.mxu3  ;;  %v3977_v24 = vpop.f32.mrf.mxu2 }
 0x506   : > { %v5448_v61 = vpop.eup %5447  ;;  %v2074_v0 = vmax.f32 %v1873_v7, 0.0  ;;  %v3689_v3 = vmax.f32 %v3434_v55, 0.0  ;;  %v2759_v39 = vadd.f32 %v2758_v41, %v7082_v56  ;;  %v3978_v1 = vadd.f32 %v7108_v25, %v3977_v24 }
 0x507   : > { %v4390_v35 = vsel %vm4237_vm1, %v5448_v61, %v3976_v12 }
 0x508   : > { %4518 = vst [vmem:[%s7133_s18 + $0xc0] sm:$0xff] %v4390_v35  ;;  %v2990_v30 = vadd.f32 %v7126_v47, %v2759_v39  ;;  %5449 = vtanh.f32 %v3978_v1  ;;  %v2162_v32 = vpack.c.bf16 %v2074_v0, %v2073_v36  ;;  %v3795_v11 = vpack.c.bf16 %v3689_v3, %v3688_v42  ;;  %v8271_v36 = vld [vmem:[#allocation11_spill] sm:$0xff] }
 0x50a   : > { %v3118_v15 = vmax.f32 %v2990_v30, 0.0  ;;  %2800 = vmatmul.bf16.gmra.mxu3 %v2162_v32  ;;  %4019 = vmatmul.bf16.gmra.mxu2 %v3795_v11 }
 0x50b   : > { %v1875_v60 = vpop.f32.mrf.mxu1  ;;  %v3436_v48 = vpop.f32.mrf.mxu0 }
 0x50c   : > { %v3215_v51 = vpack.c.bf16 %v3118_v15, %v3117_v54  ;;  %v1876_v19 = vadd.f32 %v7272_v29, %v1875_v60  ;;  %v3437_v17 = vadd.f32 %v7231_v57, %v3436_v48  ;;  %v8272_v54 = vld [vmem:[#allocation13_spill] sm:$0xff] }
 0x50d   : > { %v2761_v56 = vpop.f32.mrf.mxu3  ;;  %v3980_v46 = vpop.f32.mrf.mxu2 }
 0x50e   : > { %v5450_v25 = vpop.eup %5449  ;;  %v3981_v38 = vadd.f32 %v7354_v22, %v3980_v46  ;;  %1914 = vmatmul.bf16.gmra.mxu1 %v8269_v16  ;;  %3475 = vmatmul.bf16.gmra.mxu0 %v3215_v51  ;;  %v2762_v31 = vadd.f32 %v2761_v56, %v7092_v26  ;;  %v2075_v18 = vmax.f32 %v1876_v19, 0.0  ;;  %v3690_v6 = vmax.f32 %v3437_v17, 0.0 }
 0x50f   : > { %v4391_v53 = vsel %vm4237_vm1, %v5450_v25, %v3978_v1 }
 0x510   : > { %4519 = vst [vmem:[%s7133_s18 + $0xc8] sm:$0xff] %v4391_v53  ;;  %5451 = vtanh.f32 %v3981_v38  ;;  %v2991_v43 = vadd.f32 %v7126_v47, %v2762_v31 }
 0x512   : > { %v3119_v40 = vmax.f32 %v2991_v43, 0.0  ;;  %v8274_v43 = vld [vmem:[#allocation14_spill] sm:$0xff] }
 0x513   : > { %v1877_v37 = vpop.f32.mrf.mxu1  ;;  %v3438_v10 = vpop.f32.mrf.mxu0 }
 0x514   : > { %v1878_v33 = vadd.f32 %v7272_v29, %v1877_v37  ;;  %v3439_v14 = vadd.f32 %v7231_v57, %v3438_v10 }
 0x515   : > { %v2763_v27 = vpop.f32.mrf.mxu3  ;;  %v3982_v63 = vpop.f32.mrf.mxu2 }
 0x516   : > { %v5452_v59 = vpop.eup %5451  ;;  %v2076_v13 = vmax.f32 %v1878_v33, 0.0  ;;  %v3691_v2 = vmax.f32 %v3439_v14, 0.0  ;;  %v2764_v58 = vadd.f32 %v2763_v27, %v7100_v62  ;;  %v3983_v26 = vadd.f32 %v7354_v22, %v3982_v63  ;;  %v8273_v33 = vld [vmem:[#allocation48_spill] sm:$0xff] }
 0x517   : > { %v4392_v20 = vsel %vm4237_vm1, %v5452_v59, %v3981_v38 }
 0x518   : > { %4520 = vst [vmem:[%s7133_s18 + $0xd0] sm:$0xff] %v4392_v20  ;;  %v2992_v47 = vadd.f32 %v7375_v52, %v2764_v58  ;;  %5453 = vtanh.f32 %v3983_v26  ;;  %v2163_v49 = vpack.c.bf16 %v2076_v13, %v2075_v18  ;;  %v3796_v45 = vpack.c.bf16 %v3691_v2, %v3690_v6 }
 0x51a   : > { %v3120_v44 = vmax.f32 %v2992_v47, 0.0  ;;  %2805 = vmatmul.bf16.gmra.mxu3 %v2163_v49  ;;  %4024 = vmatmul.bf16.gmra.mxu2 %v3796_v45 }
 0x51b   : > { %v1880_v62 = vpop.f32.mrf.mxu1  ;;  %v3441_v12 = vpop.f32.mrf.mxu0 }
 0x51c   : > { %v3216_v28 = vpack.c.bf16 %v3120_v44, %v3119_v40  ;;  %v1881_v7 = vadd.f32 %v7272_v29, %v1880_v62  ;;  %v3442_v55 = vadd.f32 %v7231_v57, %v3441_v12  ;;  %v8275_v62 = vld [vmem:[#allocation16_spill] sm:$0xff] }
 0x51d   : > { %v2766_v50 = vpop.f32.mrf.mxu3  ;;  %v3985_v21 = vpop.f32.mrf.mxu2 }
 0x51e   : > { %v5454_v8 = vpop.eup %5453  ;;  %v3986_v4 = vadd.f32 %v7354_v22, %v3985_v21  ;;  %1919 = vmatmul.bf16.gmra.mxu1 %v8270_v5  ;;  %3480 = vmatmul.bf16.gmra.mxu0 %v3216_v28  ;;  %v2767_v42 = vadd.f32 %v2766_v50, %v8271_v36  ;;  %v2077_v0 = vmax.f32 %v1881_v7, 0.0  ;;  %v3692_v3 = vmax.f32 %v3442_v55, 0.0 }
 0x51f   : > { %v4393_v9 = vsel %vm4237_vm1, %v5454_v8, %v3983_v26 }
 0x520   : > { %4521 = vst [vmem:[%s7133_s18 + $0xd8] sm:$0xff] %v4393_v9  ;;  %5455 = vtanh.f32 %v3986_v4  ;;  %v2993_v39 = vadd.f32 %v7375_v52, %v2767_v42 }
 0x522   : > { %v3121_v25 = vmax.f32 %v2993_v39, 0.0 }
 0x523   : > { %v1882_v23 = vpop.f32.mrf.mxu1  ;;  %v3443_v41 = vpop.f32.mrf.mxu0 }
 0x524   : > { %v1883_v24 = vadd.f32 %v7272_v29, %v1882_v23  ;;  %v3444_v61 = vadd.f32 %v7231_v57, %v3443_v41 }
 0x525   : > { %v2768_v1 = vpop.f32.mrf.mxu3  ;;  %v3987_v35 = vpop.f32.mrf.mxu2 }
 0x526   : > { %v5456_v30 = vpop.eup %5455  ;;  %v2078_v32 = vmax.f32 %v1883_v24, 0.0  ;;  %v3693_v11 = vmax.f32 %v3444_v61, 0.0  ;;  %v2769_v15 = vadd.f32 %v2768_v1, %v8272_v54  ;;  %v3988_v60 = vadd.f32 %v7354_v22, %v3987_v35  ;;  %v8276_v61 = vld [vmem:[#allocation51_spill] sm:$0xff]  ;;  %v8277_v1 = vld [vmem:[#allocation17_spill] sm:$0xff] }
 0x527   : > { %v4394_v48 = vsel %vm4237_vm1, %v5456_v30, %v3986_v4 }
 0x528   : > { %4522 = vst [vmem:[%s7133_s18 + $0xe0] sm:$0xff] %v4394_v48  ;;  %v2994_v51 = vadd.f32 %v7375_v52, %v2769_v15  ;;  %5457 = vtanh.f32 %v3988_v60  ;;  %v2164_v56 = vpack.c.bf16 %v2078_v32, %v2077_v0  ;;  %v3797_v46 = vpack.c.bf16 %v3693_v11, %v3692_v3 }
 0x52a   : > { %v3122_v38 = vmax.f32 %v2994_v51, 0.0  ;;  %2810 = vmatmul.bf16.gmra.mxu3 %v2164_v56  ;;  %4029 = vmatmul.bf16.gmra.mxu2 %v3797_v46 }
 0x52b   : > { %v1885_v16 = vpop.f32.mrf.mxu1  ;;  %v3446_v53 = vpop.f32.mrf.mxu0 }
 0x52c   : > { %v3217_v19 = vpack.c.bf16 %v3122_v38, %v3121_v25  ;;  %v1886_v18 = vadd.f32 %v7272_v29, %v1885_v16  ;;  %v3447_v6 = vadd.f32 %v7231_v57, %v3446_v53  ;;  %v8278_v16 = vld [vmem:[#allocation19_spill] sm:$0xff] }
 0x52d   : > { %v2771_v17 = vpop.f32.mrf.mxu3  ;;  %v3990_v31 = vpop.f32.mrf.mxu2 }
 0x52e   : > { %v5458_v37 = vpop.eup %5457  ;;  %v3991_v10 = vadd.f32 %v7354_v22, %v3990_v31  ;;  %1924 = vmatmul.bf16.gmra.mxu1 %v8273_v33  ;;  %3485 = vmatmul.bf16.gmra.mxu0 %v3217_v19  ;;  %v2772_v27 = vadd.f32 %v2771_v17, %v8274_v43  ;;  %v2079_v58 = vmax.f32 %v1886_v18, 0.0  ;;  %v3694_v26 = vmax.f32 %v3447_v6, 0.0 }
 0x52f   : > { %v4395_v14 = vsel %vm4237_vm1, %v5458_v37, %v3988_v60 }
 0x530   : > { %4523 = vst [vmem:[%s7133_s18 + $0xe8] sm:$0xff] %v4395_v14  ;;  %5459 = vtanh.f32 %v3991_v10  ;;  %v2995_v20 = vadd.f32 %v7375_v52, %v2772_v27 }
 0x532   : > { %v3123_v5 = vmax.f32 %v2995_v20, 0.0 }
 0x533   : > { %v1887_v63 = vpop.f32.mrf.mxu1  ;;  %v3448_v59 = vpop.f32.mrf.mxu0 }
 0x534   : > { %v1888_v13 = vadd.f32 %v7272_v29, %v1887_v63  ;;  %v3449_v2 = vadd.f32 %v7231_v57, %v3448_v59 }
 0x535   : > { %v2773_v47 = vpop.f32.mrf.mxu3  ;;  %v3992_v49 = vpop.f32.mrf.mxu2 }
 0x536   : > { %v5460_v45 = vpop.eup %5459  ;;  %v2080_v40 = vmax.f32 %v1888_v13, 0.0  ;;  %v3695_v44 = vmax.f32 %v3449_v2, 0.0  ;;  %v2774_v12 = vadd.f32 %v2773_v47, %v8275_v62  ;;  %v3993_v28 = vadd.f32 %v7354_v22, %v3992_v49  ;;  %v8279_v2 = vld [vmem:[#allocation54_spill] sm:$0xff]  ;;  %v8280_v47 = vld [vmem:[#allocation20_spill] sm:$0xff] }
 0x537   : > { %v4396_v50 = vsel %vm4237_vm1, %v5460_v45, %v3991_v10 }
 0x538   : > { %4524 = vst [vmem:[%s7133_s18 + $0xf0] sm:$0xff] %v4396_v50  ;;  %v2996_v21 = vadd.f32 %v7375_v52, %v2774_v12  ;;  %5461 = vtanh.f32 %v3993_v28  ;;  %v2165_v8 = vpack.c.bf16 %v2080_v40, %v2079_v58  ;;  %v3798_v4 = vpack.c.bf16 %v3695_v44, %v3694_v26 }
 0x53a   : > { %v3124_v9 = vmax.f32 %v2996_v21, 0.0  ;;  %2815 = vmatmul.bf16.gmra.mxu3 %v2165_v8  ;;  %4034 = vmatmul.bf16.gmra.mxu2 %v3798_v4 }
 0x53b   : > { %v1890_v7 = vpop.f32.mrf.mxu1  ;;  %v3451_v55 = vpop.f32.mrf.mxu0 }
 0x53c   : > { %v3218_v36 = vpack.c.bf16 %v3124_v9, %v3123_v5  ;;  %v1891_v3 = vadd.f32 %v7272_v29, %v1890_v7  ;;  %v3452_v39 = vadd.f32 %v7231_v57, %v3451_v55  ;;  %v8281_v7 = vld [vmem:[#allocation22_spill] sm:$0xff] }
 0x53d   : > { %v2776_v42 = vpop.f32.mrf.mxu3  ;;  %v3995_v23 = vpop.f32.mrf.mxu2 }
 0x53e   : > { %v5462_v41 = vpop.eup %5461  ;;  %v3996_v24 = vadd.f32 %v7354_v22, %v3995_v23  ;;  %1929 = vmatmul.bf16.gmra.mxu1 %v8276_v61  ;;  %3490 = vmatmul.bf16.gmra.mxu0 %v3218_v36  ;;  %v2777_v35 = vadd.f32 %v2776_v42, %v8277_v1  ;;  %v2081_v15 = vmax.f32 %v1891_v3, 0.0  ;;  %v3696_v60 = vmax.f32 %v3452_v39, 0.0 }
 0x53f   : > { %v4397_v0 = vsel %vm4237_vm1, %v5462_v41, %v3993_v28 }
 0x540   : > { %4525 = vst [vmem:[%s7133_s18 + $0xf8] sm:$0xff] %v4397_v0  ;;  %5463 = vtanh.f32 %v3996_v24  ;;  %v2997_v48 = vadd.f32 %v7375_v52, %v2777_v35 }
 0x542   : > { %v3125_v33 = vmax.f32 %v2997_v48, 0.0 }
 0x543   : > { %v1892_v30 = vpop.f32.mrf.mxu1  ;;  %v3453_v32 = vpop.f32.mrf.mxu0 }
 0x544   : > { %v1893_v11 = vadd.f32 %v7272_v29, %v1892_v30  ;;  %v3454_v54 = vadd.f32 %v7231_v57, %v3453_v32 }
 0x545   : > { %v2778_v51 = vpop.f32.mrf.mxu3  ;;  %v3997_v56 = vpop.f32.mrf.mxu2 }
 0x546   : > { %v5464_v46 = vpop.eup %5463  ;;  %v2082_v25 = vmax.f32 %v1893_v11, 0.0  ;;  %v3697_v38 = vmax.f32 %v3454_v54, 0.0  ;;  %v2779_v53 = vadd.f32 %v2778_v51, %v8278_v16  ;;  %v3998_v19 = vadd.f32 %v7354_v22, %v3997_v56  ;;  %v8282_v54 = vld [vmem:[#allocation57_spill] sm:$0xff]  ;;  %v8283_v51 = vld [vmem:[#allocation23_spill] sm:$0xff] }
 0x547   : > { %v4398_v17 = vsel %vm4237_vm1, %v5464_v46, %v3996_v24 }
 0x548   : > { %4526 = vst [vmem:[%s7133_s18 + $0x100] sm:$0xff] %v4398_v17  ;;  %v2998_v31 = vadd.f32 %v7375_v52, %v2779_v53  ;;  %5465 = vtanh.f32 %v3998_v19  ;;  %v2166_v37 = vpack.c.bf16 %v2082_v25, %v2081_v15  ;;  %v3799_v10 = vpack.c.bf16 %v3697_v38, %v3696_v60 }
 0x54a   : > { %v3126_v14 = vmax.f32 %v2998_v31, 0.0  ;;  %2820 = vmatmul.bf16.gmra.mxu3 %v2166_v37  ;;  %4039 = vmatmul.bf16.gmra.mxu2 %v3799_v10 }
 0x54b   : > { %v1895_v18 = vpop.f32.mrf.mxu1  ;;  %v3456_v6 = vpop.f32.mrf.mxu0 }
 0x54c   : > { %v3219_v43 = vpack.c.bf16 %v3126_v14, %v3125_v33  ;;  %v1896_v26 = vadd.f32 %v7272_v29, %v1895_v18  ;;  %v3457_v20 = vadd.f32 %v7231_v57, %v3456_v6  ;;  %v8284_v18 = vld [vmem:[#allocation25_spill] sm:$0xff] }
 0x54d   : > { %v2781_v27 = vpop.f32.mrf.mxu3  ;;  %v4000_v63 = vpop.f32.mrf.mxu2 }
 0x54e   : > { %v5466_v59 = vpop.eup %5465  ;;  %v4001_v13 = vadd.f32 %v7354_v22, %v4000_v63  ;;  %1934 = vmatmul.bf16.gmra.mxu1 %v8279_v2  ;;  %3495 = vmatmul.bf16.gmra.mxu0 %v3219_v43  ;;  %v2782_v49 = vadd.f32 %v2781_v27, %v8280_v47  ;;  %v2083_v12 = vmax.f32 %v1896_v26, 0.0  ;;  %v3698_v28 = vmax.f32 %v3457_v20, 0.0 }
 0x54f   : > { %v4399_v58 = vsel %vm4237_vm1, %v5466_v59, %v3998_v19 }
 0x550   : > { %4527 = vst [vmem:[%s7133_s18 + $0x108] sm:$0xff] %v4399_v58  ;;  %5467 = vtanh.f32 %v4001_v13  ;;  %v2999_v50 = vadd.f32 %v7375_v52, %v2782_v49 }
 0x552   : > { %v3127_v61 = vmax.f32 %v2999_v50, 0.0 }
 0x553   : > { %v1897_v45 = vpop.f32.mrf.mxu1  ;;  %v3458_v40 = vpop.f32.mrf.mxu0 }
 0x554   : > { %v1898_v44 = vadd.f32 %v7272_v29, %v1897_v45  ;;  %v3459_v62 = vadd.f32 %v7231_v57, %v3458_v40 }
 0x555   : > { %v2783_v21 = vpop.f32.mrf.mxu3  ;;  %v4002_v8 = vpop.f32.mrf.mxu2 }
 0x556   : > { %v5468_v4 = vpop.eup %5467  ;;  %v2084_v5 = vmax.f32 %v1898_v44, 0.0  ;;  %v3699_v9 = vmax.f32 %v3459_v62, 0.0  ;;  %v2784_v55 = vadd.f32 %v2783_v21, %v8281_v7  ;;  %v4003_v36 = vadd.f32 %v7354_v22, %v4002_v8  ;;  %v8285_v62 = vld [vmem:[#allocation60_spill] sm:$0xff]  ;;  %v8286_v21 = vld [vmem:[#allocation26_spill] sm:$0xff] }
 0x557   : > { %v4400_v42 = vsel %vm4237_vm1, %v5468_v4, %v4001_v13  ;;  %v7475_v7 = vld [vmem:[%s8136_s9] ss:$0 sm:$0xff] }
 0x558   : > { %4528 = vst [vmem:[%s7133_s18 + $0x110] sm:$0xff] %v4400_v42  ;;  %v3000_v23 = vadd.f32 %v7375_v52, %v2784_v55  ;;  %5469 = vtanh.f32 %v4003_v36  ;;  %v2167_v41 = vpack.c.bf16 %v2084_v5, %v2083_v12  ;;  %v3800_v24 = vpack.c.bf16 %v3699_v9, %v3698_v28 }
 0x55a   : > { %v3128_v0 = vmax.f32 %v3000_v23, 0.0  ;;  %2825 = vmatmul.bf16.gmra.mxu3 %v2167_v41  ;;  %4044 = vmatmul.bf16.gmra.mxu2 %v3800_v24 }
 0x55b   : > { %v1900_v3 = vpop.f32.mrf.mxu1  ;;  %v3461_v39 = vpop.f32.mrf.mxu0 }
 0x55c   : > { %v3220_v1 = vpack.c.bf16 %v3128_v0, %v3127_v61  ;;  %v1901_v60 = vadd.f32 %v7272_v29, %v1900_v3  ;;  %v3462_v48 = vadd.f32 %v7231_v57, %v3461_v39  ;;  %v8287_v3 = vld [vmem:[#allocation28_spill] sm:$0xff] }
 0x55d   : > { %v2786_v35 = vpop.f32.mrf.mxu3  ;;  %v4005_v30 = vpop.f32.mrf.mxu2 }
 0x55e   : > { %v5470_v32 = vpop.eup %5469  ;;  %v4006_v11 = vadd.f32 %v7354_v22, %v4005_v30  ;;  %1939 = vmatmul.bf16.gmra.mxu1 %v8282_v54  ;;  %3500 = vmatmul.bf16.gmra.mxu0 %v3220_v1  ;;  %v2787_v56 = vadd.f32 %v2786_v35, %v8283_v51  ;;  %v2085_v53 = vmax.f32 %v1901_v60, 0.0  ;;  %v3700_v19 = vmax.f32 %v3462_v48, 0.0 }
 0x55f   : > { %v4401_v15 = vsel %vm4237_vm1, %v5470_v32, %v4003_v36 }
 0x560   : > { %4529 = vst [vmem:[%s7133_s18 + $0x118] sm:$0xff] %v4401_v15  ;;  %5471 = vtanh.f32 %v4006_v11  ;;  %v3001_v17 = vadd.f32 %v7375_v52, %v2787_v56 }
 0x562   : > { %v3129_v2 = vmax.f32 %v3001_v17, 0.0 }
 0x563   : > { %v1902_v46 = vpop.f32.mrf.mxu1  ;;  %v3463_v25 = vpop.f32.mrf.mxu0 }
 0x564   : > { %v1903_v38 = vadd.f32 %v7272_v29, %v1902_v46  ;;  %v3464_v16 = vadd.f32 %v7231_v57, %v3463_v25 }
 0x565   : > { %v2788_v31 = vpop.f32.mrf.mxu3  ;;  %v4007_v37 = vpop.f32.mrf.mxu2 }
 0x566   : > { %v5472_v10 = vpop.eup %5471  ;;  %v2086_v33 = vmax.f32 %v1903_v38, 0.0  ;;  %v3701_v14 = vmax.f32 %v3464_v16, 0.0  ;;  %v2789_v6 = vadd.f32 %v2788_v31, %v8284_v18  ;;  %v4008_v43 = vadd.f32 %v7354_v22, %v4007_v37  ;;  %v8288_v16 = vld [vmem:[#allocation63_spill] sm:$0xff]  ;;  %v8289_v31 = vld [vmem:[#allocation29_spill] sm:$0xff] }
 0x567   : > { %v4402_v27 = vsel %vm4237_vm1, %v5472_v10, %v4006_v11 }
 0x568   : > { %4530 = vst [vmem:[%s7133_s18 + $0x120] sm:$0xff] %v4402_v27  ;;  %v3002_v63 = vadd.f32 %v7375_v52, %v2789_v6  ;;  %5473 = vtanh.f32 %v4008_v43  ;;  %v2168_v59 = vpack.c.bf16 %v2086_v33, %v2085_v53  ;;  %v3801_v13 = vpack.c.bf16 %v3701_v14, %v3700_v19 }
 0x56a   : > { %v3130_v58 = vmax.f32 %v3002_v63, 0.0  ;;  %2830 = vmatmul.bf16.gmra.mxu3 %v2168_v59  ;;  %4049 = vmatmul.bf16.gmra.mxu2 %v3801_v13 }
 0x56b   : > { %v1905_v26 = vpop.f32.mrf.mxu1  ;;  %v3466_v20 = vpop.f32.mrf.mxu0 }
 0x56c   : > { %v3221_v47 = vpack.c.bf16 %v3130_v58, %v3129_v2  ;;  %v1906_v28 = vadd.f32 %v7272_v29, %v1905_v26  ;;  %v3467_v50 = vadd.f32 %v7231_v57, %v3466_v20  ;;  %v8290_v26 = vld [vmem:[#allocation31_spill] sm:$0xff] }
 0x56d   : > { %v2791_v49 = vpop.f32.mrf.mxu3  ;;  %v4010_v45 = vpop.f32.mrf.mxu2 }
 0x56e   : > { %v5474_v40 = vpop.eup %5473  ;;  %v4011_v44 = vadd.f32 %v7354_v22, %v4010_v45  ;;  %1944 = vmatmul.bf16.gmra.mxu1 %v8285_v62  ;;  %3505 = vmatmul.bf16.gmra.mxu0 %v3221_v47  ;;  %v2792_v8 = vadd.f32 %v2791_v49, %v8286_v21  ;;  %v2087_v36 = vmax.f32 %v1906_v28, 0.0  ;;  %v3702_v42 = vmax.f32 %v3467_v50, 0.0 }
 0x56f   : > { %v4403_v12 = vsel %vm4237_vm1, %v5474_v40, %v4008_v43 }
 0x570   : > { %4531 = vst [vmem:[%s7133_s18 + $0x128] sm:$0xff] %v4403_v12  ;;  %5475 = vtanh.f32 %v4011_v44  ;;  %v3003_v23 = vadd.f32 %v7375_v52, %v2792_v8 }
 0x572   : > { %v3131_v54 = vmax.f32 %v3003_v23, 0.0 }
 0x573   : > { %v1907_v4 = vpop.f32.mrf.mxu1  ;;  %v3468_v5 = vpop.f32.mrf.mxu0 }
 0x574   : > { %v1908_v9 = vadd.f32 %v7272_v29, %v1907_v4  ;;  %v3469_v55 = vadd.f32 %v7475_v7, %v3468_v5 }
 0x575   : > { %v2793_v41 = vpop.f32.mrf.mxu3  ;;  %v4012_v57 = vpop.f32.mrf.mxu2 }
 0x576   : > { %v5476_v24 = vpop.eup %5475  ;;  %v2088_v61 = vmax.f32 %v1908_v9, 0.0  ;;  %v3703_v0 = vmax.f32 %v3469_v55, 0.0  ;;  %v2794_v39 = vadd.f32 %v2793_v41, %v8287_v3  ;;  %v4013_v1 = vadd.f32 %v7354_v22, %v4012_v57  ;;  %v8291_v55 = vld [vmem:[#allocation66_spill] sm:$0xff]  ;;  %v8292_v41 = vld [vmem:[#allocation32_spill] sm:$0xff] }
 0x577   : > { %v4404_v35 = vsel %vm4237_vm1, %v5476_v24, %v4011_v44 }
 0x578   : > { %4532 = vst [vmem:[%s7133_s18 + $0x130] sm:$0xff] %v4404_v35  ;;  %v3004_v30 = vadd.f32 %v7375_v52, %v2794_v39  ;;  %5477 = vtanh.f32 %v4013_v1  ;;  %v2169_v32 = vpack.c.bf16 %v2088_v61, %v2087_v36  ;;  %v3802_v11 = vpack.c.bf16 %v3703_v0, %v3702_v42 }
 0x57a   : > { %v3132_v15 = vmax.f32 %v3004_v30, 0.0  ;;  %2835 = vmatmul.bf16.gmra.mxu3 %v2169_v32  ;;  %4054 = vmatmul.bf16.gmra.mxu2 %v3802_v11 }
 0x57b   : > { %v1910_v60 = vpop.f32.mrf.mxu1  ;;  %v3471_v48 = vpop.f32.mrf.mxu0 }
 0x57c   : > { %v3222_v51 = vpack.c.bf16 %v3132_v15, %v3131_v54  ;;  %v1911_v19 = vadd.f32 %v7272_v29, %v1910_v60  ;;  %v3472_v17 = vadd.f32 %v7475_v7, %v3471_v48  ;;  %v8293_v60 = vld [vmem:[#allocation34_spill] sm:$0xff] }
 0x57d   : > { %v2796_v56 = vpop.f32.mrf.mxu3  ;;  %v4015_v46 = vpop.f32.mrf.mxu2 }
 0x57e   : > { %v5478_v25 = vpop.eup %5477  ;;  %v4016_v38 = vadd.f32 %v7354_v22, %v4015_v46  ;;  %1949 = vmatmul.bf16.gmra.mxu1 %v8288_v16  ;;  %3510 = vmatmul.bf16.gmra.mxu0 %v3222_v51  ;;  %v2797_v37 = vadd.f32 %v2796_v56, %v8289_v31  ;;  %v2089_v6 = vmax.f32 %v1911_v19, 0.0  ;;  %v3704_v43 = vmax.f32 %v3472_v17, 0.0 }
 0x57f   : > { %v4405_v53 = vsel %vm4237_vm1, %v5478_v25, %v4013_v1 }
 0x580   : > { %4533 = vst [vmem:[%s7133_s18 + $0x138] sm:$0xff] %v4405_v53  ;;  %5479 = vtanh.f32 %v4016_v38  ;;  %v3005_v27 = vadd.f32 %v7375_v52, %v2797_v37 }
 0x582   : > { %v3133_v62 = vmax.f32 %v3005_v27, 0.0 }
 0x583   : > { %v1912_v10 = vpop.f32.mrf.mxu1  ;;  %v3473_v33 = vpop.f32.mrf.mxu0 }
 0x584   : > { %v1913_v14 = vadd.f32 %v7272_v29, %v1912_v10  ;;  %v3474_v18 = vadd.f32 %v7475_v7, %v3473_v33 }
 0x585   : > { %v2798_v63 = vpop.f32.mrf.mxu3  ;;  %v4017_v59 = vpop.f32.mrf.mxu2 }
 0x586   : > { %v5480_v13 = vpop.eup %5479  ;;  %v2090_v2 = vmax.f32 %v1913_v14, 0.0  ;;  %v3705_v58 = vmax.f32 %v3474_v18, 0.0  ;;  %v2799_v20 = vadd.f32 %v2798_v63, %v8290_v26  ;;  %v4018_v47 = vadd.f32 %v7354_v22, %v4017_v59  ;;  %v8294_v14 = vld [vmem:[#allocation69_spill] sm:$0xff]  ;;  %v8295_v63 = vld [vmem:[#allocation35_spill] sm:$0xff] }
 0x587   : > { %v4406_v49 = vsel %vm4237_vm1, %v5480_v13, %v4016_v38 }
 0x588   : > { %4534 = vst [vmem:[%s7133_s18 + $0x140] sm:$0xff] %v4406_v49  ;;  %v3006_v45 = vadd.f32 %v7375_v52, %v2799_v20  ;;  %5481 = vtanh.f32 %v4018_v47  ;;  %v2170_v40 = vpack.c.bf16 %v2090_v2, %v2089_v6  ;;  %v3803_v44 = vpack.c.bf16 %v3705_v58, %v3704_v43  ;;  %v7527_v6 = vld [vmem:[%s8131_s4] ss:$0 sm:$0xff] }
 0x58a   : > { %v3134_v12 = vmax.f32 %v3006_v45, 0.0  ;;  %2840 = vmatmul.bf16.gmra.mxu3 %v2170_v40  ;;  %4059 = vmatmul.bf16.gmra.mxu2 %v3803_v44 }
 0x58b   : > { %v1915_v28 = vpop.f32.mrf.mxu1  ;;  %v3476_v50 = vpop.f32.mrf.mxu0 }
 0x58c   : > { %v3223_v21 = vpack.c.bf16 %v3134_v12, %v3133_v62  ;;  %v1916_v42 = vadd.f32 %v7272_v29, %v1915_v28  ;;  %v3477_v23 = vadd.f32 %v7475_v7, %v3476_v50  ;;  %v8296_v28 = vld [vmem:[#allocation37_spill] sm:$0xff] }
 0x58d   : > { %v2801_v8 = vpop.f32.mrf.mxu3  ;;  %v4020_v4 = vpop.f32.mrf.mxu2 }
 0x58e   : > { %v5482_v5 = vpop.eup %5481  ;;  %v4021_v9 = vadd.f32 %v7354_v22, %v4020_v4  ;;  %1954 = vmatmul.bf16.gmra.mxu1 %v8291_v55  ;;  %3515 = vmatmul.bf16.gmra.mxu0 %v3223_v21  ;;  %v2802_v57 = vadd.f32 %v2801_v8, %v8292_v41  ;;  %v2091_v39 = vmax.f32 %v1916_v42, 0.0  ;;  %v3706_v1 = vmax.f32 %v3477_v23, 0.0 }
 0x58f   : > { %v4407_v36 = vsel %vm4237_vm1, %v5482_v5, %v4018_v47 }
 0x590   : > { %4535 = vst [vmem:[%s7133_s18 + $0x148] sm:$0xff] %v4407_v36  ;;  %5483 = vtanh.f32 %v4021_v9  ;;  %v3007_v35 = vadd.f32 %v7375_v52, %v2802_v57 }
 0x592   : > { %v3135_v38 = vmax.f32 %v3007_v35, 0.0 }
 0x593   : > { %v1917_v24 = vpop.f32.mrf.mxu1  ;;  %v3478_v61 = vpop.f32.mrf.mxu0 }
 0x594   : > { %v1918_v0 = vadd.f32 %v7272_v29, %v1917_v24  ;;  %v3479_v3 = vadd.f32 %v7475_v7, %v3478_v61 }
 0x595   : > { %v2803_v30 = vpop.f32.mrf.mxu3  ;;  %v4022_v32 = vpop.f32.mrf.mxu2 }
 0x596   : > { %v5484_v11 = vpop.eup %5483  ;;  %v2092_v54 = vmax.f32 %v1918_v0, 0.0  ;;  %v3707_v15 = vmax.f32 %v3479_v3, 0.0  ;;  %v2804_v48 = vadd.f32 %v2803_v30, %v8293_v60  ;;  %v4023_v51 = vadd.f32 %v7354_v22, %v4022_v32  ;;  %v8297_v3 = vld [vmem:[#allocation72_spill] sm:$0xff]  ;;  %v8298_v30 = vld [vmem:[#allocation38_spill] sm:$0xff] }
 0x597   : > { %v4408_v56 = vsel %vm4237_vm1, %v5484_v11, %v4021_v9 }
 0x598   : > { %4536 = vst [vmem:[%s7133_s18 + $0x150] sm:$0xff] %v4408_v56  ;;  %v3008_v29 = vadd.f32 %v7375_v52, %v2804_v48  ;;  %5485 = vtanh.f32 %v4023_v51  ;;  %v2171_v46 = vpack.c.bf16 %v2092_v54, %v2091_v39  ;;  %v3804_v25 = vpack.c.bf16 %v3707_v15, %v3706_v1 }
 0x59a   : > { %v3136_v16 = vmax.f32 %v3008_v29, 0.0  ;;  %2845 = vmatmul.bf16.gmra.mxu3 %v2171_v46  ;;  %4064 = vmatmul.bf16.gmra.mxu2 %v3804_v25 }
 0x59b   : > { %v1920_v53 = vpop.f32.mrf.mxu1  ;;  %v3481_v19 = vpop.f32.mrf.mxu0 }
 0x59c   : > { %v3224_v17 = vpack.c.bf16 %v3136_v16, %v3135_v38  ;;  %v1921_v43 = vadd.f32 %v7527_v6, %v1920_v53  ;;  %v3482_v27 = vadd.f32 %v7475_v7, %v3481_v19  ;;  %v8299_v53 = vld [vmem:[#allocation40_spill] sm:$0xff] }
 0x59d   : > { %v2806_v31 = vpop.f32.mrf.mxu3  ;;  %v4025_v37 = vpop.f32.mrf.mxu2 }
 0x59e   : > { %v5486_v10 = vpop.eup %5485  ;;  %v4026_v33 = vadd.f32 %v7354_v22, %v4025_v37  ;;  %1959 = vmatmul.bf16.gmra.mxu1 %v8294_v14  ;;  %3520 = vmatmul.bf16.gmra.mxu0 %v3224_v17  ;;  %v2807_v59 = vadd.f32 %v2806_v31, %v8295_v63  ;;  %v2093_v20 = vmax.f32 %v1921_v43, 0.0  ;;  %v3708_v47 = vmax.f32 %v3482_v27, 0.0 }
 0x59f   : > { %v4409_v18 = vsel %vm4237_vm1, %v5486_v10, %v4023_v51 }
 0x5a0   : > { %4537 = vst [vmem:[%s7133_s18 + $0x158] sm:$0xff] %v4409_v18  ;;  %5487 = vtanh.f32 %v4026_v33  ;;  %v3009_v49 = vadd.f32 %v7375_v52, %v2807_v59 }
 0x5a2   : > { %v3137_v55 = vmax.f32 %v3009_v49, 0.0 }
 0x5a3   : > { %v1922_v13 = vpop.f32.mrf.mxu1  ;;  %v3483_v2 = vpop.f32.mrf.mxu0 }
 0x5a4   : > { %v1923_v58 = vadd.f32 %v7527_v6, %v1922_v13  ;;  %v3484_v26 = vadd.f32 %v7475_v7, %v3483_v2 }
 0x5a5   : > { %v2808_v45 = vpop.f32.mrf.mxu3  ;;  %v4027_v40 = vpop.f32.mrf.mxu2 }
 0x5a6   : > { %v5488_v44 = vpop.eup %5487  ;;  %v2094_v62 = vmax.f32 %v1923_v58, 0.0  ;;  %v3709_v12 = vmax.f32 %v3484_v26, 0.0  ;;  %v2809_v50 = vadd.f32 %v2808_v45, %v8296_v28  ;;  %v4028_v21 = vadd.f32 %v7354_v22, %v4027_v40  ;;  %v8300_v26 = vld [vmem:[#allocation75_spill] sm:$0xff]  ;;  %v8301_v45 = vld [vmem:[#allocation41_spill] sm:$0xff] }
 0x5a7   : > { %v4410_v8 = vsel %vm4237_vm1, %v5488_v44, %v4026_v33 }
 0x5a8   : > { %4538 = vst [vmem:[%s7133_s18 + $0x160] sm:$0xff] %v4410_v8  ;;  %v3010_v4 = vadd.f32 %v7375_v52, %v2809_v50  ;;  %5489 = vtanh.f32 %v4028_v21  ;;  %v2172_v5 = vpack.c.bf16 %v2094_v62, %v2093_v20  ;;  %v3805_v9 = vpack.c.bf16 %v3709_v12, %v3708_v47 }
 0x5aa   : > { %v3138_v36 = vmax.f32 %v3010_v4, 0.0  ;;  %2850 = vmatmul.bf16.gmra.mxu3 %v2172_v5  ;;  %4069 = vmatmul.bf16.gmra.mxu2 %v3805_v9 }
 0x5ab   : > { %v1925_v42 = vpop.f32.mrf.mxu1  ;;  %v3486_v23 = vpop.f32.mrf.mxu0 }
 0x5ac   : > { %v3225_v41 = vpack.c.bf16 %v3138_v36, %v3137_v55  ;;  %v1926_v1 = vadd.f32 %v7527_v6, %v1925_v42  ;;  %v3487_v35 = vadd.f32 %v7475_v7, %v3486_v23  ;;  %v8302_v42 = vld [vmem:[#allocation43_spill] sm:$0xff] }
 0x5ad   : > { %v2811_v57 = vpop.f32.mrf.mxu3  ;;  %v4030_v24 = vpop.f32.mrf.mxu2 }
 0x5ae   : > { %v5490_v61 = vpop.eup %5489  ;;  %v4031_v0 = vadd.f32 %v7354_v22, %v4030_v24  ;;  %1964 = vmatmul.bf16.gmra.mxu1 %v8297_v3  ;;  %3525 = vmatmul.bf16.gmra.mxu0 %v3225_v41  ;;  %v2812_v32 = vadd.f32 %v2811_v57, %v8298_v30  ;;  %v2095_v48 = vmax.f32 %v1926_v1, 0.0  ;;  %v3710_v51 = vmax.f32 %v3487_v35, 0.0 }
 0x5af   : > { %v4411_v39 = vsel %vm4237_vm1, %v5490_v61, %v4028_v21 }
 0x5b0   : > { %4539 = vst [vmem:[%s7133_s18 + $0x168] sm:$0xff] %v4411_v39  ;;  %5491 = vtanh.f32 %v4031_v0  ;;  %v3011_v56 = vadd.f32 %v7375_v52, %v2812_v32 }
 0x5b2   : > { %v3139_v14 = vmax.f32 %v3011_v56, 0.0 }
 0x5b3   : > { %v1927_v11 = vpop.f32.mrf.mxu1  ;;  %v3488_v54 = vpop.f32.mrf.mxu0 }
 0x5b4   : > { %v1928_v15 = vadd.f32 %v7527_v6, %v1927_v11  ;;  %v3489_v60 = vadd.f32 %v7475_v7, %v3488_v54 }
 0x5b5   : > { %v2813_v29 = vpop.f32.mrf.mxu3  ;;  %v4032_v46 = vpop.f32.mrf.mxu2 }
 0x5b6   : > { %v5492_v25 = vpop.eup %5491  ;;  %v2096_v38 = vmax.f32 %v1928_v15, 0.0  ;;  %v3711_v16 = vmax.f32 %v3489_v60, 0.0  ;;  %v2814_v19 = vadd.f32 %v2813_v29, %v8299_v53  ;;  %v4033_v17 = vadd.f32 %v7354_v22, %v4032_v46  ;;  %v8303_v60 = vld [vmem:[#allocation78_spill] sm:$0xff]  ;;  %v8304_v29 = vld [vmem:[#allocation44_spill] sm:$0xff] }
 0x5b7   : > { %v4412_v31 = vsel %vm4237_vm1, %v5492_v25, %v4031_v0 }
 0x5b8   : > { %4540 = vst [vmem:[%s7133_s18 + $0x170] sm:$0xff] %v4412_v31  ;;  %v3012_v37 = vadd.f32 %v7375_v52, %v2814_v19  ;;  %5493 = vtanh.f32 %v4033_v17  ;;  %v2173_v10 = vpack.c.bf16 %v2096_v38, %v2095_v48  ;;  %v3806_v33 = vpack.c.bf16 %v3711_v16, %v3710_v51 }
 0x5ba   : > { %v3140_v18 = vmax.f32 %v3012_v37, 0.0  ;;  %2855 = vmatmul.bf16.gmra.mxu3 %v2173_v10  ;;  %4074 = vmatmul.bf16.gmra.mxu2 %v3806_v33 }
 0x5bb   : > { %v1930_v43 = vpop.f32.mrf.mxu1  ;;  %v3491_v27 = vpop.f32.mrf.mxu0 }
 0x5bc   : > { %v3226_v63 = vpack.c.bf16 %v3140_v18, %v3139_v14  ;;  %v1931_v47 = vadd.f32 %v7527_v6, %v1930_v43  ;;  %v3492_v49 = vadd.f32 %v7475_v7, %v3491_v27  ;;  %v8305_v43 = vld [vmem:[#allocation46_spill] sm:$0xff] }
 0x5bd   : > { %v2816_v59 = vpop.f32.mrf.mxu3  ;;  %v4035_v13 = vpop.f32.mrf.mxu2 }
 0x5be   : > { %v5494_v2 = vpop.eup %5493  ;;  %v4036_v58 = vadd.f32 %v7354_v22, %v4035_v13  ;;  %1969 = vmatmul.bf16.gmra.mxu1 %v8300_v26  ;;  %3530 = vmatmul.bf16.gmra.mxu0 %v3226_v63  ;;  %v2817_v40 = vadd.f32 %v2816_v59, %v8301_v45  ;;  %v2097_v50 = vmax.f32 %v1931_v47, 0.0  ;;  %v3712_v21 = vmax.f32 %v3492_v49, 0.0 }
 0x5bf   : > { %v4413_v20 = vsel %vm4237_vm1, %v5494_v2, %v4033_v17 }
 0x5c0   : > { %4541 = vst [vmem:[%s7133_s18 + $0x178] sm:$0xff] %v4413_v20  ;;  %5495 = vtanh.f32 %v4036_v58  ;;  %v3013_v8 = vadd.f32 %v7375_v52, %v2817_v40 }
 0x5c2   : > { %v3141_v3 = vmax.f32 %v3013_v8, 0.0 }
 0x5c3   : > { %v1932_v44 = vpop.f32.mrf.mxu1  ;;  %v3493_v62 = vpop.f32.mrf.mxu0 }
 0x5c4   : > { %v1933_v12 = vadd.f32 %v7527_v6, %v1932_v44  ;;  %v3494_v28 = vadd.f32 %v7475_v7, %v3493_v62 }
 0x5c5   : > { %v2818_v4 = vpop.f32.mrf.mxu3  ;;  %v4037_v5 = vpop.f32.mrf.mxu2 }
 0x5c6   : > { %v5496_v9 = vpop.eup %5495  ;;  %v2098_v55 = vmax.f32 %v1933_v12, 0.0  ;;  %v3713_v36 = vmax.f32 %v3494_v28, 0.0  ;;  %v2819_v23 = vadd.f32 %v2818_v4, %v8302_v42  ;;  %v4038_v41 = vadd.f32 %v7354_v22, %v4037_v5  ;;  %v8306_v28 = vld [vmem:[#allocation80_spill] sm:$0xff]  ;;  %v8307_v4 = vld [vmem:[#allocation47_spill] sm:$0xff] }
 0x5c7   : > { %v4414_v57 = vsel %vm4237_vm1, %v5496_v9, %v4036_v58 }
 0x5c8   : > { %4542 = vst [vmem:[%s7133_s18 + $0x180] sm:$0xff] %v4414_v57  ;;  %v3014_v24 = vadd.f32 %v7375_v52, %v2819_v23  ;;  %5497 = vtanh.f32 %v4038_v41  ;;  %v2174_v61 = vpack.c.bf16 %v2098_v55, %v2097_v50  ;;  %v3807_v0 = vpack.c.bf16 %v3713_v36, %v3712_v21 }
 0x5ca   : > { %v3142_v39 = vmax.f32 %v3014_v24, 0.0  ;;  %2860 = vmatmul.bf16.gmra.mxu3 %v2174_v61  ;;  %4079 = vmatmul.bf16.gmra.mxu2 %v3807_v0 }
 0x5cb   : > { %v1935_v1 = vpop.f32.mrf.mxu1  ;;  %v3496_v35 = vpop.f32.mrf.mxu0 }
 0x5cc   : > { %v3227_v30 = vpack.c.bf16 %v3142_v39, %v3141_v3  ;;  %v1936_v51 = vadd.f32 %v7527_v6, %v1935_v1  ;;  %v3497_v56 = vadd.f32 %v7475_v7, %v3496_v35  ;;  %v8308_v39 = vld [vmem:[#allocation49_spill] sm:$0xff]  ;;  %v7607_v35 = vld [vmem:[%s8138_s11] ss:$0 sm:$0xff] }
 0x5cd   : > { %v2821_v32 = vpop.f32.mrf.mxu3  ;;  %v4040_v11 = vpop.f32.mrf.mxu2 }
 0x5ce   : > { %v5498_v54 = vpop.eup %5497  ;;  %v4041_v15 = vadd.f32 %v7354_v22, %v4040_v11  ;;  %1974 = vmatmul.bf16.gmra.mxu1 %v8303_v60  ;;  %3535 = vmatmul.bf16.gmra.mxu0 %v3227_v30  ;;  %v2822_v46 = vadd.f32 %v2821_v32, %v8304_v29  ;;  %v2099_v19 = vmax.f32 %v1936_v51, 0.0  ;;  %v3714_v17 = vmax.f32 %v3497_v56, 0.0 }
 0x5cf   : > { %v4415_v48 = vsel %vm4237_vm1, %v5498_v54, %v4038_v41 }
 0x5d0   : > { %4543 = vst [vmem:[%s7133_s18 + $0x188] sm:$0xff] %v4415_v48  ;;  %5499 = vtanh.f32 %v4041_v15  ;;  %v3015_v31 = vadd.f32 %v7375_v52, %v2822_v46 }
 0x5d2   : > { %v3143_v26 = vmax.f32 %v3015_v31, 0.0  ;;  %v8310_v31 = vld [vmem:[#allocation50_spill] sm:$0xff] }
 0x5d3   : > { %v1937_v25 = vpop.f32.mrf.mxu1  ;;  %v3498_v38 = vpop.f32.mrf.mxu0 }
 0x5d4   : > { %v1938_v16 = vadd.f32 %v7527_v6, %v1937_v25  ;;  %v3499_v53 = vadd.f32 %v7475_v7, %v3498_v38 }
 0x5d5   : > { %v2823_v37 = vpop.f32.mrf.mxu3  ;;  %v4042_v10 = vpop.f32.mrf.mxu2 }
 0x5d6   : > { %v5500_v33 = vpop.eup %5499  ;;  %v2100_v14 = vmax.f32 %v1938_v16, 0.0  ;;  %v3715_v18 = vmax.f32 %v3499_v53, 0.0  ;;  %v2824_v27 = vadd.f32 %v2823_v37, %v8305_v43  ;;  %v4043_v63 = vadd.f32 %v7354_v22, %v4042_v10  ;;  %v8309_v53 = vld [vmem:[#allocation83_spill] sm:$0xff] }
 0x5d7   : > { %v4416_v59 = vsel %vm4237_vm1, %v5500_v33, %v4041_v15 }
 0x5d8   : > { %4544 = vst [vmem:[%s7133_s18 + $0x190] sm:$0xff] %v4416_v59  ;;  %v3016_v13 = vadd.f32 %v7375_v52, %v2824_v27  ;;  %5501 = vtanh.f32 %v4043_v63  ;;  %v2175_v2 = vpack.c.bf16 %v2100_v14, %v2099_v19  ;;  %v3808_v58 = vpack.c.bf16 %v3715_v18, %v3714_v17 }
 0x5da   : > { %v3144_v20 = vmax.f32 %v3016_v13, 0.0  ;;  %2865 = vmatmul.bf16.gmra.mxu3 %v2175_v2  ;;  %4084 = vmatmul.bf16.gmra.mxu2 %v3808_v58 }
 0x5db   : > { %v1940_v47 = vpop.f32.mrf.mxu1  ;;  %v3501_v49 = vpop.f32.mrf.mxu0 }
 0x5dc   : > { %v3228_v45 = vpack.c.bf16 %v3144_v20, %v3143_v26  ;;  %v1941_v21 = vadd.f32 %v7527_v6, %v1940_v47  ;;  %v3502_v8 = vadd.f32 %v7475_v7, %v3501_v49  ;;  %v8311_v47 = vld [vmem:[#allocation52_spill] sm:$0xff] }
 0x5dd   : > { %v2826_v40 = vpop.f32.mrf.mxu3  ;;  %v4045_v44 = vpop.f32.mrf.mxu2 }
 0x5de   : > { %v5502_v62 = vpop.eup %5501  ;;  %v4046_v12 = vadd.f32 %v7354_v22, %v4045_v44  ;;  %1979 = vmatmul.bf16.gmra.mxu1 %v8306_v28  ;;  %3540 = vmatmul.bf16.gmra.mxu0 %v3228_v45  ;;  %v2827_v5 = vadd.f32 %v2826_v40, %v8307_v4  ;;  %v2101_v42 = vmax.f32 %v1941_v21, 0.0  ;;  %v3716_v23 = vmax.f32 %v3502_v8, 0.0 }
 0x5df   : > { %v4417_v50 = vsel %vm4237_vm1, %v5502_v62, %v4043_v63  ;;  %v7627_v63 = vld [vmem:[%s8134_s7] ss:$0 sm:$0xff] }
 0x5e0   : > { %4545 = vst [vmem:[%s7133_s18 + $0x198] sm:$0xff] %v4417_v50  ;;  %5503 = vtanh.f32 %v4046_v12  ;;  %v3017_v41 = vadd.f32 %v7375_v52, %v2827_v5 }
 0x5e2   : > { %v3145_v60 = vmax.f32 %v3017_v41, 0.0 }
 0x5e3   : > { %v1942_v9 = vpop.f32.mrf.mxu1  ;;  %v3503_v55 = vpop.f32.mrf.mxu0 }
 0x5e4   : > { %v1943_v36 = vadd.f32 %v7527_v6, %v1942_v9  ;;  %v3504_v22 = vadd.f32 %v7475_v7, %v3503_v55 }
 0x5e5   : > { %v2828_v57 = vpop.f32.mrf.mxu3  ;;  %v4047_v24 = vpop.f32.mrf.mxu2 }
 0x5e6   : > { %v5504_v61 = vpop.eup %5503  ;;  %v2102_v0 = vmax.f32 %v1943_v36, 0.0  ;;  %v3717_v3 = vmax.f32 %v3504_v22, 0.0  ;;  %v2829_v1 = vadd.f32 %v2828_v57, %v8308_v39  ;;  %v4048_v30 = vadd.f32 %v7607_v35, %v4047_v24  ;;  %v8312_v22 = vld [vmem:[#allocation86_spill] sm:$0xff]  ;;  %v8313_v57 = vld [vmem:[#allocation53_spill] sm:$0xff] }
 0x5e7   : > { %v4418_v32 = vsel %vm4237_vm1, %v5504_v61, %v4046_v12 }
 0x5e8   : > { %4546 = vst [vmem:[%s7133_s18 + $0x1a0] sm:$0xff] %v4418_v32  ;;  %v2176_v11 = vpack.c.bf16 %v2102_v0, %v2101_v42  ;;  %v3018_v54 = vadd.f32 %v7375_v52, %v2829_v1  ;;  %5505 = vtanh.f32 %v4048_v30  ;;  %v3809_v15 = vpack.c.bf16 %v3717_v3, %v3716_v23 }
 0x5ea   : > { %v3146_v48 = vmax.f32 %v3018_v54, 0.0  ;;  %2870 = vmatmul.bf16.gmra.mxu3 %v2176_v11  ;;  %4089 = vmatmul.bf16.gmra.mxu2 %v3809_v15 }
 0x5eb   : > { %v1945_v51 = vpop.f32.mrf.mxu1  ;;  %v3506_v56 = vpop.f32.mrf.mxu0 }
 0x5ec   : > { %v3229_v29 = vpack.c.bf16 %v3146_v48, %v3145_v60  ;;  %v1946_v19 = vadd.f32 %v7527_v6, %v1945_v51  ;;  %v3507_v17 = vadd.f32 %v7475_v7, %v3506_v56  ;;  %v8314_v51 = vld [vmem:[#allocation55_spill] sm:$0xff] }
 0x5ed   : > { %v2831_v46 = vpop.f32.mrf.mxu3  ;;  %v4050_v25 = vpop.f32.mrf.mxu2 }
 0x5ee   : > { %v5506_v38 = vpop.eup %5505  ;;  %v4051_v16 = vadd.f32 %v7607_v35, %v4050_v25  ;;  %1984 = vmatmul.bf16.gmra.mxu1 %v8309_v53  ;;  %3545 = vmatmul.bf16.gmra.mxu0 %v3229_v29  ;;  %v2832_v37 = vadd.f32 %v2831_v46, %v8310_v31  ;;  %v2103_v43 = vmax.f32 %v1946_v19, 0.0  ;;  %v3718_v27 = vmax.f32 %v3507_v17, 0.0 }
 0x5ef   : > { %v4419_v52 = vsel %vm4237_vm1, %v5506_v38, %v4048_v30 }
 0x5f0   : > { %4547 = vst [vmem:[%s7133_s18 + $0x1a8] sm:$0xff] %v4419_v52  ;;  %5507 = vtanh.f32 %v4051_v16  ;;  %v3019_v59 = vadd.f32 %v7627_v63, %v2832_v37 }
 0x5f2   : > { %v3147_v28 = vmax.f32 %v3019_v59, 0.0  ;;  %v8315_v59 = vld [vmem:[#allocation56_spill] sm:$0xff] }
 0x5f3   : > { %v1947_v10 = vpop.f32.mrf.mxu1  ;;  %v3508_v33 = vpop.f32.mrf.mxu0 }
 0x5f4   : > { %v1948_v14 = vadd.f32 %v7527_v6, %v1947_v10  ;;  %v3509_v18 = vadd.f32 %v7475_v7, %v3508_v33 }
 0x5f5   : > { %v2833_v13 = vpop.f32.mrf.mxu3  ;;  %v4052_v2 = vpop.f32.mrf.mxu2 }
 0x5f6   : > { %v5508_v58 = vpop.eup %5507  ;;  %v2104_v26 = vmax.f32 %v1948_v14, 0.0  ;;  %v3719_v20 = vmax.f32 %v3509_v18, 0.0  ;;  %v2834_v49 = vadd.f32 %v2833_v13, %v8311_v47  ;;  %v4053_v45 = vadd.f32 %v7607_v35, %v4052_v2 }
 0x5f7   : > { %v4420_v40 = vsel %vm4237_vm1, %v5508_v58, %v4051_v16 }
 0x5f8   : > { %4548 = vst [vmem:[%s7133_s18 + $0x1b0] sm:$0xff] %v4420_v40  ;;  %v2177_v44 = vpack.c.bf16 %v2104_v26, %v2103_v43  ;;  %v3020_v62 = vadd.f32 %v7627_v63, %v2834_v49  ;;  %5509 = vtanh.f32 %v4053_v45  ;;  %v3810_v12 = vpack.c.bf16 %v3719_v20, %v3718_v27 }
 0x5fa   : > { %v3148_v50 = vmax.f32 %v3020_v62, 0.0  ;;  %2875 = vmatmul.bf16.gmra.mxu3 %v2177_v44  ;;  %4094 = vmatmul.bf16.gmra.mxu2 %v3810_v12 }
 0x5fb   : > { %v1950_v21 = vpop.f32.mrf.mxu1  ;;  %v3511_v8 = vpop.f32.mrf.mxu0 }
 0x5fc   : > { %v3230_v4 = vpack.c.bf16 %v3148_v50, %v3147_v28  ;;  %v1951_v23 = vadd.f32 %v7527_v6, %v1950_v21  ;;  %v3512_v41 = vadd.f32 %v7475_v7, %v3511_v8  ;;  %v8316_v50 = vld [vmem:[#allocation58_spill] sm:$0xff] }
 0x5fd   : > { %v2836_v5 = vpop.f32.mrf.mxu3  ;;  %v4055_v9 = vpop.f32.mrf.mxu2 }
 0x5fe   : > { %v5510_v55 = vpop.eup %5509  ;;  %v4056_v36 = vadd.f32 %v7607_v35, %v4055_v9  ;;  %1989 = vmatmul.bf16.gmra.mxu1 %v8312_v22  ;;  %3550 = vmatmul.bf16.gmra.mxu0 %v3230_v4  ;;  %v2837_v24 = vadd.f32 %v2836_v5, %v8313_v57  ;;  %v2105_v1 = vmax.f32 %v1951_v23, 0.0  ;;  %v3720_v30 = vmax.f32 %v3512_v41, 0.0 }
 0x5ff   : > { %v4421_v42 = vsel %vm4237_vm1, %v5510_v55, %v4053_v45 }
 0x600   : > { %4549 = vst [vmem:[%s7133_s18 + $0x1b8] sm:$0xff] %v4421_v42  ;;  %5511 = vtanh.f32 %v4056_v36  ;;  %v3021_v32 = vadd.f32 %v7627_v63, %v2837_v24 }
 0x602   : > { %v3149_v53 = vmax.f32 %v3021_v32, 0.0 }
 0x603   : > { %v1952_v61 = vpop.f32.mrf.mxu1  ;;  %v3513_v0 = vpop.f32.mrf.mxu0 }
 0x604   : > { %v1953_v3 = vadd.f32 %v7527_v6, %v1952_v61  ;;  %v3514_v39 = vadd.f32 %v7475_v7, %v3513_v0 }
 0x605   : > { %v2838_v11 = vpop.f32.mrf.mxu3  ;;  %v4057_v54 = vpop.f32.mrf.mxu2 }
 0x606   : > { %v5512_v15 = vpop.eup %5511  ;;  %v2106_v60 = vmax.f32 %v1953_v3, 0.0  ;;  %v3721_v48 = vmax.f32 %v3514_v39, 0.0  ;;  %v2839_v56 = vadd.f32 %v2838_v11, %v8314_v51  ;;  %v4058_v29 = vadd.f32 %v7607_v35, %v4057_v54 }
 0x607   : > { %v4422_v46 = vsel %vm4237_vm1, %v5512_v15, %v4056_v36 }
 0x608   : > { %4550 = vst [vmem:[%s7133_s18 + $0x1c0] sm:$0xff] %v4422_v46  ;;  %v2178_v25 = vpack.c.bf16 %v2106_v60, %v2105_v1  ;;  %v3022_v38 = vadd.f32 %v7627_v63, %v2839_v56  ;;  %5513 = vtanh.f32 %v4058_v29  ;;  %v3811_v16 = vpack.c.bf16 %v3721_v48, %v3720_v30  ;;  %v8317_v30 = vld [vmem:[#allocation59_spill] sm:$0xff] }
 0x60a   : > { %v3150_v52 = vmax.f32 %v3022_v38, 0.0  ;;  %2880 = vmatmul.bf16.gmra.mxu3 %v2178_v25  ;;  %4099 = vmatmul.bf16.gmra.mxu2 %v3811_v16 }
 0x60b   : > { %v1955_v19 = vpop.f32.mrf.mxu1  ;;  %v3516_v17 = vpop.f32.mrf.mxu0 }
 0x60c   : > { %v3231_v31 = vpack.c.bf16 %v3150_v52, %v3149_v53  ;;  %v1956_v43 = vadd.f32 %v7527_v6, %v1955_v19  ;;  %v3517_v27 = vadd.f32 %v7475_v7, %v3516_v17  ;;  %v8318_v53 = vld [vmem:[#allocation61_spill] sm:$0xff] }
 0x60d   : > { %v2841_v37 = vpop.f32.mrf.mxu3  ;;  %v4060_v10 = vpop.f32.mrf.mxu2 }
 0x60e   : > { %v5514_v33 = vpop.eup %5513  ;;  %v4061_v14 = vadd.f32 %v7607_v35, %v4060_v10  ;;  %3555 = vmatmul.bf16.gmra.mxu0 %v3231_v31  ;;  %v2842_v13 = vadd.f32 %v2841_v37, %v8315_v59  ;;  %v2107_v47 = vmax.f32 %v1956_v43, 0.0  ;;  %v3722_v49 = vmax.f32 %v3517_v27, 0.0 }
 0x60f   : > { %v4423_v18 = vsel %vm4237_vm1, %v5514_v33, %v4058_v29 }
 0x610   : > { %4551 = vst [vmem:[%s7133_s18 + $0x1c8] sm:$0xff] %v4423_v18  ;;  %5515 = vtanh.f32 %v4061_v14  ;;  %v3023_v45 = vadd.f32 %v7627_v63, %v2842_v13 }
 0x612   : > { %v3151_v36 = vmax.f32 %v3023_v45, 0.0 }
 0x613   : > { %v1957_v2 = vpop.f32.mrf.mxu1  ;;  %v3518_v58 = vpop.f32.mrf.mxu0 }
 0x614   : > { %v1958_v26 = vadd.f32 %v7527_v6, %v1957_v2  ;;  %v3519_v20 = vadd.f32 %v7475_v7, %v3518_v58 }
 0x615   : > { %v2843_v40 = vpop.f32.mrf.mxu3  ;;  %v4062_v44 = vpop.f32.mrf.mxu2 }
 0x616   : > { %v5516_v62 = vpop.eup %5515  ;;  %v2108_v12 = vmax.f32 %v1958_v26, 0.0  ;;  %v3723_v28 = vmax.f32 %v3519_v20, 0.0  ;;  %v2844_v21 = vadd.f32 %v2843_v40, %v8316_v50  ;;  %v4063_v8 = vadd.f32 %v7607_v35, %v4062_v44 }
 0x617   : > { %v4424_v4 = vsel %vm4237_vm1, %v5516_v62, %v4061_v14 }
 0x618   : > { %4552 = vst [vmem:[%s7133_s18 + $0x1d0] sm:$0xff] %v4424_v4  ;;  %v2179_v5 = vpack.c.bf16 %v2108_v12, %v2107_v47  ;;  %v3024_v9 = vadd.f32 %v7627_v63, %v2844_v21  ;;  %5517 = vtanh.f32 %v4063_v8  ;;  %v3812_v55 = vpack.c.bf16 %v3723_v28, %v3722_v49  ;;  %v8319_v49 = vld [vmem:[#allocation62_spill] sm:$0xff] }
 0x61a   : > { %v3152_v22 = vmax.f32 %v3024_v9, 0.0  ;;  %2885 = vmatmul.bf16.gmra.mxu3 %v2179_v5  ;;  %4104 = vmatmul.bf16.gmra.mxu2 %v3812_v55 }
 0x61b   : > { %v1960_v42 = vpop.f32.mrf.mxu1  ;;  %v3521_v23 = vpop.f32.mrf.mxu0 }
 0x61c   : > { %v3232_v41 = vpack.c.bf16 %v3152_v22, %v3151_v36  ;;  %v1961_v39 = vadd.f32 %v7527_v6, %v1960_v42  ;;  %v3522_v1 = vadd.f32 %v7475_v7, %v3521_v23  ;;  %v8320_v36 = vld [vmem:[#allocation64_spill] sm:$0xff] }
 0x61d   : > { %v2846_v57 = vpop.f32.mrf.mxu3  ;;  %v4065_v24 = vpop.f32.mrf.mxu2 }
 0x61e   : > { %v5518_v61 = vpop.eup %5517  ;;  %v4066_v0 = vadd.f32 %v7607_v35, %v4065_v24  ;;  %3560 = vmatmul.bf16.gmra.mxu0 %v3232_v41  ;;  %v2847_v32 = vadd.f32 %v2846_v57, %v8317_v30  ;;  %v2109_v48 = vmax.f32 %v1961_v39, 0.0  ;;  %v3724_v51 = vmax.f32 %v3522_v1, 0.0 }
 0x61f   : > { %v4425_v3 = vsel %vm4237_vm1, %v5518_v61, %v4063_v8 }
 0x620   : > { %4553 = vst [vmem:[%s7133_s18 + $0x1d8] sm:$0xff] %v4425_v3  ;;  %5519 = vtanh.f32 %v4066_v0  ;;  %v3025_v56 = vadd.f32 %v7627_v63, %v2847_v32 }
 0x622   : > { %v3153_v33 = vmax.f32 %v3025_v56, 0.0 }
 0x623   : > { %v1962_v11 = vpop.f32.mrf.mxu1  ;;  %v3523_v54 = vpop.f32.mrf.mxu0 }
 0x624   : > { %v1963_v15 = vadd.f32 %v7527_v6, %v1962_v11  ;;  %v3524_v60 = vadd.f32 %v7475_v7, %v3523_v54 }
 0x625   : > { %v2848_v29 = vpop.f32.mrf.mxu3  ;;  %v4067_v46 = vpop.f32.mrf.mxu2 }
 0x626   : > { %v5520_v25 = vpop.eup %5519  ;;  %v2110_v38 = vmax.f32 %v1963_v15, 0.0  ;;  %v3725_v16 = vmax.f32 %v3524_v60, 0.0  ;;  %v2849_v52 = vadd.f32 %v2848_v29, %v8318_v53  ;;  %v4068_v19 = vadd.f32 %v7607_v35, %v4067_v46 }
 0x627   : > { %v4426_v17 = vsel %vm4237_vm1, %v5520_v25, %v4066_v0 }
 0x628   : > { %4554 = vst [vmem:[%s7133_s18 + $0x1e0] sm:$0xff] %v4426_v17  ;;  %v2180_v31 = vpack.c.bf16 %v2110_v38, %v2109_v48  ;;  %v3026_v37 = vadd.f32 %v7627_v63, %v2849_v52  ;;  %5521 = vtanh.f32 %v4068_v19  ;;  %v3813_v10 = vpack.c.bf16 %v3725_v16, %v3724_v51  ;;  %v8321_v51 = vld [vmem:[#allocation65_spill] sm:$0xff] }
 0x62a   : > { %v3154_v14 = vmax.f32 %v3026_v37, 0.0  ;;  %2890 = vmatmul.bf16.gmra.mxu3 %v2180_v31  ;;  %4109 = vmatmul.bf16.gmra.mxu2 %v3813_v10 }
 0x62b   : > { %v1965_v18 = vpop.f32.mrf.mxu1  ;;  %v3526_v43 = vpop.f32.mrf.mxu0 }
 0x62c   : > { %v3233_v27 = vpack.c.bf16 %v3154_v14, %v3153_v33  ;;  %v1966_v20 = vadd.f32 %v7527_v6, %v1965_v18  ;;  %v3527_v47 = vadd.f32 %v7475_v7, %v3526_v43  ;;  %v8322_v33 = vld [vmem:[#allocation67_spill] sm:$0xff] }
 0x62d   : > { %v2851_v59 = vpop.f32.mrf.mxu3  ;;  %v4070_v13 = vpop.f32.mrf.mxu2 }
 0x62e   : > { %v5522_v2 = vpop.eup %5521  ;;  %v4071_v58 = vadd.f32 %v7607_v35, %v4070_v13  ;;  %3565 = vmatmul.bf16.gmra.mxu0 %v3233_v27  ;;  %v2852_v45 = vadd.f32 %v2851_v59, %v8319_v49  ;;  %v2111_v28 = vmax.f32 %v1966_v20, 0.0  ;;  %v3726_v50 = vmax.f32 %v3527_v47, 0.0 }
 0x62f   : > { %v4427_v26 = vsel %vm4237_vm1, %v5522_v2, %v4068_v19 }
 0x630   : > { %4555 = vst [vmem:[%s7133_s18 + $0x1e8] sm:$0xff] %v4427_v26  ;;  %5523 = vtanh.f32 %v4071_v58  ;;  %v3027_v21 = vadd.f32 %v7627_v63, %v2852_v45 }
 0x632   : > { %v3155_v61 = vmax.f32 %v3027_v21, 0.0 }
 0x633   : > { %v1967_v40 = vpop.f32.mrf.mxu1  ;;  %v3528_v44 = vpop.f32.mrf.mxu0 }
 0x634   : > { %v1968_v62 = vadd.f32 %v7527_v6, %v1967_v40  ;;  %v3529_v12 = vadd.f32 %v7475_v7, %v3528_v44 }
 0x635   : > { %v2853_v8 = vpop.f32.mrf.mxu3  ;;  %v4072_v4 = vpop.f32.mrf.mxu2 }
 0x636   : > { %v5524_v5 = vpop.eup %5523  ;;  %v2112_v9 = vmax.f32 %v1968_v62, 0.0  ;;  %v3727_v55 = vmax.f32 %v3529_v12, 0.0  ;;  %v2854_v22 = vadd.f32 %v2853_v8, %v8320_v36  ;;  %v4073_v42 = vadd.f32 %v7607_v35, %v4072_v4  ;;  %v7725_v12 = vld [vmem:[%s8136_s9] ss:$0 sm:$0xff] }
 0x637   : > { %v4428_v23 = vsel %vm4237_vm1, %v5524_v5, %v4071_v58 }
 0x638   : > { %4556 = vst [vmem:[%s7133_s18 + $0x1f0] sm:$0xff] %v4428_v23  ;;  %v2181_v41 = vpack.c.bf16 %v2112_v9, %v2111_v28  ;;  %v3028_v57 = vadd.f32 %v7627_v63, %v2854_v22  ;;  %5525 = vtanh.f32 %v4073_v42  ;;  %v3814_v24 = vpack.c.bf16 %v3727_v55, %v3726_v50  ;;  %v8323_v50 = vld [vmem:[#allocation68_spill] sm:$0xff] }
 0x63a   : > { %v3156_v0 = vmax.f32 %v3028_v57, 0.0  ;;  %2895 = vmatmul.bf16.gmra.mxu3 %v2181_v41  ;;  %4114 = vmatmul.bf16.gmra.mxu2 %v3814_v24 }
 0x63b   : > { %v1970_v3 = vpop.f32.mrf.mxu1  ;;  %v3531_v39 = vpop.f32.mrf.mxu0 }
 0x63c   : > { %v3234_v1 = vpack.c.bf16 %v3156_v0, %v3155_v61  ;;  %v1971_v60 = vadd.f32 %v7527_v6, %v1970_v3  ;;  %v3532_v48 = vadd.f32 %v7475_v7, %v3531_v39  ;;  %v8324_v61 = vld [vmem:[#allocation70_spill] sm:$0xff] }
 0x63d   : > { %v2856_v30 = vpop.f32.mrf.mxu3  ;;  %v4075_v32 = vpop.f32.mrf.mxu2 }
 0x63e   : > { %v5526_v11 = vpop.eup %5525  ;;  %v4076_v54 = vadd.f32 %v7607_v35, %v4075_v32  ;;  %3570 = vmatmul.bf16.gmra.mxu0 %v3234_v1  ;;  %v2857_v56 = vadd.f32 %v2856_v30, %v8321_v51  ;;  %v2113_v16 = vmax.f32 %v1971_v60, 0.0  ;;  %v3728_v53 = vmax.f32 %v3532_v48, 0.0 }
 0x63f   : > { %v4429_v15 = vsel %vm4237_vm1, %v5526_v11, %v4073_v42 }
 0x640   : > { %4557 = vst [vmem:[%s7133_s18 + $0x1f8] sm:$0xff] %v4429_v15  ;;  %5527 = vtanh.f32 %v4076_v54  ;;  %v3029_v52 = vadd.f32 %v7627_v63, %v2857_v56 }
 0x642   : > { %v3157_v13 = vmax.f32 %v3029_v52, 0.0 }
 0x643   : > { %v1972_v29 = vpop.f32.mrf.mxu1  ;;  %v3533_v46 = vpop.f32.mrf.mxu0 }
 0x644   : > { %v1973_v25 = vadd.f32 %v7527_v6, %v1972_v29  ;;  %v3534_v38 = vadd.f32 %v7475_v7, %v3533_v46 }
 0x645   : > { %v2858_v19 = vpop.f32.mrf.mxu3  ;;  %v4077_v17 = vpop.f32.mrf.mxu2 }
 0x646   : > { %v5528_v31 = vpop.eup %5527  ;;  %v2114_v37 = vmax.f32 %v1973_v25, 0.0  ;;  %v3729_v10 = vmax.f32 %v3534_v38, 0.0  ;;  %v2859_v14 = vadd.f32 %v2858_v19, %v8322_v33  ;;  %v4078_v18 = vadd.f32 %v7607_v35, %v4077_v17 }
 0x647   : > { %v4430_v43 = vsel %vm4237_vm1, %v5528_v31, %v4076_v54 }
 0x648   : > { %4558 = vst [vmem:[%s7133_s18 + $0x200] sm:$0xff] %v4430_v43  ;;  %v2182_v27 = vpack.c.bf16 %v2114_v37, %v2113_v16  ;;  %v3030_v7 = vadd.f32 %v7627_v63, %v2859_v14  ;;  %5529 = vtanh.f32 %v4078_v18  ;;  %v3815_v59 = vpack.c.bf16 %v3729_v10, %v3728_v53  ;;  %v8325_v53 = vld [vmem:[#allocation71_spill] sm:$0xff] }
 0x64a   : > { %v3158_v2 = vmax.f32 %v3030_v7, 0.0  ;;  %2900 = vmatmul.bf16.gmra.mxu3 %v2182_v27  ;;  %4119 = vmatmul.bf16.gmra.mxu2 %v3815_v59 }
 0x64b   : > { %v1975_v58 = vpop.f32.mrf.mxu1  ;;  %v3536_v26 = vpop.f32.mrf.mxu0 }
 0x64c   : > { %v3235_v20 = vpack.c.bf16 %v3158_v2, %v3157_v13  ;;  %v1976_v62 = vadd.f32 %v7527_v6, %v1975_v58  ;;  %v3537_v28 = vadd.f32 %v7725_v12, %v3536_v26  ;;  %v8326_v13 = vld [vmem:[#allocation73_spill] sm:$0xff] }
 0x64d   : > { %v2861_v47 = vpop.f32.mrf.mxu3  ;;  %v4080_v49 = vpop.f32.mrf.mxu2 }
 0x64e   : > { %v5530_v45 = vpop.eup %5529  ;;  %v4081_v40 = vadd.f32 %v7607_v35, %v4080_v49  ;;  %3575 = vmatmul.bf16.gmra.mxu0 %v3235_v20  ;;  %v2862_v21 = vadd.f32 %v2861_v47, %v8323_v50  ;;  %v2115_v55 = vmax.f32 %v1976_v62, 0.0  ;;  %v3730_v36 = vmax.f32 %v3537_v28, 0.0 }
 0x64f   : > { %v4431_v44 = vsel %vm4237_vm1, %v5530_v45, %v4078_v18 }
 0x650   : > { %4559 = vst [vmem:[%s7133_s18 + $0x208] sm:$0xff] %v4431_v44  ;;  %5531 = vtanh.f32 %v4081_v40  ;;  %v3031_v22 = vadd.f32 %v7627_v63, %v2862_v21 }
 0x652   : > { %v3159_v11 = vmax.f32 %v3031_v22, 0.0 }
 0x653   : > { %v1977_v8 = vpop.f32.mrf.mxu1  ;;  %v3538_v4 = vpop.f32.mrf.mxu0 }
 0x654   : > { %v1978_v5 = vadd.f32 %v7527_v6, %v1977_v8  ;;  %v3539_v9 = vadd.f32 %v7725_v12, %v3538_v4 }
 0x655   : > { %v2863_v42 = vpop.f32.mrf.mxu3  ;;  %v4082_v23 = vpop.f32.mrf.mxu2 }
 0x656   : > { %v5532_v41 = vpop.eup %5531  ;;  %v2116_v57 = vmax.f32 %v1978_v5, 0.0  ;;  %v3731_v24 = vmax.f32 %v3539_v9, 0.0  ;;  %v2864_v0 = vadd.f32 %v2863_v42, %v8324_v61  ;;  %v4083_v3 = vadd.f32 %v7607_v35, %v4082_v23 }
 0x657   : > { %v4432_v39 = vsel %vm4237_vm1, %v5532_v41, %v4081_v40 }
 0x658   : > { %4560 = vst [vmem:[%s7133_s18 + $0x210] sm:$0xff] %v4432_v39  ;;  %v2183_v1 = vpack.c.bf16 %v2116_v57, %v2115_v55  ;;  %v3032_v30 = vadd.f32 %v7627_v63, %v2864_v0  ;;  %5533 = vtanh.f32 %v4083_v3  ;;  %v3816_v32 = vpack.c.bf16 %v3731_v24, %v3730_v36  ;;  %v8327_v36 = vld [vmem:[#allocation74_spill] sm:$0xff] }
 0x65a   : > { %v3160_v54 = vmax.f32 %v3032_v30, 0.0  ;;  %2905 = vmatmul.bf16.gmra.mxu3 %v2183_v1  ;;  %4124 = vmatmul.bf16.gmra.mxu2 %v3816_v32 }
 0x65b   : > { %v1980_v15 = vpop.f32.mrf.mxu1  ;;  %v3541_v60 = vpop.f32.mrf.mxu0 }
 0x65c   : > { %v3236_v48 = vpack.c.bf16 %v3160_v54, %v3159_v11  ;;  %v1981_v38 = vadd.f32 %v7527_v6, %v1980_v15  ;;  %v3542_v16 = vadd.f32 %v7725_v12, %v3541_v60  ;;  %v8328_v11 = vld [vmem:[#allocation76_spill] sm:$0xff] }
 0x65d   : > { %v2866_v51 = vpop.f32.mrf.mxu3  ;;  %v4085_v56 = vpop.f32.mrf.mxu2 }
 0x65e   : > { %v5534_v29 = vpop.eup %5533  ;;  %v4086_v46 = vadd.f32 %v7607_v35, %v4085_v56  ;;  %3580 = vmatmul.bf16.gmra.mxu0 %v3236_v48  ;;  %v2867_v52 = vadd.f32 %v2866_v51, %v8325_v53  ;;  %v2117_v10 = vmax.f32 %v1981_v38, 0.0  ;;  %v3732_v33 = vmax.f32 %v3542_v16, 0.0 }
 0x65f   : > { %v4433_v25 = vsel %vm4237_vm1, %v5534_v29, %v4083_v3 }
 0x660   : > { %4561 = vst [vmem:[%s7133_s18 + $0x218] sm:$0xff] %v4433_v25  ;;  %5535 = vtanh.f32 %v4086_v46  ;;  %v3033_v14 = vadd.f32 %v7627_v63, %v2867_v52 }
 0x662   : > { %v3161_v45 = vmax.f32 %v3033_v14, 0.0 }
 0x663   : > { %v1982_v19 = vpop.f32.mrf.mxu1  ;;  %v3543_v17 = vpop.f32.mrf.mxu0 }
 0x664   : > { %v1983_v31 = vadd.f32 %v7527_v6, %v1982_v19  ;;  %v3544_v37 = vadd.f32 %v7725_v12, %v3543_v17 }
 0x665   : > { %v2868_v18 = vpop.f32.mrf.mxu3  ;;  %v4087_v43 = vpop.f32.mrf.mxu2 }
 0x666   : > { %v5536_v27 = vpop.eup %5535  ;;  %v2118_v7 = vmax.f32 %v1983_v31, 0.0  ;;  %v3733_v59 = vmax.f32 %v3544_v37, 0.0  ;;  %v2869_v2 = vadd.f32 %v2868_v18, %v8326_v13  ;;  %v4088_v58 = vadd.f32 %v7607_v35, %v4087_v43  ;;  %v5669_v31 = vld [vmem:[%s8131_s4] ss:$0 sm:$0xff] }
 0x667   : > { %v4434_v26 = vsel %vm4237_vm1, %v5536_v27, %v4086_v46 }
 0x668   : > { %4562 = vst [vmem:[%s7133_s18 + $0x220] sm:$0xff] %v4434_v26  ;;  %v2184_v20 = vpack.c.bf16 %v2118_v7, %v2117_v10  ;;  %v3034_v47 = vadd.f32 %v7627_v63, %v2869_v2  ;;  %5537 = vtanh.f32 %v4088_v58  ;;  %v3817_v49 = vpack.c.bf16 %v3733_v59, %v3732_v33  ;;  %v8329_v33 = vld [vmem:[#allocation77_spill] sm:$0xff] }
 0x66a   : > { %v3162_v40 = vmax.f32 %v3034_v47, 0.0  ;;  %2910 = vmatmul.bf16.gmra.mxu3 %v2184_v20  ;;  %4129 = vmatmul.bf16.gmra.mxu2 %v3817_v49 }
 0x66b   : > { %v1985_v44 = vpop.f32.mrf.mxu1  ;;  %v3546_v62 = vpop.f32.mrf.mxu0 }
 0x66c   : > { %v3237_v28 = vpack.c.bf16 %v3162_v40, %v3161_v45  ;;  %v1986_v9 = vadd.f32 %v7527_v6, %v1985_v44  ;;  %v3547_v55 = vadd.f32 %v7725_v12, %v3546_v62  ;;  %v8330_v45 = vld [vmem:[#allocation79_spill] sm:$0xff] }
 0x66d   : > { %v2871_v50 = vpop.f32.mrf.mxu3  ;;  %v4090_v21 = vpop.f32.mrf.mxu2 }
 0x66e   : > { %v5538_v8 = vpop.eup %5537  ;;  %v4091_v4 = vadd.f32 %v7607_v35, %v4090_v21  ;;  %3585 = vmatmul.bf16.gmra.mxu0 %v3237_v28  ;;  %v2872_v22 = vadd.f32 %v2871_v50, %v8327_v36  ;;  %v2119_v24 = vmax.f32 %v1986_v9, 0.0  ;;  %v3734_v61 = vmax.f32 %v3547_v55, 0.0 }
 0x66f   : > { %v4435_v5 = vsel %vm4237_vm1, %v5538_v8, %v4088_v58 }
 0x670   : > { %4563 = vst [vmem:[%s7133_s18 + $0x228] sm:$0xff] %v4435_v5  ;;  %5539 = vtanh.f32 %v4091_v4  ;;  %v3035_v0 = vadd.f32 %v7627_v63, %v2872_v22 }
 0x672   : > { %v3163_v56 = vmax.f32 %v3035_v0, 0.0 }
 0x673   : > { %v1987_v42 = vpop.f32.mrf.mxu1  ;;  %v3548_v23 = vpop.f32.mrf.mxu0 }
 0x674   : > { %v1988_v41 = vadd.f32 %v7527_v6, %v1987_v42  ;;  %v3549_v57 = vadd.f32 %v7725_v12, %v3548_v23 }
 0x675   : > { %v2873_v3 = vpop.f32.mrf.mxu3  ;;  %v4092_v39 = vpop.f32.mrf.mxu2 }
 0x676   : > { %v5540_v1 = vpop.eup %5539  ;;  %v2120_v30 = vmax.f32 %v1988_v41, 0.0  ;;  %v3735_v32 = vmax.f32 %v3549_v57, 0.0  ;;  %v2874_v54 = vadd.f32 %v2873_v3, %v8328_v11  ;;  %v4093_v15 = vadd.f32 %v7607_v35, %v4092_v39  ;;  %v8331_v57 = vld [vmem:[#allocation81_spill] sm:$0xff] }
 0x677   : > { %v4436_v60 = vsel %vm4237_vm1, %v5540_v1, %v4091_v4 }
 0x678   : > { %4564 = vst [vmem:[%s7133_s18 + $0x230] sm:$0xff] %v4436_v60  ;;  %v2185_v6 = vpack.c.bf16 %v2120_v30, %v2119_v24  ;;  %v3036_v48 = vadd.f32 %v7627_v63, %v2874_v54  ;;  %5541 = vtanh.f32 %v4093_v15  ;;  %v3818_v51 = vpack.c.bf16 %v3735_v32, %v3734_v61  ;;  %v8332_v54 = vld [vmem:[#allocation82_spill] sm:$0xff] }
 0x67a   : > { %v3164_v29 = vmax.f32 %v3036_v48, 0.0  ;;  %2915 = vmatmul.bf16.gmra.mxu3 %v2185_v6  ;;  %4134 = vmatmul.bf16.gmra.mxu2 %v3818_v51 }
 0x67b   : > { %v1990_v46 = vpop.f32.mrf.mxu1  ;;  %v3551_v25 = vpop.f32.mrf.mxu0 }
 0x67c   : > { %v3238_v38 = vpack.c.bf16 %v3164_v29, %v3163_v56  ;;  %v1991_v37 = vadd.f32 %v5669_v31, %v1990_v46  ;;  %v3552_v10 = vadd.f32 %v7725_v12, %v3551_v25 }
 0x67d   : > { %v2876_v16 = vpop.f32.mrf.mxu3  ;;  %v4095_v53 = vpop.f32.mrf.mxu2 }
 0x67e   : > { %v5542_v52 = vpop.eup %5541  ;;  %v4096_v19 = vadd.f32 %v7607_v35, %v4095_v53  ;;  %3590 = vmatmul.bf16.gmra.mxu0 %v3238_v38  ;;  %v2877_v14 = vadd.f32 %v2876_v16, %v8329_v33  ;;  %v2121_v59 = vmax.f32 %v1991_v37, 0.0  ;;  %v3736_v13 = vmax.f32 %v3552_v10, 0.0 }
 0x67f   : > { %v4437_v17 = vsel %vm4237_vm1, %v5542_v52, %v4093_v15 }
 0x680   : > { %4565 = vst [vmem:[%s7133_s18 + $0x238] sm:$0xff] %v4437_v17  ;;  %5543 = vtanh.f32 %v4096_v19  ;;  %v3037_v2 = vadd.f32 %v7627_v63, %v2877_v14 }
 0x682   : > { %v3165_v8 = vmax.f32 %v3037_v2, 0.0 }
 0x683   : > { %v1992_v18 = vpop.f32.mrf.mxu1  ;;  %v3553_v43 = vpop.f32.mrf.mxu0 }
 0x684   : > { %v1993_v27 = vadd.f32 %v5669_v31, %v1992_v18  ;;  %v3554_v7 = vadd.f32 %v7725_v12, %v3553_v43  ;;  %v8333_v31 = vld [vmem:[#allocation84_spill] sm:$0xff] }
 0x685   : > { %v2878_v58 = vpop.f32.mrf.mxu3  ;;  %v4097_v26 = vpop.f32.mrf.mxu2 }
 0x686   : > { %v5544_v20 = vpop.eup %5543  ;;  %v2122_v47 = vmax.f32 %v1993_v27, 0.0  ;;  %v3737_v49 = vmax.f32 %v3554_v7, 0.0  ;;  %v2879_v40 = vadd.f32 %v2878_v58, %v8330_v45  ;;  %v4098_v44 = vadd.f32 %v7607_v35, %v4097_v26 }
 0x687   : > { %v4438_v62 = vsel %vm4237_vm1, %v5544_v20, %v4096_v19 }
 0x688   : > { %4566 = vst [vmem:[%s7133_s18 + $0x240] sm:$0xff] %v4438_v62  ;;  %v2186_v28 = vpack.c.bf16 %v2122_v47, %v2121_v59  ;;  %v3038_v50 = vadd.f32 %v7627_v63, %v2879_v40  ;;  %5545 = vtanh.f32 %v4098_v44  ;;  %v3819_v21 = vpack.c.bf16 %v3737_v49, %v3736_v13  ;;  %v8334_v13 = vld [vmem:[#allocation85_spill] sm:$0xff] }
 0x68a   : > { %v3166_v4 = vmax.f32 %v3038_v50, 0.0  ;;  %2920 = vmatmul.bf16.gmra.mxu3 %v2186_v28  ;;  %4139 = vmatmul.bf16.gmra.mxu2 %v3819_v21 }
 0x68b   : > { %v3556_v5 = vpop.f32.mrf.mxu0 }
 0x68c   : > { %v3239_v9 = vpack.c.bf16 %v3166_v4, %v3165_v8  ;;  %v3557_v41 = vadd.f32 %v7725_v12, %v3556_v5  ;;  %v8335_v5 = vld [vmem:[#allocation87_spill] sm:$0xff] }
 0x68d   : > { %v2881_v55 = vpop.f32.mrf.mxu3  ;;  %v4100_v36 = vpop.f32.mrf.mxu2 }
 0x68e   : > { %v5546_v22 = vpop.eup %5545  ;;  %v4101_v42 = vadd.f32 %v7607_v35, %v4100_v36  ;;  %3595 = vmatmul.bf16.gmra.mxu0 %v3239_v9  ;;  %v2882_v24 = vadd.f32 %v2881_v55, %v8331_v57  ;;  %v3738_v3 = vmax.f32 %v3557_v41, 0.0 }
 0x68f   : > { %v4439_v23 = vsel %vm4237_vm1, %v5546_v22, %v4098_v44 }
 0x690   : > { %4567 = vst [vmem:[%s7133_s18 + $0x248] sm:$0xff] %v4439_v23  ;;  %5547 = vtanh.f32 %v4101_v42  ;;  %v3039_v32 = vadd.f32 %v7627_v63, %v2882_v24 }
 0x692   : > { %v3167_v56 = vmax.f32 %v3039_v32, 0.0 }
 0x693   : > { %v3558_v61 = vpop.f32.mrf.mxu0 }
 0x694   : > { %v3559_v0 = vadd.f32 %v7725_v12, %v3558_v61  ;;  %v8336_v61 = vld [vmem:[#allocation88_spill] sm:$0xff] }
 0x695   : > { %v2883_v39 = vpop.f32.mrf.mxu3  ;;  %v4102_v1 = vpop.f32.mrf.mxu2 }
 0x696   : > { %v5548_v30 = vpop.eup %5547  ;;  %v3739_v11 = vmax.f32 %v3559_v0, 0.0  ;;  %v2884_v15 = vadd.f32 %v2883_v39, %v8332_v54  ;;  %v4103_v60 = vadd.f32 %v7607_v35, %v4102_v1 }
 0x697   : > { %v4440_v6 = vsel %vm4237_vm1, %v5548_v30, %v4101_v42 }
 0x698   : > { %4568 = vst [vmem:[%s7133_s18 + $0x250] sm:$0xff] %v4440_v6  ;;  %v3040_v48 = vadd.f32 %v7627_v63, %v2884_v15  ;;  %5549 = vtanh.f32 %v4103_v60  ;;  %v3820_v51 = vpack.c.bf16 %v3739_v11, %v3738_v3 }
 0x69a   : > { %v3168_v29 = vmax.f32 %v3040_v48, 0.0  ;;  %4144 = vmatmul.bf16.gmra.mxu2 %v3820_v51 }
 0x69b   : > { %v3561_v46 = vpop.f32.mrf.mxu0 }
 0x69c   : > { %v3240_v25 = vpack.c.bf16 %v3168_v29, %v3167_v56  ;;  %v3562_v17 = vadd.f32 %v7725_v12, %v3561_v46  ;;  %v8337_v46 = vld [vmem:[#allocation89_spill] sm:$0xff] }
 0x69d   : > { %v2886_v38 = vpop.f32.mrf.mxu3  ;;  %v4105_v16 = vpop.f32.mrf.mxu2 }
 0x69e   : > { %v5550_v53 = vpop.eup %5549  ;;  %v4106_v52 = vadd.f32 %v7607_v35, %v4105_v16  ;;  %3600 = vmatmul.bf16.gmra.mxu0 %v3240_v25  ;;  %v2887_v37 = vadd.f32 %v2886_v38, %v8333_v31  ;;  %v3740_v14 = vmax.f32 %v3562_v17, 0.0 }
 0x69f   : > { %v4441_v19 = vsel %vm4237_vm1, %v5550_v53, %v4103_v60 }
 0x6a0   : > { %4569 = vst [vmem:[%s7133_s18 + $0x258] sm:$0xff] %v4441_v19  ;;  %5551 = vtanh.f32 %v4106_v52  ;;  %v3041_v7 = vadd.f32 %v7627_v63, %v2887_v37 }
 0x6a2   : > { %v3169_v49 = vmax.f32 %v3041_v7, 0.0 }
 0x6a3   : > { %v3563_v10 = vpop.f32.mrf.mxu0 }
 0x6a4   : > { %v3564_v33 = vadd.f32 %v7725_v12, %v3563_v10  ;;  %v8338_v10 = vld [vmem:[#allocation90_spill] sm:$0xff] }
 0x6a5   : > { %v2888_v18 = vpop.f32.mrf.mxu3  ;;  %v4107_v43 = vpop.f32.mrf.mxu2 }
 0x6a6   : > { %v5552_v27 = vpop.eup %5551  ;;  %v3741_v59 = vmax.f32 %v3564_v33, 0.0  ;;  %v2889_v2 = vadd.f32 %v2888_v18, %v8334_v13  ;;  %v4108_v58 = vadd.f32 %v7607_v35, %v4107_v43 }
 0x6a7   : > { %v4442_v26 = vsel %vm4237_vm1, %v5552_v27, %v4106_v52 }
 0x6a8   : > { %4570 = vst [vmem:[%s7133_s18 + $0x260] sm:$0xff] %v4442_v26  ;;  %v3042_v20 = vadd.f32 %v7627_v63, %v2889_v2  ;;  %5553 = vtanh.f32 %v4108_v58  ;;  %v3821_v47 = vpack.c.bf16 %v3741_v59, %v3740_v14 }
 0x6aa   : > { %v3170_v45 = vmax.f32 %v3042_v20, 0.0  ;;  %4149 = vmatmul.bf16.gmra.mxu2 %v3821_v47 }
 0x6ab   : > { %v3566_v40 = vpop.f32.mrf.mxu0 }
 0x6ac   : > { %v3241_v44 = vpack.c.bf16 %v3170_v45, %v3169_v49  ;;  %v3567_v4 = vadd.f32 %v7725_v12, %v3566_v40  ;;  %v8339_v40 = vld [vmem:[#allocation91_spill] sm:$0xff] }
 0x6ad   : > { %v2891_v62 = vpop.f32.mrf.mxu3  ;;  %v4110_v28 = vpop.f32.mrf.mxu2 }
 0x6ae   : > { %v5554_v50 = vpop.eup %5553  ;;  %v4111_v21 = vadd.f32 %v7607_v35, %v4110_v28  ;;  %3605 = vmatmul.bf16.gmra.mxu0 %v3241_v44  ;;  %v2892_v9 = vadd.f32 %v2891_v62, %v8335_v5  ;;  %v3742_v22 = vmax.f32 %v3567_v4, 0.0 }
 0x6af   : > { %v4443_v8 = vsel %vm4237_vm1, %v5554_v50, %v4108_v58 }
 0x6b0   : > { %4571 = vst [vmem:[%s7133_s18 + $0x268] sm:$0xff] %v4443_v8  ;;  %5555 = vtanh.f32 %v4111_v21  ;;  %v3043_v57 = vadd.f32 %v7627_v63, %v2892_v9 }
 0x6b2   : > { %v3171_v32 = vmax.f32 %v3043_v57, 0.0 }
 0x6b3   : > { %v3568_v55 = vpop.f32.mrf.mxu0 }
 0x6b4   : > { %v3569_v36 = vadd.f32 %v7725_v12, %v3568_v55  ;;  %v8340_v55 = vld [vmem:[#allocation92_spill] sm:$0xff] }
 0x6b5   : > { %v2893_v42 = vpop.f32.mrf.mxu3  ;;  %v4112_v23 = vpop.f32.mrf.mxu2 }
 0x6b6   : > { %v5556_v41 = vpop.eup %5555  ;;  %v3743_v24 = vmax.f32 %v3569_v36, 0.0  ;;  %v2894_v0 = vadd.f32 %v2893_v42, %v8336_v61  ;;  %v4113_v3 = vadd.f32 %v7607_v35, %v4112_v23 }
 0x6b7   : > { %v4444_v39 = vsel %vm4237_vm1, %v5556_v41, %v4111_v21 }
 0x6b8   : > { %4572 = vst [vmem:[%s7133_s18 + $0x270] sm:$0xff] %v4444_v39  ;;  %v3044_v1 = vadd.f32 %v7627_v63, %v2894_v0  ;;  %5557 = vtanh.f32 %v4113_v3  ;;  %v3822_v30 = vpack.c.bf16 %v3743_v24, %v3742_v22 }
 0x6ba   : > { %v3172_v11 = vmax.f32 %v3044_v1, 0.0  ;;  %4154 = vmatmul.bf16.gmra.mxu2 %v3822_v30 }
 0x6bb   : > { %v3571_v54 = vpop.f32.mrf.mxu0 }
 0x6bc   : > { %v3242_v15 = vpack.c.bf16 %v3172_v11, %v3171_v32  ;;  %v3572_v29 = vadd.f32 %v7725_v12, %v3571_v54  ;;  %v8341_v11 = vld [vmem:[#allocation93_spill] sm:$0xff] }
 0x6bd   : > { %v2896_v60 = vpop.f32.mrf.mxu3  ;;  %v4115_v6 = vpop.f32.mrf.mxu2 }
 0x6be   : > { %v5558_v48 = vpop.eup %5557  ;;  %v4116_v51 = vadd.f32 %v7607_v35, %v4115_v6  ;;  %3610 = vmatmul.bf16.gmra.mxu0 %v3242_v15  ;;  %v2897_v25 = vadd.f32 %v2896_v60, %v8337_v46  ;;  %v3744_v53 = vmax.f32 %v3572_v29, 0.0  ;;  %v7872_v29 = vld [vmem:[%s8134_s7] ss:$0 sm:$0xff] }
 0x6bf   : > { %v4445_v56 = vsel %vm4237_vm1, %v5558_v48, %v4113_v3 }
 0x6c0   : > { %4573 = vst [vmem:[%s7133_s18 + $0x278] sm:$0xff] %v4445_v56  ;;  %5559 = vtanh.f32 %v4116_v51  ;;  %v3045_v31 = vadd.f32 %v7627_v63, %v2897_v25 }
 0x6c2   : > { %v3173_v7 = vmax.f32 %v3045_v31, 0.0 }
 0x6c3   : > { %v3573_v38 = vpop.f32.mrf.mxu0 }
 0x6c4   : > { %v3574_v16 = vadd.f32 %v7725_v12, %v3573_v38  ;;  %v8342_v38 = vld [vmem:[#allocation94_spill] sm:$0xff] }
 0x6c5   : > { %v2898_v52 = vpop.f32.mrf.mxu3  ;;  %v4117_v19 = vpop.f32.mrf.mxu2 }
 0x6c6   : > { %v5560_v17 = vpop.eup %5559  ;;  %v3745_v37 = vmax.f32 %v3574_v16, 0.0  ;;  %v2899_v33 = vadd.f32 %v2898_v52, %v8338_v10  ;;  %v4118_v14 = vadd.f32 %v7607_v35, %v4117_v19  ;;  %v7846_v35 = vld [vmem:[%s8138_s11] ss:$0 sm:$0xff] }
 0x6c7   : > { %v4446_v18 = vsel %vm4237_vm1, %v5560_v17, %v4116_v51 }
 0x6c8   : > { %4574 = vst [vmem:[%s7133_s18 + $0x280] sm:$0xff] %v4446_v18  ;;  %v3046_v43 = vadd.f32 %v7627_v63, %v2899_v33  ;;  %5561 = vtanh.f32 %v4118_v14  ;;  %v3823_v27 = vpack.c.bf16 %v3745_v37, %v3744_v53 }
 0x6ca   : > { %v3174_v59 = vmax.f32 %v3046_v43, 0.0  ;;  %4159 = vmatmul.bf16.gmra.mxu2 %v3823_v27 }
 0x6cb   : > { %v3576_v13 = vpop.f32.mrf.mxu0 }
 0x6cc   : > { %v3243_v2 = vpack.c.bf16 %v3174_v59, %v3173_v7  ;;  %v3577_v45 = vadd.f32 %v7725_v12, %v3576_v13  ;;  %v8343_v13 = vld [vmem:[#allocation95_spill] sm:$0xff] }
 0x6cd   : > { %v2901_v58 = vpop.f32.mrf.mxu3  ;;  %v4120_v26 = vpop.f32.mrf.mxu2 }
 0x6ce   : > { %v5562_v20 = vpop.eup %5561  ;;  %v4121_v47 = vadd.f32 %v7846_v35, %v4120_v26  ;;  %3615 = vmatmul.bf16.gmra.mxu0 %v3243_v2  ;;  %v2902_v44 = vadd.f32 %v2901_v58, %v8339_v40  ;;  %v3746_v50 = vmax.f32 %v3577_v45, 0.0 }
 0x6cf   : > { %v4447_v49 = vsel %vm4237_vm1, %v5562_v20, %v4118_v14 }
 0x6d0   : > { %4575 = vst [vmem:[%s7133_s18 + $0x288] sm:$0xff] %v4447_v49  ;;  %5563 = vtanh.f32 %v4121_v47  ;;  %v3047_v5 = vadd.f32 %v7627_v63, %v2902_v44 }
 0x6d2   : > { %v3175_v57 = vmax.f32 %v3047_v5, 0.0 }
 0x6d3   : > { %v3578_v62 = vpop.f32.mrf.mxu0 }
 0x6d4   : > { %v3579_v28 = vadd.f32 %v7725_v12, %v3578_v62  ;;  %v8344_v62 = vld [vmem:[#allocation96_spill] sm:$0xff] }
 0x6d5   : > { %v2903_v21 = vpop.f32.mrf.mxu3  ;;  %v4122_v8 = vpop.f32.mrf.mxu2 }
 0x6d6   : > { %v5564_v4 = vpop.eup %5563  ;;  %v3747_v9 = vmax.f32 %v3579_v28, 0.0  ;;  %v2904_v36 = vadd.f32 %v2903_v21, %v8340_v55  ;;  %v4123_v22 = vadd.f32 %v7846_v35, %v4122_v8 }
 0x6d7   : > { %v4448_v42 = vsel %vm4237_vm1, %v5564_v4, %v4121_v47 }
 0x6d8   : > { %4576 = vst [vmem:[%s7133_s18 + $0x290] sm:$0xff] %v4448_v42  ;;  %v3048_v23 = vadd.f32 %v7627_v63, %v2904_v36  ;;  %5565 = vtanh.f32 %v4123_v22  ;;  %v3824_v41 = vpack.c.bf16 %v3747_v9, %v3746_v50 }
 0x6da   : > { %v3176_v24 = vmax.f32 %v3048_v23, 0.0  ;;  %4164 = vmatmul.bf16.gmra.mxu2 %v3824_v41 }
 0x6db   : > { %v3581_v61 = vpop.f32.mrf.mxu0 }
 0x6dc   : > { %v3244_v0 = vpack.c.bf16 %v3176_v24, %v3175_v57  ;;  %v3582_v63 = vadd.f32 %v7725_v12, %v3581_v61  ;;  %v8345_v61 = vld [vmem:[#allocation99_spill] sm:$0xff] }
 0x6dd   : > { %v2906_v3 = vpop.f32.mrf.mxu3  ;;  %v4125_v39 = vpop.f32.mrf.mxu2 }
 0x6de   : > { %v5566_v1 = vpop.eup %5565  ;;  %v4126_v30 = vadd.f32 %v7846_v35, %v4125_v39  ;;  %3620 = vmatmul.bf16.gmra.mxu0 %v3244_v0  ;;  %v2907_v54 = vadd.f32 %v2906_v3, %v8341_v11  ;;  %v3748_v6 = vmax.f32 %v3582_v63, 0.0 }
 0x6df   : > { %v4449_v32 = vsel %vm4237_vm1, %v5566_v1, %v4123_v22 }
 0x6e0   : > { %4577 = vst [vmem:[%s7133_s18 + $0x298] sm:$0xff] %v4449_v32  ;;  %5567 = vtanh.f32 %v4126_v30  ;;  %v3049_v46 = vadd.f32 %v7872_v29, %v2907_v54 }
 0x6e2   : > { %v3177_v31 = vmax.f32 %v3049_v46, 0.0 }
 0x6e3   : > { %v3583_v15 = vpop.f32.mrf.mxu0 }
 0x6e4   : > { %v3584_v60 = vadd.f32 %v7725_v12, %v3583_v15  ;;  %v8346_v15 = vld [vmem:[#allocation101_spill] sm:$0xff] }
 0x6e5   : > { %v2908_v48 = vpop.f32.mrf.mxu3  ;;  %v4127_v51 = vpop.f32.mrf.mxu2 }
 0x6e6   : > { %v5568_v56 = vpop.eup %5567  ;;  %v3749_v25 = vmax.f32 %v3584_v60, 0.0  ;;  %v2909_v16 = vadd.f32 %v2908_v48, %v8342_v38  ;;  %v4128_v53 = vadd.f32 %v7846_v35, %v4127_v51 }
 0x6e7   : > { %v4450_v52 = vsel %vm4237_vm1, %v5568_v56, %v4126_v30 }
 0x6e8   : > { %4578 = vst [vmem:[%s7133_s18 + $0x2a0] sm:$0xff] %v4450_v52  ;;  %v3825_v19 = vpack.c.bf16 %v3749_v25, %v3748_v6  ;;  %v3050_v17 = vadd.f32 %v7872_v29, %v2909_v16  ;;  %5569 = vtanh.f32 %v4128_v53 }
 0x6ea   : > { %v3178_v37 = vmax.f32 %v3050_v17, 0.0  ;;  %4169 = vmatmul.bf16.gmra.mxu2 %v3825_v19 }
 0x6eb   : > { %v3586_v10 = vpop.f32.mrf.mxu0 }
 0x6ec   : > { %v3245_v33 = vpack.c.bf16 %v3178_v37, %v3177_v31  ;;  %v3587_v59 = vadd.f32 %v7725_v12, %v3586_v10  ;;  %v8347_v10 = vld [vmem:[#allocation103_spill] sm:$0xff] }
 0x6ed   : > { %v2911_v14 = vpop.f32.mrf.mxu3  ;;  %v4130_v18 = vpop.f32.mrf.mxu2 }
 0x6ee   : > { %v5570_v43 = vpop.eup %5569  ;;  %v4131_v27 = vadd.f32 %v7846_v35, %v4130_v18  ;;  %3625 = vmatmul.bf16.gmra.mxu0 %v3245_v33  ;;  %v2912_v2 = vadd.f32 %v2911_v14, %v8343_v13  ;;  %v3750_v20 = vmax.f32 %v3587_v59, 0.0 }
 0x6ef   : > { %v4451_v7 = vsel %vm4237_vm1, %v5570_v43, %v4128_v53 }
 0x6f0   : > { %4579 = vst [vmem:[%s7133_s18 + $0x2a8] sm:$0xff] %v4451_v7  ;;  %5571 = vtanh.f32 %v4131_v27  ;;  %v3051_v40 = vadd.f32 %v7872_v29, %v2912_v2 }
 0x6f2   : > { %v3179_v5 = vmax.f32 %v3051_v40, 0.0 }
 0x6f3   : > { %v3588_v58 = vpop.f32.mrf.mxu0 }
 0x6f4   : > { %v3589_v26 = vadd.f32 %v7725_v12, %v3588_v58  ;;  %v8348_v58 = vld [vmem:[#allocation105_spill] sm:$0xff] }
 0x6f5   : > { %v2913_v47 = vpop.f32.mrf.mxu3  ;;  %v4132_v49 = vpop.f32.mrf.mxu2 }
 0x6f6   : > { %v5572_v45 = vpop.eup %5571  ;;  %v3751_v44 = vmax.f32 %v3589_v26, 0.0  ;;  %v2914_v28 = vadd.f32 %v2913_v47, %v8344_v62  ;;  %v4133_v50 = vadd.f32 %v7846_v35, %v4132_v49 }
 0x6f7   : > { %v4452_v21 = vsel %vm4237_vm1, %v5572_v45, %v4131_v27 }
 0x6f8   : > { %4580 = vst [vmem:[%s7133_s18 + $0x2b0] sm:$0xff] %v4452_v21  ;;  %v3826_v8 = vpack.c.bf16 %v3751_v44, %v3750_v20  ;;  %v3052_v4 = vadd.f32 %v7872_v29, %v2914_v28  ;;  %5573 = vtanh.f32 %v4133_v50 }
 0x6fa   : > { %v3180_v9 = vmax.f32 %v3052_v4, 0.0  ;;  %4174 = vmatmul.bf16.gmra.mxu2 %v3826_v8 }
 0x6fb   : > { %v3591_v55 = vpop.f32.mrf.mxu0 }
 0x6fc   : > { %v3246_v36 = vpack.c.bf16 %v3180_v9, %v3179_v5  ;;  %v3592_v24 = vadd.f32 %v7725_v12, %v3591_v55 }
 0x6fd   : > { %v2916_v22 = vpop.f32.mrf.mxu3  ;;  %v4135_v42 = vpop.f32.mrf.mxu2 }
 0x6fe   : > { %v5574_v23 = vpop.eup %5573  ;;  %v4136_v41 = vadd.f32 %v7846_v35, %v4135_v42  ;;  %3630 = vmatmul.bf16.gmra.mxu0 %v3246_v36  ;;  %v2917_v0 = vadd.f32 %v2916_v22, %v8345_v61  ;;  %v3752_v1 = vmax.f32 %v3592_v24, 0.0 }
 0x6ff   : > { %v4453_v57 = vsel %vm4237_vm1, %v5574_v23, %v4133_v50 }
 0x700   : > { %4581 = vst [vmem:[%s7133_s18 + $0x2b8] sm:$0xff] %v4453_v57  ;;  %5575 = vtanh.f32 %v4136_v41  ;;  %v3053_v11 = vadd.f32 %v7872_v29, %v2917_v0 }
 0x702   : > { %v3181_v46 = vmax.f32 %v3053_v11, 0.0 }
 0x703   : > { %v3593_v3 = vpop.f32.mrf.mxu0 }
 0x704   : > { %v3594_v39 = vadd.f32 %v7725_v12, %v3593_v3 }
 0x705   : > { %v2918_v30 = vpop.f32.mrf.mxu3  ;;  %v4137_v32 = vpop.f32.mrf.mxu2 }
 0x706   : > { %v5576_v63 = vpop.eup %5575  ;;  %v3753_v54 = vmax.f32 %v3594_v39, 0.0  ;;  %v2919_v60 = vadd.f32 %v2918_v30, %v8346_v15  ;;  %v4138_v6 = vadd.f32 %v7846_v35, %v4137_v32 }
 0x707   : > { %v4454_v48 = vsel %vm4237_vm1, %v5576_v63, %v4136_v41 }
 0x708   : > { %4582 = vst [vmem:[%s7133_s18 + $0x2c0] sm:$0xff] %v4454_v48  ;;  %v3827_v51 = vpack.c.bf16 %v3753_v54, %v3752_v1  ;;  %v3054_v56 = vadd.f32 %v7872_v29, %v2919_v60  ;;  %5577 = vtanh.f32 %v4138_v6 }
 0x70a   : > { %v3182_v25 = vmax.f32 %v3054_v56, 0.0  ;;  %4179 = vmatmul.bf16.gmra.mxu2 %v3827_v51 }
 0x70b   : > { %v3596_v38 = vpop.f32.mrf.mxu0 }
 0x70c   : > { %v3247_v16 = vpack.c.bf16 %v3182_v25, %v3181_v46  ;;  %v3597_v37 = vadd.f32 %v7725_v12, %v3596_v38 }
 0x70d   : > { %v2921_v53 = vpop.f32.mrf.mxu3  ;;  %v4140_v52 = vpop.f32.mrf.mxu2 }
 0x70e   : > { %v5578_v19 = vpop.eup %5577  ;;  %v4141_v17 = vadd.f32 %v7846_v35, %v4140_v52  ;;  %3635 = vmatmul.bf16.gmra.mxu0 %v3247_v16  ;;  %v2922_v33 = vadd.f32 %v2921_v53, %v8347_v10  ;;  %v3754_v43 = vmax.f32 %v3597_v37, 0.0 }
 0x70f   : > { %v4455_v31 = vsel %vm4237_vm1, %v5578_v19, %v4138_v6 }
 0x710   : > { %4583 = vst [vmem:[%s7133_s18 + $0x2c8] sm:$0xff] %v4455_v31  ;;  %5579 = vtanh.f32 %v4141_v17  ;;  %v3055_v13 = vadd.f32 %v7872_v29, %v2922_v33 }
 0x712   : > { %v3183_v40 = vmax.f32 %v3055_v13, 0.0 }
 0x713   : > { %v3598_v14 = vpop.f32.mrf.mxu0 }
 0x714   : > { %v3599_v18 = vadd.f32 %v7725_v12, %v3598_v14 }
 0x715   : > { %v2923_v27 = vpop.f32.mrf.mxu3  ;;  %v4142_v7 = vpop.f32.mrf.mxu2 }
 0x716   : > { %v5580_v59 = vpop.eup %5579  ;;  %v3755_v2 = vmax.f32 %v3599_v18, 0.0  ;;  %v2924_v26 = vadd.f32 %v2923_v27, %v8348_v58  ;;  %v4143_v20 = vadd.f32 %v7846_v35, %v4142_v7 }
 0x717   : > { %v4456_v47 = vsel %vm4237_vm1, %v5580_v59, %v4141_v17 }
 0x718   : > { %4584 = vst [vmem:[%s7133_s18 + $0x2d0] sm:$0xff] %v4456_v47  ;;  %v3828_v49 = vpack.c.bf16 %v3755_v2, %v3754_v43  ;;  %v3056_v45 = vadd.f32 %v7872_v29, %v2924_v26  ;;  %5581 = vtanh.f32 %v4143_v20 }
 0x71a   : > { %v3184_v44 = vmax.f32 %v3056_v45, 0.0  ;;  %4184 = vmatmul.bf16.gmra.mxu2 %v3828_v49 }
 0x71b   : > { %v3601_v62 = vpop.f32.mrf.mxu0 }
 0x71c   : > { %v3248_v28 = vpack.c.bf16 %v3184_v44, %v3183_v40  ;;  %v3602_v5 = vadd.f32 %v7725_v12, %v3601_v62 }
 0x71d   : > { %v4145_v50 = vpop.f32.mrf.mxu2 }
 0x71e   : > { %v5582_v21 = vpop.eup %5581  ;;  %v4146_v8 = vadd.f32 %v7846_v35, %v4145_v50  ;;  %3640 = vmatmul.bf16.vlgmr.msra.gmra.mxu1 %v3248_v28  ;;  %v3756_v22 = vmax.f32 %v3602_v5, 0.0 }
 0x71f   : > { %v4457_v4 = vsel %vm4237_vm1, %v5582_v21, %v4143_v20 }
 0x720   : > { %4585 = vst [vmem:[%s7133_s18 + $0x2d8] sm:$0xff] %v4457_v4  ;;  %5583 = vtanh.f32 %v4146_v8 }
 0x723   : > { %v3603_v29 = vpop.f32.mrf.mxu0 }
 0x724   : > { %v3604_v9 = vadd.f32 %v7725_v12, %v3603_v29 }
 0x725   : > { %v4147_v55 = vpop.f32.mrf.mxu2 }
 0x726   : > { %v5584_v36 = vpop.eup %5583  ;;  %v3757_v42 = vmax.f32 %v3604_v9, 0.0  ;;  %v4148_v23 = vadd.f32 %v7846_v35, %v4147_v55 }
 0x727   : > { %v4458_v41 = vsel %vm4237_vm1, %v5584_v36, %v4146_v8 }
 0x728   : > { %4586 = vst [vmem:[%s7133_s18 + $0x2e0] sm:$0xff] %v4458_v41  ;;  %v3829_v57 = vpack.c.bf16 %v3757_v42, %v3756_v22  ;;  %5585 = vtanh.f32 %v4148_v23 }
 0x72a   : > { %4189 = vmatmul.bf16.gmra.mxu2 %v3829_v57 }
 0x72b   : > { %v3606_v24 = vpop.f32.mrf.mxu0 }
 0x72c   : > { %v3607_v1 = vadd.f32 %v7725_v12, %v3606_v24 }
 0x72d   : > { %v4150_v61 = vpop.f32.mrf.mxu2 }
 0x72e   : > { %v5586_v0 = vpop.eup %5585  ;;  %v4151_v3 = vadd.f32 %v7846_v35, %v4150_v61  ;;  %v3758_v54 = vmax.f32 %v3607_v1, 0.0 }
 0x72f   : > { %v4459_v39 = vsel %vm4237_vm1, %v5586_v0, %v4148_v23 }
 0x730   : > { %4587 = vst [vmem:[%s7133_s18 + $0x2e8] sm:$0xff] %v4459_v39  ;;  %5587 = vtanh.f32 %v4151_v3 }
 0x733   : > { %v3608_v30 = vpop.f32.mrf.mxu0 }
 0x734   : > { %v3609_v32 = vadd.f32 %v7725_v12, %v3608_v30 }
 0x735   : > { %v4152_v63 = vpop.f32.mrf.mxu2 }
 0x736   : > { %v5588_v11 = vpop.eup %5587  ;;  %v3759_v15 = vmax.f32 %v3609_v32, 0.0  ;;  %v4153_v60 = vadd.f32 %v7846_v35, %v4152_v63 }
 0x737   : > { %v4460_v6 = vsel %vm4237_vm1, %v5588_v11, %v4151_v3  ;;  %v7980_v3 = vld [vmem:[%s8136_s9] ss:$0 sm:$0xff] }
 0x738   : > { %4588 = vst [vmem:[%s7133_s18 + $0x2f0] sm:$0xff] %v4460_v6  ;;  %v3830_v48 = vpack.c.bf16 %v3759_v15, %v3758_v54  ;;  %5589 = vtanh.f32 %v4153_v60 }
 0x73a   : > { %4194 = vmatmul.bf16.gmra.mxu2 %v3830_v48 }
 0x73b   : > { %v3611_v51 = vpop.f32.mrf.mxu0 }
 0x73c   : > { %v3612_v16 = vadd.f32 %v7725_v12, %v3611_v51 }
 0x73d   : > { %v4155_v56 = vpop.f32.mrf.mxu2 }
 0x73e   : > { %v5590_v46 = vpop.eup %5589  ;;  %v4156_v25 = vadd.f32 %v7846_v35, %v4155_v56  ;;  %v3760_v31 = vmax.f32 %v3612_v16, 0.0 }
 0x73f   : > { %v4461_v38 = vsel %vm4237_vm1, %v5590_v46, %v4153_v60 }
 0x740   : > { %4589 = vst [vmem:[%s7133_s18 + $0x2f8] sm:$0xff] %v4461_v38  ;;  %5591 = vtanh.f32 %v4156_v25 }
 0x743   : > { %v3613_v53 = vpop.f32.mrf.mxu0 }
 0x744   : > { %v3614_v52 = vadd.f32 %v7725_v12, %v3613_v53 }
 0x745   : > { %v4157_v19 = vpop.f32.mrf.mxu2 }
 0x746   : > { %v5592_v17 = vpop.eup %5591  ;;  %v3761_v37 = vmax.f32 %v3614_v52, 0.0  ;;  %v4158_v10 = vadd.f32 %v7846_v35, %v4157_v19 }
 0x747   : > { %v4462_v33 = vsel %vm4237_vm1, %v5592_v17, %v4156_v25 }
 0x748   : > { %4590 = vst [vmem:[%s7133_s18 + $0x300] sm:$0xff] %v4462_v33  ;;  %v3831_v14 = vpack.c.bf16 %v3761_v37, %v3760_v31  ;;  %5593 = vtanh.f32 %v4158_v10 }
 0x74a   : > { %4199 = vmatmul.bf16.gmra.mxu2 %v3831_v14 }
 0x74b   : > { %v3616_v18 = vpop.f32.mrf.mxu0 }
 0x74c   : > { %v3617_v13 = vadd.f32 %v7725_v12, %v3616_v18 }
 0x74d   : > { %v4160_v43 = vpop.f32.mrf.mxu2 }
 0x74e   : > { %v5594_v27 = vpop.eup %5593  ;;  %v4161_v7 = vadd.f32 %v7846_v35, %v4160_v43  ;;  %v3762_v47 = vmax.f32 %v3617_v13, 0.0 }
 0x74f   : > { %v4463_v59 = vsel %vm4237_vm1, %v5594_v27, %v4158_v10 }
 0x750   : > { %4591 = vst [vmem:[%s7133_s18 + $0x308] sm:$0xff] %v4463_v59  ;;  %5595 = vtanh.f32 %v4161_v7 }
 0x753   : > { %v3618_v2 = vpop.f32.mrf.mxu0 }
 0x754   : > { %v3619_v58 = vadd.f32 %v7725_v12, %v3618_v2 }
 0x755   : > { %v4162_v26 = vpop.f32.mrf.mxu2 }
 0x756   : > { %v5596_v20 = vpop.eup %5595  ;;  %v3763_v49 = vmax.f32 %v3619_v58, 0.0  ;;  %v4163_v45 = vadd.f32 %v7846_v35, %v4162_v26 }
 0x757   : > { %v4464_v40 = vsel %vm4237_vm1, %v5596_v20, %v4161_v7 }
 0x758   : > { %4592 = vst [vmem:[%s7133_s18 + $0x310] sm:$0xff] %v4464_v40  ;;  %v3832_v44 = vpack.c.bf16 %v3763_v49, %v3762_v47  ;;  %5597 = vtanh.f32 %v4163_v45 }
 0x75a   : > { %4204 = vmatmul.bf16.gmra.mxu2 %v3832_v44 }
 0x75b   : > { %v3621_v62 = vpop.f32.mrf.mxu0 }
 0x75c   : > { %v3622_v4 = vadd.f32 %v7725_v12, %v3621_v62 }
 0x75d   : > { %v4165_v28 = vpop.f32.mrf.mxu2 }
 0x75e   : > { %v5598_v50 = vpop.eup %5597  ;;  %v4166_v21 = vadd.f32 %v7846_v35, %v4165_v28  ;;  %v3764_v36 = vmax.f32 %v3622_v4, 0.0 }
 0x75f   : > { %v4465_v8 = vsel %vm4237_vm1, %v5598_v50, %v4163_v45 }
 0x760   : > { %4593 = vst [vmem:[%s7133_s18 + $0x318] sm:$0xff] %v4465_v8  ;;  %5599 = vtanh.f32 %v4166_v21 }
 0x763   : > { %v3623_v5 = vpop.f32.mrf.mxu0 }
 0x764   : > { %v3624_v29 = vadd.f32 %v7725_v12, %v3623_v5 }
 0x765   : > { %v4167_v9 = vpop.f32.mrf.mxu2 }
 0x766   : > { %v5600_v55 = vpop.eup %5599  ;;  %v3765_v22 = vmax.f32 %v3624_v29, 0.0  ;;  %v4168_v42 = vadd.f32 %v7846_v35, %v4167_v9 }
 0x767   : > { %v4466_v23 = vsel %vm4237_vm1, %v5600_v55, %v4166_v21 }
 0x768   : > { %4594 = vst [vmem:[%s7133_s18 + $0x320] sm:$0xff] %v4466_v23  ;;  %v3833_v41 = vpack.c.bf16 %v3765_v22, %v3764_v36  ;;  %5601 = vtanh.f32 %v4168_v42 }
 0x76a   : > { %4209 = vmatmul.bf16.gmra.mxu2 %v3833_v41 }
 0x76b   : > { %v3626_v57 = vpop.f32.mrf.mxu0 }
 0x76c   : > { %v3627_v39 = vadd.f32 %v7980_v3, %v3626_v57 }
 0x76d   : > { %v4170_v24 = vpop.f32.mrf.mxu2 }
 0x76e   : > { %v5602_v61 = vpop.eup %5601  ;;  %v4171_v12 = vadd.f32 %v7846_v35, %v4170_v24  ;;  %v3766_v11 = vmax.f32 %v3627_v39, 0.0 }
 0x76f   : > { %v4467_v0 = vsel %vm4237_vm1, %v5602_v61, %v4168_v42 }
 0x770   : > { %4595 = vst [vmem:[%s7133_s18 + $0x328] sm:$0xff] %v4467_v0  ;;  %5603 = vtanh.f32 %v4171_v12 }
 0x773   : > { %v3628_v1 = vpop.f32.mrf.mxu0 }
 0x774   : > { %v3629_v30 = vadd.f32 %v7980_v3, %v3628_v1 }
 0x775   : > { %v4172_v32 = vpop.f32.mrf.mxu2 }
 0x776   : > { %v5604_v63 = vpop.eup %5603  ;;  %v3767_v54 = vmax.f32 %v3629_v30, 0.0  ;;  %v4173_v15 = vadd.f32 %v7846_v35, %v4172_v32 }
 0x777   : > { %v4468_v60 = vsel %vm4237_vm1, %v5604_v63, %v4171_v12 }
 0x778   : > { %4596 = vst [vmem:[%s7133_s18 + $0x330] sm:$0xff] %v4468_v60  ;;  %v3834_v6 = vpack.c.bf16 %v3767_v54, %v3766_v11  ;;  %5605 = vtanh.f32 %v4173_v15 }
 0x77a   : > { %4214 = vmatmul.bf16.gmra.mxu2 %v3834_v6 }
 0x77b   : > { %v3631_v48 = vpop.f32.mrf.mxu0 }
 0x77c   : > { %v3632_v38 = vadd.f32 %v7980_v3, %v3631_v48 }
 0x77d   : > { %v4175_v51 = vpop.f32.mrf.mxu2 }
 0x77e   : > { %v5606_v56 = vpop.eup %5605  ;;  %v4176_v46 = vadd.f32 %v7846_v35, %v4175_v51  ;;  %v3768_v17 = vmax.f32 %v3632_v38, 0.0 }
 0x77f   : > { %v4469_v25 = vsel %vm4237_vm1, %v5606_v56, %v4173_v15 }
 0x780   : > { %4597 = vst [vmem:[%s7133_s18 + $0x338] sm:$0xff] %v4469_v25  ;;  %5607 = vtanh.f32 %v4176_v46 }
 0x783   : > { %v3633_v16 = vpop.f32.mrf.mxu0 }
 0x784   : > { %v3634_v53 = vadd.f32 %v7980_v3, %v3633_v16 }
 0x785   : > { %v4177_v52 = vpop.f32.mrf.mxu2 }
 0x786   : > { %v5608_v19 = vpop.eup %5607  ;;  %v3769_v31 = vmax.f32 %v3634_v53, 0.0  ;;  %v4178_v37 = vadd.f32 %v7846_v35, %v4177_v52 }
 0x787   : > { %v4470_v10 = vsel %vm4237_vm1, %v5608_v19, %v4176_v46 }
 0x788   : > { %4598 = vst [vmem:[%s7133_s18 + $0x340] sm:$0xff] %v4470_v10  ;;  %v3835_v33 = vpack.c.bf16 %v3769_v31, %v3768_v17  ;;  %5609 = vtanh.f32 %v4178_v37 }
 0x78a   : > { %4219 = vmatmul.bf16.gmra.mxu2 %v3835_v33 }
 0x78b   : > { %v3636_v14 = vpop.f32.mrf.mxu0 }
 0x78c   : > { %v3637_v59 = vadd.f32 %v7980_v3, %v3636_v14 }
 0x78d   : > { %v4180_v18 = vpop.f32.mrf.mxu2 }
 0x78e   : > { %v5610_v43 = vpop.eup %5609  ;;  %v4181_v27 = vadd.f32 %v7846_v35, %v4180_v18  ;;  %v3770_v20 = vmax.f32 %v3637_v59, 0.0 }
 0x78f   : > { %v4471_v7 = vsel %vm4237_vm1, %v5610_v43, %v4178_v37 }
 0x790   : > { %4599 = vst [vmem:[%s7133_s18 + $0x348] sm:$0xff] %v4471_v7  ;;  %5611 = vtanh.f32 %v4181_v27 }
 0x793   : > { %v3638_v13 = vpop.f32.mrf.mxu0 }
 0x794   : > { %v3639_v2 = vadd.f32 %v7980_v3, %v3638_v13 }
 0x795   : > { %v4182_v58 = vpop.f32.mrf.mxu2 }
 0x796   : > { %v5612_v26 = vpop.eup %5611  ;;  %v3771_v47 = vmax.f32 %v3639_v2, 0.0  ;;  %v4183_v49 = vadd.f32 %v7846_v35, %v4182_v58 }
 0x797   : > { %v4472_v45 = vsel %vm4237_vm1, %v5612_v26, %v4181_v27 }
 0x798   : > { %4600 = vst [vmem:[%s7133_s18 + $0x350] sm:$0xff] %v4472_v45  ;;  %v3836_v40 = vpack.c.bf16 %v3771_v47, %v3770_v20  ;;  %5613 = vtanh.f32 %v4183_v49 }
 0x79a   : > { %4224 = vmatmul.bf16.gmra.mxu2 %v3836_v40 }
 0x79b   : > { %v3641_v44 = vpop.f32.mrf.mxu1 }
 0x79c   : > { %v3642_v8 = vadd.f32 %v7980_v3, %v3641_v44 }
 0x79d   : > { %v4185_v62 = vpop.f32.mrf.mxu2 }
 0x79e   : > { %v5614_v28 = vpop.eup %5613  ;;  %v4186_v50 = vadd.f32 %v7846_v35, %v4185_v62  ;;  %v3772_v55 = vmax.f32 %v3642_v8, 0.0 }
 0x79f   : > { %v4473_v21 = vsel %vm4237_vm1, %v5614_v28, %v4183_v49 }
 0x7a0   : > { %4601 = vst [vmem:[%s7133_s18 + $0x358] sm:$0xff] %v4473_v21  ;;  %5615 = vtanh.f32 %v4186_v50 }
 0x7a3   : > { %v3643_v4 = vpop.f32.mrf.mxu1 }
 0x7a4   : > { %v3644_v5 = vadd.f32 %v7980_v3, %v3643_v4 }
 0x7a5   : > { %v4187_v29 = vpop.f32.mrf.mxu2 }
 0x7a6   : > { %v5616_v9 = vpop.eup %5615  ;;  %v3773_v36 = vmax.f32 %v3644_v5, 0.0  ;;  %v4188_v22 = vadd.f32 %v7846_v35, %v4187_v29 }
 0x7a7   : > { %v4474_v42 = vsel %vm4237_vm1, %v5616_v9, %v4186_v50 }
 0x7a8   : > { %4602 = vst [vmem:[%s7133_s18 + $0x360] sm:$0xff] %v4474_v42  ;;  %v3837_v23 = vpack.c.bf16 %v3773_v36, %v3772_v55  ;;  %5617 = vtanh.f32 %v4188_v22 }
 0x7aa   : > { %4229 = vmatmul.bf16.gmra.mxu2 %v3837_v23 }
 0x7ad   : > { %v4190_v41 = vpop.f32.mrf.mxu2 }
 0x7ae   : > { %v5618_v57 = vpop.eup %5617  ;;  %v4191_v24 = vadd.f32 %v7846_v35, %v4190_v41 }
 0x7af   : > { %v4475_v61 = vsel %vm4237_vm1, %v5618_v57, %v4188_v22 }
 0x7b0   : > { %4603 = vst [vmem:[%s7133_s18 + $0x368] sm:$0xff] %v4475_v61  ;;  %5619 = vtanh.f32 %v4191_v24 }
 0x7b5   : > { %v4192_v12 = vpop.f32.mrf.mxu2 }
 0x7b6   : > { %v5620_v0 = vpop.eup %5619  ;;  %v4193_v3 = vadd.f32 %v7846_v35, %v4192_v12 }
 0x7b7   : > { %v4476_v39 = vsel %vm4237_vm1, %v5620_v0, %v4191_v24 }
 0x7b8   : > { %4604 = vst [vmem:[%s7133_s18 + $0x370] sm:$0xff] %v4476_v39  ;;  %5621 = vtanh.f32 %v4193_v3 }
 0x7bd   : > { %v4195_v1 = vpop.f32.mrf.mxu2 }
 0x7be   : > { %v5622_v30 = vpop.eup %5621  ;;  %v4196_v32 = vadd.f32 %v7846_v35, %v4195_v1 }
 0x7bf   : > { %v4477_v63 = vsel %vm4237_vm1, %v5622_v30, %v4193_v3 }
 0x7c0   : > { %4605 = vst [vmem:[%s7133_s18 + $0x378] sm:$0xff] %v4477_v63  ;;  %5623 = vtanh.f32 %v4196_v32 }
 0x7c5   : > { %v4197_v11 = vpop.f32.mrf.mxu2 }
 0x7c6   : > { %v5624_v54 = vpop.eup %5623  ;;  %v4198_v15 = vadd.f32 %v7846_v35, %v4197_v11 }
 0x7c7   : > { %v4478_v60 = vsel %vm4237_vm1, %v5624_v54, %v4196_v32 }
 0x7c8   : > { %4606 = vst [vmem:[%s7133_s18 + $0x380] sm:$0xff] %v4478_v60  ;;  %5625 = vtanh.f32 %v4198_v15 }
 0x7cd   : > { %v4200_v6 = vpop.f32.mrf.mxu2 }
 0x7ce   : > { %v5626_v48 = vpop.eup %5625  ;;  %v4201_v51 = vadd.f32 %v7846_v35, %v4200_v6 }
 0x7cf   : > { %v4479_v56 = vsel %vm4237_vm1, %v5626_v48, %v4198_v15 }
 0x7d0   : > { %4607 = vst [vmem:[%s7133_s18 + $0x388] sm:$0xff] %v4479_v56  ;;  %5627 = vtanh.f32 %v4201_v51 }
 0x7d5   : > { %v4202_v46 = vpop.f32.mrf.mxu2 }
 0x7d6   : > { %v5628_v25 = vpop.eup %5627  ;;  %v4203_v38 = vadd.f32 %v7846_v35, %v4202_v46 }
 0x7d7   : > { %v4480_v16 = vsel %vm4237_vm1, %v5628_v25, %v4201_v51 }
 0x7d8   : > { %4608 = vst [vmem:[%s7133_s18 + $0x390] sm:$0xff] %v4480_v16  ;;  %5629 = vtanh.f32 %v4203_v38 }
 0x7dd   : > { %v4205_v53 = vpop.f32.mrf.mxu2 }
 0x7de   : > { %v5630_v52 = vpop.eup %5629  ;;  %v4206_v19 = vadd.f32 %v7846_v35, %v4205_v53 }
 0x7df   : > { %v4481_v17 = vsel %vm4237_vm1, %v5630_v52, %v4203_v38 }
 0x7e0   : > { %4609 = vst [vmem:[%s7133_s18 + $0x398] sm:$0xff] %v4481_v17  ;;  %5631 = vtanh.f32 %v4206_v19 }
 0x7e5   : > { %v4207_v31 = vpop.f32.mrf.mxu2 }
 0x7e6   : > { %v5632_v37 = vpop.eup %5631  ;;  %v4208_v10 = vadd.f32 %v7846_v35, %v4207_v31 }
 0x7e7   : > { %v4482_v33 = vsel %vm4237_vm1, %v5632_v37, %v4206_v19 }
 0x7e8   : > { %4610 = vst [vmem:[%s7133_s18 + $0x3a0] sm:$0xff] %v4482_v33  ;;  %5633 = vtanh.f32 %v4208_v10 }
 0x7ed   : > { %v4210_v14 = vpop.f32.mrf.mxu2 }
 0x7ee   : > { %v5634_v18 = vpop.eup %5633  ;;  %v4211_v43 = vadd.f32 %v7846_v35, %v4210_v14 }
 0x7ef   : > { %v4483_v27 = vsel %vm4237_vm1, %v5634_v18, %v4208_v10 }
 0x7f0   : > { %4611 = vst [vmem:[%s7133_s18 + $0x3a8] sm:$0xff] %v4483_v27  ;;  %5635 = vtanh.f32 %v4211_v43 }
 0x7f5   : > { %v4212_v7 = vpop.f32.mrf.mxu2 }
 0x7f6   : > { %v5636_v59 = vpop.eup %5635  ;;  %v4213_v13 = vadd.f32 %v7846_v35, %v4212_v7 }
 0x7f7   : > { %v4484_v2 = vsel %vm4237_vm1, %v5636_v59, %v4211_v43 }
 0x7f8   : > { %4612 = vst [vmem:[%s7133_s18 + $0x3b0] sm:$0xff] %v4484_v2  ;;  %5637 = vtanh.f32 %v4213_v13 }
 0x7fd   : > { %v4215_v58 = vpop.f32.mrf.mxu2 }
 0x7fe   : > { %v5638_v26 = vpop.eup %5637  ;;  %v4216_v20 = vadd.f32 %v7846_v35, %v4215_v58 }
 0x7ff   : > { %v4485_v47 = vsel %vm4237_vm1, %v5638_v26, %v4213_v13 }
 0x800   : > { %4613 = vst [vmem:[%s7133_s18 + $0x3b8] sm:$0xff] %v4485_v47  ;;  %5639 = vtanh.f32 %v4216_v20 }
 0x805   : > { %v4217_v49 = vpop.f32.mrf.mxu2 }
 0x806   : > { %v5640_v45 = vpop.eup %5639  ;;  %v4218_v40 = vadd.f32 %v7846_v35, %v4217_v49 }
 0x807   : > { %v4486_v44 = vsel %vm4237_vm1, %v5640_v45, %v4216_v20 }
 0x808   : > { %4614 = vst [vmem:[%s7133_s18 + $0x3c0] sm:$0xff] %v4486_v44  ;;  %5641 = vtanh.f32 %v4218_v40 }
 0x80d   : > { %v4220_v62 = vpop.f32.mrf.mxu2 }
 0x80e   : > { %v5642_v28 = vpop.eup %5641  ;;  %v4221_v50 = vadd.f32 %v7846_v35, %v4220_v62 }
 0x80f   : > { %v4487_v21 = vsel %vm4237_vm1, %v5642_v28, %v4218_v40 }
 0x810   : > { %4615 = vst [vmem:[%s7133_s18 + $0x3c8] sm:$0xff] %v4487_v21  ;;  %5643 = vtanh.f32 %v4221_v50 }
 0x815   : > { %v4222_v8 = vpop.f32.mrf.mxu2 }
 0x816   : > { %v5644_v4 = vpop.eup %5643  ;;  %v4223_v5 = vadd.f32 %v7846_v35, %v4222_v8 }
 0x817   : > { %v4488_v29 = vsel %vm4237_vm1, %v5644_v4, %v4221_v50 }
 0x818   : > { %4616 = vst [vmem:[%s7133_s18 + $0x3d0] sm:$0xff] %v4488_v29  ;;  %5645 = vtanh.f32 %v4223_v5 }
 0x81d   : > { %v4225_v9 = vpop.f32.mrf.mxu2 }
 0x81e   : > { %v5646_v55 = vpop.eup %5645  ;;  %v4226_v36 = vadd.f32 %v7846_v35, %v4225_v9 }
 0x81f   : > { %v4489_v22 = vsel %vm4237_vm1, %v5646_v55, %v4223_v5 }
 0x820   : > { %4617 = vst [vmem:[%s7133_s18 + $0x3d8] sm:$0xff] %v4489_v22  ;;  %5647 = vtanh.f32 %v4226_v36 }
 0x825   : > { %v4227_v42 = vpop.f32.mrf.mxu2 }
 0x826   : > { %v5648_v23 = vpop.eup %5647  ;;  %v4228_v41 = vadd.f32 %v7846_v35, %v4227_v42 }
 0x827   : > { %v4490_v57 = vsel %vm4237_vm1, %v5648_v23, %v4226_v36 }
 0x828   : > { %4618 = vst [vmem:[%s7133_s18 + $0x3e0] sm:$0xff] %v4490_v57  ;;  %5649 = vtanh.f32 %v4228_v41 }
 0x82d   : > { %v4230_v24 = vpop.f32.mrf.mxu2 }
 0x82e   : > { %v5650_v61 = vpop.eup %5649  ;;  %v4231_v12 = vadd.f32 %v7846_v35, %v4230_v24 }
 0x82f   : > { %v4491_v0 = vsel %vm4237_vm1, %v5650_v61, %v4228_v41 }
 0x830   : > { %4619 = vst [vmem:[%s7133_s18 + $0x3e8] sm:$0xff] %v4491_v0  ;;  %5651 = vtanh.f32 %v4231_v12 }
 0x835   : > { %v4232_v3 = vpop.f32.mrf.mxu2 }
 0x836   : > { %v5652_v39 = vpop.eup %5651  ;;  %v4233_v1 = vadd.f32 %v7846_v35, %v4232_v3 }
 0x837   : > { %v4492_v30 = vsel %vm4237_vm1, %v5652_v39, %v4231_v12 }
 0x838   : > { %4620 = vst [vmem:[%s7133_s18 + $0x3f0] sm:$0xff] %v4492_v30  ;;  %5653 = vtanh.f32 %v4233_v1 }
 0x83e   : > { %v5654_v32 = vpop.eup %5653 }
 0x83f   : > { %v4493_v63 = vsel %vm4237_vm1, %v5654_v32, %v4233_v1 }
 0x840   : > { %4621 = vst [vmem:[%s7133_s18 + $0x3f8] sm:$0xff] %v4493_v63 }
 0x841   : > { %5700 = shalt.err (!%p5697_p3)
}
 0x842   : > { %s5737_s29 = smov 128   ;;  %s5738_s18 = smov 8  }
 0x843   : > { %5353 = dma.vmem_to_hbm [thread:$0]  (%p5842_p5), %s4636_s30, 16384, %s4638_s17, %s4623_s25, %s5737_s29, %s5737_s29, %s5738_s18  }
 0x844 PF: > { %p5359_p4 = scmp.ge.s32.totalorder %s5735_s24, 2  ;;  %s4652_s20 = sand.u32 1, %s5723_s21  }
 0x845   : > { %s4653_s0 = scalar_lea.sflag [#allocation3], %s4652_s20 }
 0x846   : > { %p5356_p7 = pnand %p5359_p4, %p5846_p6 }
 0x848   : > { %p5357_p8 = pneg %p5356_p7 }
 0x84a   : > { %5718 = dma.done.wait (%p5357_p8), %s4653_s0, 16384  }
 0x84b   : > { %5720 = vsyncadd (%p5357_p8), %s4653_s0, 4294950912  ;;  %s8349_s19 = sld [smem:[#allocation5_spill]]  ;;  %p22_p9 = scmp.ge.s32.totalorder %s5829_s27, 4  }
 0x84c   : > { %s8350_s21 = smov %s5727_s22  ;;  %s8351_s22 = smov %s5731_s23 }
 0x84d   : > { %s8353_s24 = smov %s5829_s27  ;;  %24 = sbr.rel (!%p22_p9) target bundleno = 5 (0x5), region = 103 }
 0x851   : > { %s8352_s23 = smov %s8349_s19 }
 0x852   :  { %4659 = vsyncpa [#allocation3], 1 }
 0x853   :  { %4661 = vsyncpa [#allocation3 + $0x1], 1 }

</bundles_post_ra>
